<compile_context>
chip_gen: v6e
topology: v6e:2x2x1
jax: 0.10.0
libtpu: 0.0.40
codegen_flags: <defaults>
</compile_context>

<pallas_src>
import functools

import jax
import jax.numpy as jnp
from jax import lax
from jax.experimental import pallas as pl
from jax.experimental.pallas import tpu as pltpu


# ----------------------------------------------------------------------------
# Fused kernel: MaxUnpool2d(2) -> [reflect-pad conv -> BN -> ReLU] x 3
# ----------------------------------------------------------------------------
def _upconv3_kernel(x_ref, idx_ref, scat_ref,
                    w1_ref, sb1_ref, w2_ref, sb2_ref, w3_ref, sb3_ref,
                    out_ref, a_ref, cd_ref,
                    *, H, W, Ho, Wo, K, Cin, Cout, act_dtype):
    p = K // 2
    head = 2 * p                       # head/tail lanes so corner taps stay in-bounds
    hw = Ho * Wo
    f32 = jnp.float32

    # column index (within an output row) of every flat-spatial lane
    lane = lax.broadcasted_iota(jnp.int32, (Cin, hw), 1)
    col = (lane & (Wo - 1)) if (Wo & (Wo - 1)) == 0 else (lane % Wo)

    def row_lane(r):                   # first lane of padded row r, r in [0, Ho+2p)
        return head + r * Wo

    def reflect_rows():                # vertical reflect-padding rows
        for s in range(1, p + 1):
            a_ref[:, pl.ds(row_lane(p - s), Wo)] = (
                a_ref[:, pl.ds(row_lane(p + s), Wo)])
            a_ref[:, pl.ds(row_lane(p + Ho - 1 + s), Wo)] = (
                a_ref[:, pl.ds(row_lane(p + Ho - 1 - s), Wo)])

    # ---- 0. clear padded-activation scratch ---------------------------------
    a_ref[...] = jnp.zeros_like(a_ref)

    # ---- 1. MaxUnpool2d(2): parity masks + one 0/1-matmul interleave --------
    xk = x_ref[0].astype(act_dtype)    # (H*Cin, W), rows ordered h-major
    ik = idx_ref[0]                    # (H*Cin, W) int32, flat into Ho*Wo
    dw = (ik & 1) if Wo % 2 == 0 else ((ik % Wo) & 1)
    if (Wo & (Wo - 1)) == 0:
        dh = (ik >> (Wo.bit_length() - 1)) & 1
    else:
        dh = (ik // Wo) & 1
    cd = jnp.zeros((H * Cin, 2 * Wo), f32)
    for i in (0, 1):
        for j in (0, 1):
            piece = jnp.where((dh == i) & (dw == j), xk, jnp.zeros_like(xk))
            smat = scat_ref[(2 * i + j) * W:(2 * i + j + 1) * W, :]
            cd = cd + jnp.dot(piece, smat.astype(act_dtype),
                              preferred_element_type=f32)
    cd_ref[...] = cd.astype(act_dtype)
    for h in range(H):                 # output rows (2h, 2h+1) = one contiguous chunk
        a_ref[:, pl.ds(row_lane(p + 2 * h), 2 * Wo)] = (
            cd_ref[h * Cin:(h + 1) * Cin, :])
    reflect_rows()

    # ---- 2. conv taps: lane-dense slices of the padded activation -----------
    def load_tap(dr, ds):
        start = row_lane(p + dr) + ds
        v = a_ref[:, pl.ds(start, hw)]          # (Cin, Ho*Wo)
        if ds < 0:                              # left-border horizontal reflect
            fixes = [(so, 2 * (so + ds)) for so in range(-ds)]
        elif ds > 0:                            # right-border horizontal reflect
            fixes = [(so, 2 * (so + ds - Wo + 1)) for so in range(Wo - ds, Wo)]
        else:
            fixes = []
        for so, shift in fixes:
            alt = a_ref[:, pl.ds(start - shift, hw)]
            v = jnp.where(col == so, alt, v)
        return v

    def conv_bn_relu(w_ref_, sb_ref_, cout):
        acc = jnp.zeros((cout, hw), f32)
        for kh in range(K):
            for kw in range(K):
                rhs = load_tap(kh - p, kw - p)                 # (Cin, Ho*Wo)
                lhs = w_ref_[kh * K + kw].astype(rhs.dtype)    # (cout, Cin)
                acc = acc + jnp.dot(lhs, rhs, preferred_element_type=f32)
        y = acc * sb_ref_[:, 0:1] + sb_ref_[:, 1:2]            # folded inference BN
        return jnp.maximum(y, 0.0)                             # ReLU, lane-dense f32

    y = conv_bn_relu(w1_ref, sb1_ref, Cin)
    a_ref[:, pl.ds(row_lane(p), hw)] = y.astype(act_dtype)
    reflect_rows()
    y = conv_bn_relu(w2_ref, sb2_ref, Cin)
    a_ref[:, pl.ds(row_lane(p), hw)] = y.astype(act_dtype)
    reflect_rows()
    y = conv_bn_relu(w3_ref, sb3_ref, Cout)
    out_ref[0] = y.astype(out_ref.dtype)                       # flat NCHW output


# ----------------------------------------------------------------------------
# Wrapper
# ----------------------------------------------------------------------------
def upconv3_forward(params, x_nchw, indices_nchw, output_size,
                    act_dtype=jnp.float32):
    """Matches UpConv3.forward(x, indices, output_size). NCHW in, NCHW out."""
    N, Cin, H, W = x_nchw.shape
    Ho, Wo = output_size
    assert Ho >= 2 * H and Wo >= 2 * W
    (w1, s1, b1), (w2, s2, b2), (w3, s3, b3) = params
    K = w1.shape[-1]
    assert K % 2 == 1
    p = K // 2
    Cout = w3.shape[0]
    assert w1.shape == (Cin, Cin, K, K) and w2.shape == (Cin, Cin, K, K)
    assert w3.shape[:2] == (Cout, Cin)

    # Tiny pre-unpool inputs re-laid out h-major for the in-kernel scatter.
    xk = jnp.transpose(x_nchw, (0, 2, 1, 3)).reshape(N, H * Cin, W)
    ik = jnp.transpose(indices_nchw, (0, 2, 1, 3)).astype(jnp.int32)
    ik = ik.reshape(N, H * Cin, W)

    # Constant 0/1 scatter matrix: row b*W+w (b = 2*dh+dw) -> column dh*Wo+2w+dw.
    a = jnp.arange(4 * W)
    b_, w_ = a // W, a % W
    tgt = (b_ // 2) * Wo + 2 * w_ + (b_ % 2)
    scat = (jnp.arange(2 * Wo)[None, :] == tgt[:, None]).astype(jnp.float32)

    def wk(w):     # (Cout_l, Cin, K, K) -> (K*K, Cout_l, Cin), tap-major
        return jnp.transpose(w, (2, 3, 0, 1)).reshape(K * K, w.shape[0], Cin)

    def sb(scale, shift):   # pack per-layer BN scale/shift into one (Cout_l, 2)
        return jnp.stack([scale, shift], axis=1)

    alen = (Ho + 2 * p) * Wo + 4 * p
    kern = functools.partial(_upconv3_kernel, H=H, W=W, Ho=Ho, Wo=Wo, K=K,
                             Cin=Cin, Cout=Cout, act_dtype=act_dtype)
    full2 = lambda n: (0, 0)
    full3 = lambda n: (0, 0, 0)
    out = pl.pallas_call(
        kern,
        out_shape=jax.ShapeDtypeStruct((N, Cout, Ho * Wo), x_nchw.dtype),
        grid=(N,),
        in_specs=[
            pl.BlockSpec((1, H * Cin, W), lambda n: (n, 0, 0)),
            pl.BlockSpec((1, H * Cin, W), lambda n: (n, 0, 0)),
            pl.BlockSpec((4 * W, 2 * Wo), full2),
            pl.BlockSpec((K * K, Cin, Cin), full3), pl.BlockSpec((Cin, 2), full2),
            pl.BlockSpec((K * K, Cin, Cin), full3), pl.BlockSpec((Cin, 2), full2),
            pl.BlockSpec((K * K, Cout, Cin), full3), pl.BlockSpec((Cout, 2), full2),
        ],
        out_specs=pl.BlockSpec((1, Cout, Ho * Wo), lambda n: (n, 0, 0)),
        scratch_shapes=[
            pltpu.VMEM((Cin, alen), act_dtype),        # padded activation (reused)
            pltpu.VMEM((H * Cin, 2 * Wo), act_dtype),  # unpooled row pairs
        ],
        compiler_params=pltpu.CompilerParams(dimension_semantics=("parallel",)),
    )(xk, ik, scat, wk(w1), sb(s1, b1), wk(w2), sb(s2, b2), wk(w3), sb(s3, b3))
    # Free reshape: (N, Cout, Ho*Wo) is already flat NCHW.
    return out.reshape(N, Cout, Ho, Wo)


# ----------------------------------------------------------------------------
# Parameters (deterministic; shapes follow UpConv3.__init__). Conv weights kept
# in PyTorch OIHW layout; inference BN folded into per-channel (scale, shift).
# ----------------------------------------------------------------------------
def init_upconv3_params(key, chin, chout, kernel_size):
    eps = 1e-5
    layer_chans = [(chin, chin), (chin, chin), (chin, chout)]
    params = []
    for i, (ci, co) in enumerate(layer_chans):
        kw_, kg, kb = jax.random.split(jax.random.fold_in(key, i), 3)
        w = jax.random.normal(kw_, (co, ci, kernel_size, kernel_size),
                              jnp.float32) * 0.1
        gamma = 1.0 + 0.1 * jax.random.normal(kg, (co,), jnp.float32)
        beta = 0.1 * jax.random.normal(kb, (co,), jnp.float32)
        running_mean = jnp.zeros((co,), jnp.float32)
        running_var = jnp.ones((co,), jnp.float32)
        scale = gamma / jnp.sqrt(running_var + eps)
        shift = beta - running_mean * scale
        params.append((w, scale, shift))
    return params


# ----------------------------------------------------------------------------
# Pure-JAX reference (independent implementation) for a correctness check.
# ----------------------------------------------------------------------------
def _reference_forward(params, x_nchw, indices_nchw, output_size):
    N, C, H, W = x_nchw.shape
    Ho, Wo = output_size
    flat = jnp.zeros((N, C, Ho * Wo), x_nchw.dtype)
    n_i = jnp.arange(N)[:, None, None]
    c_i = jnp.arange(C)[None, :, None]
    flat = flat.at[n_i, c_i, indices_nchw.reshape(N, C, -1)].set(
        x_nchw.reshape(N, C, -1))
    y = jnp.transpose(flat.reshape(N, C, Ho, Wo), (0, 2, 3, 1))
    for (w, scale, shift) in params:
        p = w.shape[-1] // 2
        w_hwio = jnp.transpose(w, (2, 3, 1, 0))
        yp = jnp.pad(y, ((0, 0), (p, p), (p, p), (0, 0)), mode="reflect")
        y = lax.conv_general_dilated(
            yp, w_hwio, window_strides=(1, 1), padding="VALID",
            dimension_numbers=("NHWC", "HWIO", "NHWC"))
        y = jnp.maximum(y * scale + shift, 0.0)
    return jnp.transpose(y, (0, 3, 1, 2))


if __name__ == "__main__":
    N, chin, chout, K = 2, 4, 8, 3
    H = W = 16
    Ho, Wo = 2 * H, 2 * W  # output_size of the unpool

    key = jax.random.PRNGKey(0)
    kx, kdh, kdw, kp = jax.random.split(key, 4)

    x = jax.random.normal(kx, (N, chin, H, W), jnp.float32)

    # Synthesize MaxPool2d(2)-style indices: one position per 2x2 output block,
    # flattened into Ho*Wo (PyTorch MaxUnpool2d index convention).
    dh = jax.random.randint(kdh, (N, chin, H, W), 0, 2)
    dw = jax.random.randint(kdw, (N, chin, H, W), 0, 2)
    hh = jnp.arange(H)[None, None, :, None]
    ww = jnp.arange(W)[None, None, None, :]
    indices = ((2 * hh + dh) * Wo + (2 * ww + dw)).astype(jnp.int32)

    params = init_upconv3_params(kp, chin, chout, K)

    fwd = jax.jit(functools.partial(upconv3_forward, output_size=(Ho, Wo)))
    out = jax.block_until_ready(fwd(params, x, indices))
    assert out.shape == (N, chout, Ho, Wo), out.shape

    ref = jax.block_until_ready(
        _reference_forward(params, x, indices, (Ho, Wo)))
    max_err = float(jnp.max(jnp.abs(out - ref)))
    ref_mag = float(jnp.max(jnp.abs(ref))) + 1e-6
    assert max_err <= 5e-2 * ref_mag + 1e-4, (max_err, ref_mag)

    print("KERNEL_OK")
</pallas_src>

<mosaic_0001>
module attributes {stable_mosaic.version = 11 : i64} {
  func.func @_upconv3_kernel(%arg0: i32, %arg1: memref<1x64x16xf32, #tpu.memory_space<vmem>>, %arg2: memref<1x64x16xi32, #tpu.memory_space<vmem>>, %arg3: memref<64x64xf32, #tpu.memory_space<vmem>>, %arg4: memref<9x4x4xf32, #tpu.memory_space<vmem>>, %arg5: memref<4x2xf32, #tpu.memory_space<vmem>>, %arg6: memref<9x4x4xf32, #tpu.memory_space<vmem>>, %arg7: memref<4x2xf32, #tpu.memory_space<vmem>>, %arg8: memref<9x8x4xf32, #tpu.memory_space<vmem>>, %arg9: memref<8x2xf32, #tpu.memory_space<vmem>>, %arg10: memref<1x8x1024xf32, #tpu.memory_space<vmem>>, %arg11: memref<4x1092xf32, #tpu.memory_space<vmem>>, %arg12: memref<64x64xf32, #tpu.memory_space<vmem>>) attributes {dimension_semantics = [#tpu.dimension_semantics<parallel>], iteration_bounds = array<i64: 2>, scalar_prefetch = 0 : i64, scratch_operands = 2 : i64, tpu.core_type = #tpu.core_type<tc>, window_params = [{transform_indices = @transform_0, window_bounds = array<i64: 1, 64, 16>}, {transform_indices = @transform_1, window_bounds = array<i64: 1, 64, 16>}, {pipeline_mode = #tpu.pipeline_mode<synchronous>, transform_indices = @transform_2, window_bounds = array<i64: 64, 64>}, {pipeline_mode = #tpu.pipeline_mode<synchronous>, transform_indices = @transform_3, window_bounds = array<i64: 9, 4, 4>}, {pipeline_mode = #tpu.pipeline_mode<synchronous>, transform_indices = @transform_4, window_bounds = array<i64: 4, 2>}, {pipeline_mode = #tpu.pipeline_mode<synchronous>, transform_indices = @transform_5, window_bounds = array<i64: 9, 4, 4>}, {pipeline_mode = #tpu.pipeline_mode<synchronous>, transform_indices = @transform_6, window_bounds = array<i64: 4, 2>}, {pipeline_mode = #tpu.pipeline_mode<synchronous>, transform_indices = @transform_7, window_bounds = array<i64: 9, 8, 4>}, {pipeline_mode = #tpu.pipeline_mode<synchronous>, transform_indices = @transform_8, window_bounds = array<i64: 8, 2>}, {transform_indices = @transform_9, window_bounds = array<i64: 1, 8, 1024>}]} {
    %0 = tpu.iota {dimensions = array<i32: 1>} : vector<4x1024xi32>
    %c31_i32 = arith.constant 31 : i32
    %1 = vector.broadcast %c31_i32 : i32 to vector<4x1024xi32>
    %2 = arith.andi %0, %1 : vector<4x1024xi32>
    %cst = arith.constant 0.000000e+00 : f32
    %3 = vector.broadcast %cst : f32 to vector<4x1092xf32>
    %c0 = arith.constant 0 : index
    %c0_0 = arith.constant 0 : index
    %4 = vector.load %arg11[%c0, %c0_0] : memref<4x1092xf32, #tpu.memory_space<vmem>>, vector<4x1092xf32>
    tpu.vector_store %arg11[%c0, %c0_0], %3 {strides = array<i32>} : memref<4x1092xf32, #tpu.memory_space<vmem>>, vector<4x1092xf32>,
    %c0_1 = arith.constant 0 : index
    %c0_2 = arith.constant 0 : index
    %c0_3 = arith.constant 0 : index
    %5 = vector.load %arg1[%c0_1, %c0_2, %c0_3] : memref<1x64x16xf32, #tpu.memory_space<vmem>>, vector<1x64x16xf32>
    %6 = vector.shape_cast %5 : vector<1x64x16xf32> to vector<64x16xf32>
    %c0_4 = arith.constant 0 : index
    %c0_5 = arith.constant 0 : index
    %c0_6 = arith.constant 0 : index
    %7 = vector.load %arg2[%c0_4, %c0_5, %c0_6] : memref<1x64x16xi32, #tpu.memory_space<vmem>>, vector<1x64x16xi32>
    %8 = vector.shape_cast %7 : vector<1x64x16xi32> to vector<64x16xi32>
    %c1_i32 = arith.constant 1 : i32
    %9 = vector.broadcast %c1_i32 : i32 to vector<64x16xi32>
    %10 = arith.andi %8, %9 : vector<64x16xi32>
    %c5_i32 = arith.constant 5 : i32
    %11 = vector.broadcast %c5_i32 : i32 to vector<64x16xi32>
    %12 = arith.shrsi %8, %11 : vector<64x16xi32>
    %c1_i32_7 = arith.constant 1 : i32
    %13 = vector.broadcast %c1_i32_7 : i32 to vector<64x16xi32>
    %14 = arith.andi %12, %13 : vector<64x16xi32>
    %cst_8 = arith.constant 0.000000e+00 : f32
    %15 = vector.broadcast %cst_8 : f32 to vector<64x64xf32>
    %c0_i32 = arith.constant 0 : i32
    %16 = vector.broadcast %c0_i32 : i32 to vector<64x16xi32>
    %17 = arith.cmpi eq, %14, %16 : vector<64x16xi32>
    %c0_i32_9 = arith.constant 0 : i32
    %18 = vector.broadcast %c0_i32_9 : i32 to vector<64x16xi32>
    %19 = arith.cmpi eq, %10, %18 : vector<64x16xi32>
    %20 = arith.andi %17, %19 : vector<64x16xi1>
    %cst_10 = arith.constant 0.000000e+00 : f32
    %21 = vector.broadcast %cst_10 : f32 to vector<64x16xf32>
    %22 = arith.select %20, %6, %21 : vector<64x16xi1>, vector<64x16xf32>
    %c0_11 = arith.constant 0 : index
    %c0_12 = arith.constant 0 : index
    %23 = vector.load %arg3[%c0_11, %c0_12] : memref<64x64xf32, #tpu.memory_space<vmem>>, vector<16x64xf32>
    %cst_13 = arith.constant dense<0.000000e+00> : vector<64x64xf32>
    %24 = tpu.matmul %22, %23, %cst_13 {dimension_numbers = #tpu.dot_dimension_numbers<[1], [0], [0], [1], [0, 0, 1, 1], [], []>} : vector<64x16xf32>, vector<16x64xf32>, vector<64x64xf32> -> vector<64x64xf32>
    %25 = arith.addf %15, %24 : vector<64x64xf32>
    %c0_i32_14 = arith.constant 0 : i32
    %26 = vector.broadcast %c0_i32_14 : i32 to vector<64x16xi32>
    %27 = arith.cmpi eq, %14, %26 : vector<64x16xi32>
    %c1_i32_15 = arith.constant 1 : i32
    %28 = vector.broadcast %c1_i32_15 : i32 to vector<64x16xi32>
    %29 = arith.cmpi eq, %10, %28 : vector<64x16xi32>
    %30 = arith.andi %27, %29 : vector<64x16xi1>
    %cst_16 = arith.constant 0.000000e+00 : f32
    %31 = vector.broadcast %cst_16 : f32 to vector<64x16xf32>
    %32 = arith.select %30, %6, %31 : vector<64x16xi1>, vector<64x16xf32>
    %c16 = arith.constant 16 : index
    %c0_17 = arith.constant 0 : index
    %33 = vector.load %arg3[%c16, %c0_17] : memref<64x64xf32, #tpu.memory_space<vmem>>, vector<16x64xf32>
    %cst_18 = arith.constant dense<0.000000e+00> : vector<64x64xf32>
    %34 = tpu.matmul %32, %33, %cst_18 {dimension_numbers = #tpu.dot_dimension_numbers<[1], [0], [0], [1], [0, 0, 1, 1], [], []>} : vector<64x16xf32>, vector<16x64xf32>, vector<64x64xf32> -> vector<64x64xf32>
    %35 = arith.addf %25, %34 : vector<64x64xf32>
    %c1_i32_19 = arith.constant 1 : i32
    %36 = vector.broadcast %c1_i32_19 : i32 to vector<64x16xi32>
    %37 = arith.cmpi eq, %14, %36 : vector<64x16xi32>
    %c0_i32_20 = arith.constant 0 : i32
    %38 = vector.broadcast %c0_i32_20 : i32 to vector<64x16xi32>
    %39 = arith.cmpi eq, %10, %38 : vector<64x16xi32>
    %40 = arith.andi %37, %39 : vector<64x16xi1>
    %cst_21 = arith.constant 0.000000e+00 : f32
    %41 = vector.broadcast %cst_21 : f32 to vector<64x16xf32>
    %42 = arith.select %40, %6, %41 : vector<64x16xi1>, vector<64x16xf32>
    %c32 = arith.constant 32 : index
    %c0_22 = arith.constant 0 : index
    %43 = vector.load %arg3[%c32, %c0_22] : memref<64x64xf32, #tpu.memory_space<vmem>>, vector<16x64xf32>
    %cst_23 = arith.constant dense<0.000000e+00> : vector<64x64xf32>
    %44 = tpu.matmul %42, %43, %cst_23 {dimension_numbers = #tpu.dot_dimension_numbers<[1], [0], [0], [1], [0, 0, 1, 1], [], []>} : vector<64x16xf32>, vector<16x64xf32>, vector<64x64xf32> -> vector<64x64xf32>
    %45 = arith.addf %35, %44 : vector<64x64xf32>
    %c1_i32_24 = arith.constant 1 : i32
    %46 = vector.broadcast %c1_i32_24 : i32 to vector<64x16xi32>
    %47 = arith.cmpi eq, %14, %46 : vector<64x16xi32>
    %c1_i32_25 = arith.constant 1 : i32
    %48 = vector.broadcast %c1_i32_25 : i32 to vector<64x16xi32>
    %49 = arith.cmpi eq, %10, %48 : vector<64x16xi32>
    %50 = arith.andi %47, %49 : vector<64x16xi1>
    %cst_26 = arith.constant 0.000000e+00 : f32
    %51 = vector.broadcast %cst_26 : f32 to vector<64x16xf32>
    %52 = arith.select %50, %6, %51 : vector<64x16xi1>, vector<64x16xf32>
    %c48 = arith.constant 48 : index
    %c0_27 = arith.constant 0 : index
    %53 = vector.load %arg3[%c48, %c0_27] : memref<64x64xf32, #tpu.memory_space<vmem>>, vector<16x64xf32>
    %cst_28 = arith.constant dense<0.000000e+00> : vector<64x64xf32>
    %54 = tpu.matmul %52, %53, %cst_28 {dimension_numbers = #tpu.dot_dimension_numbers<[1], [0], [0], [1], [0, 0, 1, 1], [], []>} : vector<64x16xf32>, vector<16x64xf32>, vector<64x64xf32> -> vector<64x64xf32>
    %55 = arith.addf %45, %54 : vector<64x64xf32>
    %c0_29 = arith.constant 0 : index
    %c0_30 = arith.constant 0 : index
    %56 = vector.load %arg12[%c0_29, %c0_30] : memref<64x64xf32, #tpu.memory_space<vmem>>, vector<64x64xf32>
    tpu.vector_store %arg12[%c0_29, %c0_30], %55 {strides = array<i32>} : memref<64x64xf32, #tpu.memory_space<vmem>>, vector<64x64xf32>,
    %c0_31 = arith.constant 0 : index
    %c0_32 = arith.constant 0 : index
    %57 = vector.load %arg12[%c0_31, %c0_32] : memref<64x64xf32, #tpu.memory_space<vmem>>, vector<4x64xf32>
    %c0_33 = arith.constant 0 : index
    %c34 = arith.constant 34 : index
    %58 = vector.load %arg11[%c0_33, %c34] : memref<4x1092xf32, #tpu.memory_space<vmem>>, vector<4x64xf32>
    tpu.vector_store %arg11[%c0_33, %c34], %57 {strides = array<i32>} : memref<4x1092xf32, #tpu.memory_space<vmem>>, vector<4x64xf32>,
    %c4 = arith.constant 4 : index
    %c0_34 = arith.constant 0 : index
    %59 = vector.load %arg12[%c4, %c0_34] : memref<64x64xf32, #tpu.memory_space<vmem>>, vector<4x64xf32>
    %c0_35 = arith.constant 0 : index
    %c98 = arith.constant 98 : index
    %60 = vector.load %arg11[%c0_35, %c98] : memref<4x1092xf32, #tpu.memory_space<vmem>>, vector<4x64xf32>
    tpu.vector_store %arg11[%c0_35, %c98], %59 {strides = array<i32>} : memref<4x1092xf32, #tpu.memory_space<vmem>>, vector<4x64xf32>,
    %c8 = arith.constant 8 : index
    %c0_36 = arith.constant 0 : index
    %61 = vector.load %arg12[%c8, %c0_36] : memref<64x64xf32, #tpu.memory_space<vmem>>, vector<4x64xf32>
    %c0_37 = arith.constant 0 : index
    %c162 = arith.constant 162 : index
    %62 = vector.load %arg11[%c0_37, %c162] : memref<4x1092xf32, #tpu.memory_space<vmem>>, vector<4x64xf32>
    tpu.vector_store %arg11[%c0_37, %c162], %61 {strides = array<i32>} : memref<4x1092xf32, #tpu.memory_space<vmem>>, vector<4x64xf32>,
    %c12 = arith.constant 12 : index
    %c0_38 = arith.constant 0 : index
    %63 = vector.load %arg12[%c12, %c0_38] : memref<64x64xf32, #tpu.memory_space<vmem>>, vector<4x64xf32>
    %c0_39 = arith.constant 0 : index
    %c226 = arith.constant 226 : index
    %64 = vector.load %arg11[%c0_39, %c226] : memref<4x1092xf32, #tpu.memory_space<vmem>>, vector<4x64xf32>
    tpu.vector_store %arg11[%c0_39, %c226], %63 {strides = array<i32>} : memref<4x1092xf32, #tpu.memory_space<vmem>>, vector<4x64xf32>,
    %c16_40 = arith.constant 16 : index
    %c0_41 = arith.constant 0 : index
    %65 = vector.load %arg12[%c16_40, %c0_41] : memref<64x64xf32, #tpu.memory_space<vmem>>, vector<4x64xf32>
    %c0_42 = arith.constant 0 : index
    %c290 = arith.constant 290 : index
    %66 = vector.load %arg11[%c0_42, %c290] : memref<4x1092xf32, #tpu.memory_space<vmem>>, vector<4x64xf32>
    tpu.vector_store %arg11[%c0_42, %c290], %65 {strides = array<i32>} : memref<4x1092xf32, #tpu.memory_space<vmem>>, vector<4x64xf32>,
    %c20 = arith.constant 20 : index
    %c0_43 = arith.constant 0 : index
    %67 = vector.load %arg12[%c20, %c0_43] : memref<64x64xf32, #tpu.memory_space<vmem>>, vector<4x64xf32>
    %c0_44 = arith.constant 0 : index
    %c354 = arith.constant 354 : index
    %68 = vector.load %arg11[%c0_44, %c354] : memref<4x1092xf32, #tpu.memory_space<vmem>>, vector<4x64xf32>
    tpu.vector_store %arg11[%c0_44, %c354], %67 {strides = array<i32>} : memref<4x1092xf32, #tpu.memory_space<vmem>>, vector<4x64xf32>,
    %c24 = arith.constant 24 : index
    %c0_45 = arith.constant 0 : index
    %69 = vector.load %arg12[%c24, %c0_45] : memref<64x64xf32, #tpu.memory_space<vmem>>, vector<4x64xf32>
    %c0_46 = arith.constant 0 : index
    %c418 = arith.constant 418 : index
    %70 = vector.load %arg11[%c0_46, %c418] : memref<4x1092xf32, #tpu.memory_space<vmem>>, vector<4x64xf32>
    tpu.vector_store %arg11[%c0_46, %c418], %69 {strides = array<i32>} : memref<4x1092xf32, #tpu.memory_space<vmem>>, vector<4x64xf32>,
    %c28 = arith.constant 28 : index
    %c0_47 = arith.constant 0 : index
    %71 = vector.load %arg12[%c28, %c0_47] : memref<64x64xf32, #tpu.memory_space<vmem>>, vector<4x64xf32>
    %c0_48 = arith.constant 0 : index
    %c482 = arith.constant 482 : index
    %72 = vector.load %arg11[%c0_48, %c482] : memref<4x1092xf32, #tpu.memory_space<vmem>>, vector<4x64xf32>
    tpu.vector_store %arg11[%c0_48, %c482], %71 {strides = array<i32>} : memref<4x1092xf32, #tpu.memory_space<vmem>>, vector<4x64xf32>,
    %c32_49 = arith.constant 32 : index
    %c0_50 = arith.constant 0 : index
    %73 = vector.load %arg12[%c32_49, %c0_50] : memref<64x64xf32, #tpu.memory_space<vmem>>, vector<4x64xf32>
    %c0_51 = arith.constant 0 : index
    %c546 = arith.constant 546 : index
    %74 = vector.load %arg11[%c0_51, %c546] : memref<4x1092xf32, #tpu.memory_space<vmem>>, vector<4x64xf32>
    tpu.vector_store %arg11[%c0_51, %c546], %73 {strides = array<i32>} : memref<4x1092xf32, #tpu.memory_space<vmem>>, vector<4x64xf32>,
    %c36 = arith.constant 36 : index
    %c0_52 = arith.constant 0 : index
    %75 = vector.load %arg12[%c36, %c0_52] : memref<64x64xf32, #tpu.memory_space<vmem>>, vector<4x64xf32>
    %c0_53 = arith.constant 0 : index
    %c610 = arith.constant 610 : index
    %76 = vector.load %arg11[%c0_53, %c610] : memref<4x1092xf32, #tpu.memory_space<vmem>>, vector<4x64xf32>
    tpu.vector_store %arg11[%c0_53, %c610], %75 {strides = array<i32>} : memref<4x1092xf32, #tpu.memory_space<vmem>>, vector<4x64xf32>,
    %c40 = arith.constant 40 : index
    %c0_54 = arith.constant 0 : index
    %77 = vector.load %arg12[%c40, %c0_54] : memref<64x64xf32, #tpu.memory_space<vmem>>, vector<4x64xf32>
    %c0_55 = arith.constant 0 : index
    %c674 = arith.constant 674 : index
    %78 = vector.load %arg11[%c0_55, %c674] : memref<4x1092xf32, #tpu.memory_space<vmem>>, vector<4x64xf32>
    tpu.vector_store %arg11[%c0_55, %c674], %77 {strides = array<i32>} : memref<4x1092xf32, #tpu.memory_space<vmem>>, vector<4x64xf32>,
    %c44 = arith.constant 44 : index
    %c0_56 = arith.constant 0 : index
    %79 = vector.load %arg12[%c44, %c0_56] : memref<64x64xf32, #tpu.memory_space<vmem>>, vector<4x64xf32>
    %c0_57 = arith.constant 0 : index
    %c738 = arith.constant 738 : index
    %80 = vector.load %arg11[%c0_57, %c738] : memref<4x1092xf32, #tpu.memory_space<vmem>>, vector<4x64xf32>
    tpu.vector_store %arg11[%c0_57, %c738], %79 {strides = array<i32>} : memref<4x1092xf32, #tpu.memory_space<vmem>>, vector<4x64xf32>,
    %c48_58 = arith.constant 48 : index
    %c0_59 = arith.constant 0 : index
    %81 = vector.load %arg12[%c48_58, %c0_59] : memref<64x64xf32, #tpu.memory_space<vmem>>, vector<4x64xf32>
    %c0_60 = arith.constant 0 : index
    %c802 = arith.constant 802 : index
    %82 = vector.load %arg11[%c0_60, %c802] : memref<4x1092xf32, #tpu.memory_space<vmem>>, vector<4x64xf32>
    tpu.vector_store %arg11[%c0_60, %c802], %81 {strides = array<i32>} : memref<4x1092xf32, #tpu.memory_space<vmem>>, vector<4x64xf32>,
    %c52 = arith.constant 52 : index
    %c0_61 = arith.constant 0 : index
    %83 = vector.load %arg12[%c52, %c0_61] : memref<64x64xf32, #tpu.memory_space<vmem>>, vector<4x64xf32>
    %c0_62 = arith.constant 0 : index
    %c866 = arith.constant 866 : index
    %84 = vector.load %arg11[%c0_62, %c866] : memref<4x1092xf32, #tpu.memory_space<vmem>>, vector<4x64xf32>
    tpu.vector_store %arg11[%c0_62, %c866], %83 {strides = array<i32>} : memref<4x1092xf32, #tpu.memory_space<vmem>>, vector<4x64xf32>,
    %c56 = arith.constant 56 : index
    %c0_63 = arith.constant 0 : index
    %85 = vector.load %arg12[%c56, %c0_63] : memref<64x64xf32, #tpu.memory_space<vmem>>, vector<4x64xf32>
    %c0_64 = arith.constant 0 : index
    %c930 = arith.constant 930 : index
    %86 = vector.load %arg11[%c0_64, %c930] : memref<4x1092xf32, #tpu.memory_space<vmem>>, vector<4x64xf32>
    tpu.vector_store %arg11[%c0_64, %c930], %85 {strides = array<i32>} : memref<4x1092xf32, #tpu.memory_space<vmem>>, vector<4x64xf32>,
    %c60 = arith.constant 60 : index
    %c0_65 = arith.constant 0 : index
    %87 = vector.load %arg12[%c60, %c0_65] : memref<64x64xf32, #tpu.memory_space<vmem>>, vector<4x64xf32>
    %c0_66 = arith.constant 0 : index
    %c994 = arith.constant 994 : index
    %88 = vector.load %arg11[%c0_66, %c994] : memref<4x1092xf32, #tpu.memory_space<vmem>>, vector<4x64xf32>
    tpu.vector_store %arg11[%c0_66, %c994], %87 {strides = array<i32>} : memref<4x1092xf32, #tpu.memory_space<vmem>>, vector<4x64xf32>,
    %c0_67 = arith.constant 0 : index
    %c66 = arith.constant 66 : index
    %89 = vector.load %arg11[%c0_67, %c66] : memref<4x1092xf32, #tpu.memory_space<vmem>>, vector<4x32xf32>
    %c0_68 = arith.constant 0 : index
    %c2 = arith.constant 2 : index
    %90 = vector.load %arg11[%c0_68, %c2] : memref<4x1092xf32, #tpu.memory_space<vmem>>, vector<4x32xf32>
    tpu.vector_store %arg11[%c0_68, %c2], %89 {strides = array<i32>} : memref<4x1092xf32, #tpu.memory_space<vmem>>, vector<4x32xf32>,
    %c0_69 = arith.constant 0 : index
    %c994_70 = arith.constant 994 : index
    %91 = vector.load %arg11[%c0_69, %c994_70] : memref<4x1092xf32, #tpu.memory_space<vmem>>, vector<4x32xf32>
    %c0_71 = arith.constant 0 : index
    %c1058 = arith.constant 1058 : index
    %92 = vector.load %arg11[%c0_71, %c1058] : memref<4x1092xf32, #tpu.memory_space<vmem>>, vector<4x32xf32>
    tpu.vector_store %arg11[%c0_71, %c1058], %91 {strides = array<i32>} : memref<4x1092xf32, #tpu.memory_space<vmem>>, vector<4x32xf32>,
    %cst_72 = arith.constant 0.000000e+00 : f32
    %93 = vector.broadcast %cst_72 : f32 to vector<4x1024xf32>
    %c0_73 = arith.constant 0 : index
    %c1 = arith.constant 1 : index
    %94 = vector.load %arg11[%c0_73, %c1] : memref<4x1092xf32, #tpu.memory_space<vmem>>, vector<4x1024xf32>
    %c0_74 = arith.constant 0 : index
    %c3 = arith.constant 3 : index
    %95 = vector.load %arg11[%c0_74, %c3] : memref<4x1092xf32, #tpu.memory_space<vmem>>, vector<4x1024xf32>
    %c0_i32_75 = arith.constant 0 : i32
    %96 = vector.broadcast %c0_i32_75 : i32 to vector<4x1024xi32>
    %97 = arith.cmpi eq, %2, %96 : vector<4x1024xi32>
    %98 = arith.select %97, %95, %94 : vector<4x1024xi1>, vector<4x1024xf32>
    %c0_76 = arith.constant 0 : index
    %c0_77 = arith.constant 0 : index
    %c0_78 = arith.constant 0 : index
    %99 = vector.load %arg4[%c0_76, %c0_77, %c0_78] : memref<9x4x4xf32, #tpu.memory_space<vmem>>, vector<1x4x4xf32>
    %100 = vector.shape_cast %99 : vector<1x4x4xf32> to vector<4x4xf32>
    %cst_79 = arith.constant dense<0.000000e+00> : vector<4x1024xf32>
    %101 = tpu.matmul %100, %98, %cst_79 {dimension_numbers = #tpu.dot_dimension_numbers<[1], [0], [0], [1], [0, 0, 1, 1], [], []>} : vector<4x4xf32>, vector<4x1024xf32>, vector<4x1024xf32> -> vector<4x1024xf32>
    %102 = arith.addf %93, %101 : vector<4x1024xf32>
    %c0_80 = arith.constant 0 : index
    %c2_81 = arith.constant 2 : index
    %103 = vector.load %arg11[%c0_80, %c2_81] : memref<4x1092xf32, #tpu.memory_space<vmem>>, vector<4x1024xf32>
    %c1_82 = arith.constant 1 : index
    %c0_83 = arith.constant 0 : index
    %c0_84 = arith.constant 0 : index
    %104 = vector.load %arg4[%c1_82, %c0_83, %c0_84] : memref<9x4x4xf32, #tpu.memory_space<vmem>>, vector<1x4x4xf32>
    %105 = vector.shape_cast %104 : vector<1x4x4xf32> to vector<4x4xf32>
    %cst_85 = arith.constant dense<0.000000e+00> : vector<4x1024xf32>
    %106 = tpu.matmul %105, %103, %cst_85 {dimension_numbers = #tpu.dot_dimension_numbers<[1], [0], [0], [1], [0, 0, 1, 1], [], []>} : vector<4x4xf32>, vector<4x1024xf32>, vector<4x1024xf32> -> vector<4x1024xf32>
    %107 = arith.addf %102, %106 : vector<4x1024xf32>
    %c0_86 = arith.constant 0 : index
    %c3_87 = arith.constant 3 : index
    %108 = vector.load %arg11[%c0_86, %c3_87] : memref<4x1092xf32, #tpu.memory_space<vmem>>, vector<4x1024xf32>
    %c0_88 = arith.constant 0 : index
    %c1_89 = arith.constant 1 : index
    %109 = vector.load %arg11[%c0_88, %c1_89] : memref<4x1092xf32, #tpu.memory_space<vmem>>, vector<4x1024xf32>
    %c31_i32_90 = arith.constant 31 : i32
    %110 = vector.broadcast %c31_i32_90 : i32 to vector<4x1024xi32>
    %111 = arith.cmpi eq, %2, %110 : vector<4x1024xi32>
    %112 = arith.select %111, %109, %108 : vector<4x1024xi1>, vector<4x1024xf32>
    %c2_91 = arith.constant 2 : index
    %c0_92 = arith.constant 0 : index
    %c0_93 = arith.constant 0 : index
    %113 = vector.load %arg4[%c2_91, %c0_92, %c0_93] : memref<9x4x4xf32, #tpu.memory_space<vmem>>, vector<1x4x4xf32>
    %114 = vector.shape_cast %113 : vector<1x4x4xf32> to vector<4x4xf32>
    %cst_94 = arith.constant dense<0.000000e+00> : vector<4x1024xf32>
    %115 = tpu.matmul %114, %112, %cst_94 {dimension_numbers = #tpu.dot_dimension_numbers<[1], [0], [0], [1], [0, 0, 1, 1], [], []>} : vector<4x4xf32>, vector<4x1024xf32>, vector<4x1024xf32> -> vector<4x1024xf32>
    %116 = arith.addf %107, %115 : vector<4x1024xf32>
    %c0_95 = arith.constant 0 : index
    %c33 = arith.constant 33 : index
    %117 = vector.load %arg11[%c0_95, %c33] : memref<4x1092xf32, #tpu.memory_space<vmem>>, vector<4x1024xf32>
    %c0_96 = arith.constant 0 : index
    %c35 = arith.constant 35 : index
    %118 = vector.load %arg11[%c0_96, %c35] : memref<4x1092xf32, #tpu.memory_space<vmem>>, vector<4x1024xf32>
    %c0_i32_97 = arith.constant 0 : i32
    %119 = vector.broadcast %c0_i32_97 : i32 to vector<4x1024xi32>
    %120 = arith.cmpi eq, %2, %119 : vector<4x1024xi32>
    %121 = arith.select %120, %118, %117 : vector<4x1024xi1>, vector<4x1024xf32>
    %c3_98 = arith.constant 3 : index
    %c0_99 = arith.constant 0 : index
    %c0_100 = arith.constant 0 : index
    %122 = vector.load %arg4[%c3_98, %c0_99, %c0_100] : memref<9x4x4xf32, #tpu.memory_space<vmem>>, vector<1x4x4xf32>
    %123 = vector.shape_cast %122 : vector<1x4x4xf32> to vector<4x4xf32>
    %cst_101 = arith.constant dense<0.000000e+00> : vector<4x1024xf32>
    %124 = tpu.matmul %123, %121, %cst_101 {dimension_numbers = #tpu.dot_dimension_numbers<[1], [0], [0], [1], [0, 0, 1, 1], [], []>} : vector<4x4xf32>, vector<4x1024xf32>, vector<4x1024xf32> -> vector<4x1024xf32>
    %125 = arith.addf %116, %124 : vector<4x1024xf32>
    %c0_102 = arith.constant 0 : index
    %c34_103 = arith.constant 34 : index
    %126 = vector.load %arg11[%c0_102, %c34_103] : memref<4x1092xf32, #tpu.memory_space<vmem>>, vector<4x1024xf32>
    %c4_104 = arith.constant 4 : index
    %c0_105 = arith.constant 0 : index
    %c0_106 = arith.constant 0 : index
    %127 = vector.load %arg4[%c4_104, %c0_105, %c0_106] : memref<9x4x4xf32, #tpu.memory_space<vmem>>, vector<1x4x4xf32>
    %128 = vector.shape_cast %127 : vector<1x4x4xf32> to vector<4x4xf32>
    %cst_107 = arith.constant dense<0.000000e+00> : vector<4x1024xf32>
    %129 = tpu.matmul %128, %126, %cst_107 {dimension_numbers = #tpu.dot_dimension_numbers<[1], [0], [0], [1], [0, 0, 1, 1], [], []>} : vector<4x4xf32>, vector<4x1024xf32>, vector<4x1024xf32> -> vector<4x1024xf32>
    %130 = arith.addf %125, %129 : vector<4x1024xf32>
    %c0_108 = arith.constant 0 : index
    %c35_109 = arith.constant 35 : index
    %131 = vector.load %arg11[%c0_108, %c35_109] : memref<4x1092xf32, #tpu.memory_space<vmem>>, vector<4x1024xf32>
    %c0_110 = arith.constant 0 : index
    %c33_111 = arith.constant 33 : index
    %132 = vector.load %arg11[%c0_110, %c33_111] : memref<4x1092xf32, #tpu.memory_space<vmem>>, vector<4x1024xf32>
    %c31_i32_112 = arith.constant 31 : i32
    %133 = vector.broadcast %c31_i32_112 : i32 to vector<4x1024xi32>
    %134 = arith.cmpi eq, %2, %133 : vector<4x1024xi32>
    %135 = arith.select %134, %132, %131 : vector<4x1024xi1>, vector<4x1024xf32>
    %c5 = arith.constant 5 : index
    %c0_113 = arith.constant 0 : index
    %c0_114 = arith.constant 0 : index
    %136 = vector.load %arg4[%c5, %c0_113, %c0_114] : memref<9x4x4xf32, #tpu.memory_space<vmem>>, vector<1x4x4xf32>
    %137 = vector.shape_cast %136 : vector<1x4x4xf32> to vector<4x4xf32>
    %cst_115 = arith.constant dense<0.000000e+00> : vector<4x1024xf32>
    %138 = tpu.matmul %137, %135, %cst_115 {dimension_numbers = #tpu.dot_dimension_numbers<[1], [0], [0], [1], [0, 0, 1, 1], [], []>} : vector<4x4xf32>, vector<4x1024xf32>, vector<4x1024xf32> -> vector<4x1024xf32>
    %139 = arith.addf %130, %138 : vector<4x1024xf32>
    %c0_116 = arith.constant 0 : index
    %c65 = arith.constant 65 : index
    %140 = vector.load %arg11[%c0_116, %c65] : memref<4x1092xf32, #tpu.memory_space<vmem>>, vector<4x1024xf32>
    %c0_117 = arith.constant 0 : index
    %c67 = arith.constant 67 : index
    %141 = vector.load %arg11[%c0_117, %c67] : memref<4x1092xf32, #tpu.memory_space<vmem>>, vector<4x1024xf32>
    %c0_i32_118 = arith.constant 0 : i32
    %142 = vector.broadcast %c0_i32_118 : i32 to vector<4x1024xi32>
    %143 = arith.cmpi eq, %2, %142 : vector<4x1024xi32>
    %144 = arith.select %143, %141, %140 : vector<4x1024xi1>, vector<4x1024xf32>
    %c6 = arith.constant 6 : index
    %c0_119 = arith.constant 0 : index
    %c0_120 = arith.constant 0 : index
    %145 = vector.load %arg4[%c6, %c0_119, %c0_120] : memref<9x4x4xf32, #tpu.memory_space<vmem>>, vector<1x4x4xf32>
    %146 = vector.shape_cast %145 : vector<1x4x4xf32> to vector<4x4xf32>
    %cst_121 = arith.constant dense<0.000000e+00> : vector<4x1024xf32>
    %147 = tpu.matmul %146, %144, %cst_121 {dimension_numbers = #tpu.dot_dimension_numbers<[1], [0], [0], [1], [0, 0, 1, 1], [], []>} : vector<4x4xf32>, vector<4x1024xf32>, vector<4x1024xf32> -> vector<4x1024xf32>
    %148 = arith.addf %139, %147 : vector<4x1024xf32>
    %c0_122 = arith.constant 0 : index
    %c66_123 = arith.constant 66 : index
    %149 = vector.load %arg11[%c0_122, %c66_123] : memref<4x1092xf32, #tpu.memory_space<vmem>>, vector<4x1024xf32>
    %c7 = arith.constant 7 : index
    %c0_124 = arith.constant 0 : index
    %c0_125 = arith.constant 0 : index
    %150 = vector.load %arg4[%c7, %c0_124, %c0_125] : memref<9x4x4xf32, #tpu.memory_space<vmem>>, vector<1x4x4xf32>
    %151 = vector.shape_cast %150 : vector<1x4x4xf32> to vector<4x4xf32>
    %cst_126 = arith.constant dense<0.000000e+00> : vector<4x1024xf32>
    %152 = tpu.matmul %151, %149, %cst_126 {dimension_numbers = #tpu.dot_dimension_numbers<[1], [0], [0], [1], [0, 0, 1, 1], [], []>} : vector<4x4xf32>, vector<4x1024xf32>, vector<4x1024xf32> -> vector<4x1024xf32>
    %153 = arith.addf %148, %152 : vector<4x1024xf32>
    %c0_127 = arith.constant 0 : index
    %c67_128 = arith.constant 67 : index
    %154 = vector.load %arg11[%c0_127, %c67_128] : memref<4x1092xf32, #tpu.memory_space<vmem>>, vector<4x1024xf32>
    %c0_129 = arith.constant 0 : index
    %c65_130 = arith.constant 65 : index
    %155 = vector.load %arg11[%c0_129, %c65_130] : memref<4x1092xf32, #tpu.memory_space<vmem>>, vector<4x1024xf32>
    %c31_i32_131 = arith.constant 31 : i32
    %156 = vector.broadcast %c31_i32_131 : i32 to vector<4x1024xi32>
    %157 = arith.cmpi eq, %2, %156 : vector<4x1024xi32>
    %158 = arith.select %157, %155, %154 : vector<4x1024xi1>, vector<4x1024xf32>
    %c8_132 = arith.constant 8 : index
    %c0_133 = arith.constant 0 : index
    %c0_134 = arith.constant 0 : index
    %159 = vector.load %arg4[%c8_132, %c0_133, %c0_134] : memref<9x4x4xf32, #tpu.memory_space<vmem>>, vector<1x4x4xf32>
    %160 = vector.shape_cast %159 : vector<1x4x4xf32> to vector<4x4xf32>
    %cst_135 = arith.constant dense<0.000000e+00> : vector<4x1024xf32>
    %161 = tpu.matmul %160, %158, %cst_135 {dimension_numbers = #tpu.dot_dimension_numbers<[1], [0], [0], [1], [0, 0, 1, 1], [], []>} : vector<4x4xf32>, vector<4x1024xf32>, vector<4x1024xf32> -> vector<4x1024xf32>
    %162 = arith.addf %153, %161 : vector<4x1024xf32>
    %c0_136 = arith.constant 0 : index
    %c0_137 = arith.constant 0 : index
    %163 = vector.load %arg5[%c0_136, %c0_137] : memref<4x2xf32, #tpu.memory_space<vmem>>, vector<4x1xf32>
    %164 = vector.broadcast %163 : vector<4x1xf32> to vector<4x1024xf32>
    %165 = arith.mulf %162, %164 : vector<4x1024xf32>
    %c0_138 = arith.constant 0 : index
    %c1_139 = arith.constant 1 : index
    %166 = vector.load %arg5[%c0_138, %c1_139] : memref<4x2xf32, #tpu.memory_space<vmem>>, vector<4x1xf32>
    %167 = vector.broadcast %166 : vector<4x1xf32> to vector<4x1024xf32>
    %168 = arith.addf %165, %167 : vector<4x1024xf32>
    %cst_140 = arith.constant 0.000000e+00 : f32
    %169 = vector.broadcast %cst_140 : f32 to vector<4x1024xf32>
    %170 = arith.maximumf %168, %169 : vector<4x1024xf32>
    %c0_141 = arith.constant 0 : index
    %c34_142 = arith.constant 34 : index
    %171 = vector.load %arg11[%c0_141, %c34_142] : memref<4x1092xf32, #tpu.memory_space<vmem>>, vector<4x1024xf32>
    tpu.vector_store %arg11[%c0_141, %c34_142], %170 {strides = array<i32>} : memref<4x1092xf32, #tpu.memory_space<vmem>>, vector<4x1024xf32>,
    %c0_143 = arith.constant 0 : index
    %c66_144 = arith.constant 66 : index
    %172 = vector.load %arg11[%c0_143, %c66_144] : memref<4x1092xf32, #tpu.memory_space<vmem>>, vector<4x32xf32>
    %c0_145 = arith.constant 0 : index
    %c2_146 = arith.constant 2 : index
    %173 = vector.load %arg11[%c0_145, %c2_146] : memref<4x1092xf32, #tpu.memory_space<vmem>>, vector<4x32xf32>
    tpu.vector_store %arg11[%c0_145, %c2_146], %172 {strides = array<i32>} : memref<4x1092xf32, #tpu.memory_space<vmem>>, vector<4x32xf32>,
    %c0_147 = arith.constant 0 : index
    %c994_148 = arith.constant 994 : index
    %174 = vector.load %arg11[%c0_147, %c994_148] : memref<4x1092xf32, #tpu.memory_space<vmem>>, vector<4x32xf32>
    %c0_149 = arith.constant 0 : index
    %c1058_150 = arith.constant 1058 : index
    %175 = vector.load %arg11[%c0_149, %c1058_150] : memref<4x1092xf32, #tpu.memory_space<vmem>>, vector<4x32xf32>
    tpu.vector_store %arg11[%c0_149, %c1058_150], %174 {strides = array<i32>} : memref<4x1092xf32, #tpu.memory_space<vmem>>, vector<4x32xf32>,
    %cst_151 = arith.constant 0.000000e+00 : f32
    %176 = vector.broadcast %cst_151 : f32 to vector<4x1024xf32>
    %c0_152 = arith.constant 0 : index
    %c1_153 = arith.constant 1 : index
    %177 = vector.load %arg11[%c0_152, %c1_153] : memref<4x1092xf32, #tpu.memory_space<vmem>>, vector<4x1024xf32>
    %c0_154 = arith.constant 0 : index
    %c3_155 = arith.constant 3 : index
    %178 = vector.load %arg11[%c0_154, %c3_155] : memref<4x1092xf32, #tpu.memory_space<vmem>>, vector<4x1024xf32>
    %c0_i32_156 = arith.constant 0 : i32
    %179 = vector.broadcast %c0_i32_156 : i32 to vector<4x1024xi32>
    %180 = arith.cmpi eq, %2, %179 : vector<4x1024xi32>
    %181 = arith.select %180, %178, %177 : vector<4x1024xi1>, vector<4x1024xf32>
    %c0_157 = arith.constant 0 : index
    %c0_158 = arith.constant 0 : index
    %c0_159 = arith.constant 0 : index
    %182 = vector.load %arg6[%c0_157, %c0_158, %c0_159] : memref<9x4x4xf32, #tpu.memory_space<vmem>>, vector<1x4x4xf32>
    %183 = vector.shape_cast %182 : vector<1x4x4xf32> to vector<4x4xf32>
    %cst_160 = arith.constant dense<0.000000e+00> : vector<4x1024xf32>
    %184 = tpu.matmul %183, %181, %cst_160 {dimension_numbers = #tpu.dot_dimension_numbers<[1], [0], [0], [1], [0, 0, 1, 1], [], []>} : vector<4x4xf32>, vector<4x1024xf32>, vector<4x1024xf32> -> vector<4x1024xf32>
    %185 = arith.addf %176, %184 : vector<4x1024xf32>
    %c0_161 = arith.constant 0 : index
    %c2_162 = arith.constant 2 : index
    %186 = vector.load %arg11[%c0_161, %c2_162] : memref<4x1092xf32, #tpu.memory_space<vmem>>, vector<4x1024xf32>
    %c1_163 = arith.constant 1 : index
    %c0_164 = arith.constant 0 : index
    %c0_165 = arith.constant 0 : index
    %187 = vector.load %arg6[%c1_163, %c0_164, %c0_165] : memref<9x4x4xf32, #tpu.memory_space<vmem>>, vector<1x4x4xf32>
    %188 = vector.shape_cast %187 : vector<1x4x4xf32> to vector<4x4xf32>
    %cst_166 = arith.constant dense<0.000000e+00> : vector<4x1024xf32>
    %189 = tpu.matmul %188, %186, %cst_166 {dimension_numbers = #tpu.dot_dimension_numbers<[1], [0], [0], [1], [0, 0, 1, 1], [], []>} : vector<4x4xf32>, vector<4x1024xf32>, vector<4x1024xf32> -> vector<4x1024xf32>
    %190 = arith.addf %185, %189 : vector<4x1024xf32>
    %c0_167 = arith.constant 0 : index
    %c3_168 = arith.constant 3 : index
    %191 = vector.load %arg11[%c0_167, %c3_168] : memref<4x1092xf32, #tpu.memory_space<vmem>>, vector<4x1024xf32>
    %c0_169 = arith.constant 0 : index
    %c1_170 = arith.constant 1 : index
    %192 = vector.load %arg11[%c0_169, %c1_170] : memref<4x1092xf32, #tpu.memory_space<vmem>>, vector<4x1024xf32>
    %c31_i32_171 = arith.constant 31 : i32
    %193 = vector.broadcast %c31_i32_171 : i32 to vector<4x1024xi32>
    %194 = arith.cmpi eq, %2, %193 : vector<4x1024xi32>
    %195 = arith.select %194, %192, %191 : vector<4x1024xi1>, vector<4x1024xf32>
    %c2_172 = arith.constant 2 : index
    %c0_173 = arith.constant 0 : index
    %c0_174 = arith.constant 0 : index
    %196 = vector.load %arg6[%c2_172, %c0_173, %c0_174] : memref<9x4x4xf32, #tpu.memory_space<vmem>>, vector<1x4x4xf32>
    %197 = vector.shape_cast %196 : vector<1x4x4xf32> to vector<4x4xf32>
    %cst_175 = arith.constant dense<0.000000e+00> : vector<4x1024xf32>
    %198 = tpu.matmul %197, %195, %cst_175 {dimension_numbers = #tpu.dot_dimension_numbers<[1], [0], [0], [1], [0, 0, 1, 1], [], []>} : vector<4x4xf32>, vector<4x1024xf32>, vector<4x1024xf32> -> vector<4x1024xf32>
    %199 = arith.addf %190, %198 : vector<4x1024xf32>
    %c0_176 = arith.constant 0 : index
    %c33_177 = arith.constant 33 : index
    %200 = vector.load %arg11[%c0_176, %c33_177] : memref<4x1092xf32, #tpu.memory_space<vmem>>, vector<4x1024xf32>
    %c0_178 = arith.constant 0 : index
    %c35_179 = arith.constant 35 : index
    %201 = vector.load %arg11[%c0_178, %c35_179] : memref<4x1092xf32, #tpu.memory_space<vmem>>, vector<4x1024xf32>
    %c0_i32_180 = arith.constant 0 : i32
    %202 = vector.broadcast %c0_i32_180 : i32 to vector<4x1024xi32>
    %203 = arith.cmpi eq, %2, %202 : vector<4x1024xi32>
    %204 = arith.select %203, %201, %200 : vector<4x1024xi1>, vector<4x1024xf32>
    %c3_181 = arith.constant 3 : index
    %c0_182 = arith.constant 0 : index
    %c0_183 = arith.constant 0 : index
    %205 = vector.load %arg6[%c3_181, %c0_182, %c0_183] : memref<9x4x4xf32, #tpu.memory_space<vmem>>, vector<1x4x4xf32>
    %206 = vector.shape_cast %205 : vector<1x4x4xf32> to vector<4x4xf32>
    %cst_184 = arith.constant dense<0.000000e+00> : vector<4x1024xf32>
    %207 = tpu.matmul %206, %204, %cst_184 {dimension_numbers = #tpu.dot_dimension_numbers<[1], [0], [0], [1], [0, 0, 1, 1], [], []>} : vector<4x4xf32>, vector<4x1024xf32>, vector<4x1024xf32> -> vector<4x1024xf32>
    %208 = arith.addf %199, %207 : vector<4x1024xf32>
    %c0_185 = arith.constant 0 : index
    %c34_186 = arith.constant 34 : index
    %209 = vector.load %arg11[%c0_185, %c34_186] : memref<4x1092xf32, #tpu.memory_space<vmem>>, vector<4x1024xf32>
    %c4_187 = arith.constant 4 : index
    %c0_188 = arith.constant 0 : index
    %c0_189 = arith.constant 0 : index
    %210 = vector.load %arg6[%c4_187, %c0_188, %c0_189] : memref<9x4x4xf32, #tpu.memory_space<vmem>>, vector<1x4x4xf32>
    %211 = vector.shape_cast %210 : vector<1x4x4xf32> to vector<4x4xf32>
    %cst_190 = arith.constant dense<0.000000e+00> : vector<4x1024xf32>
    %212 = tpu.matmul %211, %209, %cst_190 {dimension_numbers = #tpu.dot_dimension_numbers<[1], [0], [0], [1], [0, 0, 1, 1], [], []>} : vector<4x4xf32>, vector<4x1024xf32>, vector<4x1024xf32> -> vector<4x1024xf32>
    %213 = arith.addf %208, %212 : vector<4x1024xf32>
    %c0_191 = arith.constant 0 : index
    %c35_192 = arith.constant 35 : index
    %214 = vector.load %arg11[%c0_191, %c35_192] : memref<4x1092xf32, #tpu.memory_space<vmem>>, vector<4x1024xf32>
    %c0_193 = arith.constant 0 : index
    %c33_194 = arith.constant 33 : index
    %215 = vector.load %arg11[%c0_193, %c33_194] : memref<4x1092xf32, #tpu.memory_space<vmem>>, vector<4x1024xf32>
    %c31_i32_195 = arith.constant 31 : i32
    %216 = vector.broadcast %c31_i32_195 : i32 to vector<4x1024xi32>
    %217 = arith.cmpi eq, %2, %216 : vector<4x1024xi32>
    %218 = arith.select %217, %215, %214 : vector<4x1024xi1>, vector<4x1024xf32>
    %c5_196 = arith.constant 5 : index
    %c0_197 = arith.constant 0 : index
    %c0_198 = arith.constant 0 : index
    %219 = vector.load %arg6[%c5_196, %c0_197, %c0_198] : memref<9x4x4xf32, #tpu.memory_space<vmem>>, vector<1x4x4xf32>
    %220 = vector.shape_cast %219 : vector<1x4x4xf32> to vector<4x4xf32>
    %cst_199 = arith.constant dense<0.000000e+00> : vector<4x1024xf32>
    %221 = tpu.matmul %220, %218, %cst_199 {dimension_numbers = #tpu.dot_dimension_numbers<[1], [0], [0], [1], [0, 0, 1, 1], [], []>} : vector<4x4xf32>, vector<4x1024xf32>, vector<4x1024xf32> -> vector<4x1024xf32>
    %222 = arith.addf %213, %221 : vector<4x1024xf32>
    %c0_200 = arith.constant 0 : index
    %c65_201 = arith.constant 65 : index
    %223 = vector.load %arg11[%c0_200, %c65_201] : memref<4x1092xf32, #tpu.memory_space<vmem>>, vector<4x1024xf32>
    %c0_202 = arith.constant 0 : index
    %c67_203 = arith.constant 67 : index
    %224 = vector.load %arg11[%c0_202, %c67_203] : memref<4x1092xf32, #tpu.memory_space<vmem>>, vector<4x1024xf32>
    %c0_i32_204 = arith.constant 0 : i32
    %225 = vector.broadcast %c0_i32_204 : i32 to vector<4x1024xi32>
    %226 = arith.cmpi eq, %2, %225 : vector<4x1024xi32>
    %227 = arith.select %226, %224, %223 : vector<4x1024xi1>, vector<4x1024xf32>
    %c6_205 = arith.constant 6 : index
    %c0_206 = arith.constant 0 : index
    %c0_207 = arith.constant 0 : index
    %228 = vector.load %arg6[%c6_205, %c0_206, %c0_207] : memref<9x4x4xf32, #tpu.memory_space<vmem>>, vector<1x4x4xf32>
    %229 = vector.shape_cast %228 : vector<1x4x4xf32> to vector<4x4xf32>
    %cst_208 = arith.constant dense<0.000000e+00> : vector<4x1024xf32>
    %230 = tpu.matmul %229, %227, %cst_208 {dimension_numbers = #tpu.dot_dimension_numbers<[1], [0], [0], [1], [0, 0, 1, 1], [], []>} : vector<4x4xf32>, vector<4x1024xf32>, vector<4x1024xf32> -> vector<4x1024xf32>
    %231 = arith.addf %222, %230 : vector<4x1024xf32>
    %c0_209 = arith.constant 0 : index
    %c66_210 = arith.constant 66 : index
    %232 = vector.load %arg11[%c0_209, %c66_210] : memref<4x1092xf32, #tpu.memory_space<vmem>>, vector<4x1024xf32>
    %c7_211 = arith.constant 7 : index
    %c0_212 = arith.constant 0 : index
    %c0_213 = arith.constant 0 : index
    %233 = vector.load %arg6[%c7_211, %c0_212, %c0_213] : memref<9x4x4xf32, #tpu.memory_space<vmem>>, vector<1x4x4xf32>
    %234 = vector.shape_cast %233 : vector<1x4x4xf32> to vector<4x4xf32>
    %cst_214 = arith.constant dense<0.000000e+00> : vector<4x1024xf32>
    %235 = tpu.matmul %234, %232, %cst_214 {dimension_numbers = #tpu.dot_dimension_numbers<[1], [0], [0], [1], [0, 0, 1, 1], [], []>} : vector<4x4xf32>, vector<4x1024xf32>, vector<4x1024xf32> -> vector<4x1024xf32>
    %236 = arith.addf %231, %235 : vector<4x1024xf32>
    %c0_215 = arith.constant 0 : index
    %c67_216 = arith.constant 67 : index
    %237 = vector.load %arg11[%c0_215, %c67_216] : memref<4x1092xf32, #tpu.memory_space<vmem>>, vector<4x1024xf32>
    %c0_217 = arith.constant 0 : index
    %c65_218 = arith.constant 65 : index
    %238 = vector.load %arg11[%c0_217, %c65_218] : memref<4x1092xf32, #tpu.memory_space<vmem>>, vector<4x1024xf32>
    %c31_i32_219 = arith.constant 31 : i32
    %239 = vector.broadcast %c31_i32_219 : i32 to vector<4x1024xi32>
    %240 = arith.cmpi eq, %2, %239 : vector<4x1024xi32>
    %241 = arith.select %240, %238, %237 : vector<4x1024xi1>, vector<4x1024xf32>
    %c8_220 = arith.constant 8 : index
    %c0_221 = arith.constant 0 : index
    %c0_222 = arith.constant 0 : index
    %242 = vector.load %arg6[%c8_220, %c0_221, %c0_222] : memref<9x4x4xf32, #tpu.memory_space<vmem>>, vector<1x4x4xf32>
    %243 = vector.shape_cast %242 : vector<1x4x4xf32> to vector<4x4xf32>
    %cst_223 = arith.constant dense<0.000000e+00> : vector<4x1024xf32>
    %244 = tpu.matmul %243, %241, %cst_223 {dimension_numbers = #tpu.dot_dimension_numbers<[1], [0], [0], [1], [0, 0, 1, 1], [], []>} : vector<4x4xf32>, vector<4x1024xf32>, vector<4x1024xf32> -> vector<4x1024xf32>
    %245 = arith.addf %236, %244 : vector<4x1024xf32>
    %c0_224 = arith.constant 0 : index
    %c0_225 = arith.constant 0 : index
    %246 = vector.load %arg7[%c0_224, %c0_225] : memref<4x2xf32, #tpu.memory_space<vmem>>, vector<4x1xf32>
    %247 = vector.broadcast %246 : vector<4x1xf32> to vector<4x1024xf32>
    %248 = arith.mulf %245, %247 : vector<4x1024xf32>
    %c0_226 = arith.constant 0 : index
    %c1_227 = arith.constant 1 : index
    %249 = vector.load %arg7[%c0_226, %c1_227] : memref<4x2xf32, #tpu.memory_space<vmem>>, vector<4x1xf32>
    %250 = vector.broadcast %249 : vector<4x1xf32> to vector<4x1024xf32>
    %251 = arith.addf %248, %250 : vector<4x1024xf32>
    %cst_228 = arith.constant 0.000000e+00 : f32
    %252 = vector.broadcast %cst_228 : f32 to vector<4x1024xf32>
    %253 = arith.maximumf %251, %252 : vector<4x1024xf32>
    %c0_229 = arith.constant 0 : index
    %c34_230 = arith.constant 34 : index
    %254 = vector.load %arg11[%c0_229, %c34_230] : memref<4x1092xf32, #tpu.memory_space<vmem>>, vector<4x1024xf32>
    tpu.vector_store %arg11[%c0_229, %c34_230], %253 {strides = array<i32>} : memref<4x1092xf32, #tpu.memory_space<vmem>>, vector<4x1024xf32>,
    %c0_231 = arith.constant 0 : index
    %c66_232 = arith.constant 66 : index
    %255 = vector.load %arg11[%c0_231, %c66_232] : memref<4x1092xf32, #tpu.memory_space<vmem>>, vector<4x32xf32>
    %c0_233 = arith.constant 0 : index
    %c2_234 = arith.constant 2 : index
    %256 = vector.load %arg11[%c0_233, %c2_234] : memref<4x1092xf32, #tpu.memory_space<vmem>>, vector<4x32xf32>
    tpu.vector_store %arg11[%c0_233, %c2_234], %255 {strides = array<i32>} : memref<4x1092xf32, #tpu.memory_space<vmem>>, vector<4x32xf32>,
    %c0_235 = arith.constant 0 : index
    %c994_236 = arith.constant 994 : index
    %257 = vector.load %arg11[%c0_235, %c994_236] : memref<4x1092xf32, #tpu.memory_space<vmem>>, vector<4x32xf32>
    %c0_237 = arith.constant 0 : index
    %c1058_238 = arith.constant 1058 : index
    %258 = vector.load %arg11[%c0_237, %c1058_238] : memref<4x1092xf32, #tpu.memory_space<vmem>>, vector<4x32xf32>
    tpu.vector_store %arg11[%c0_237, %c1058_238], %257 {strides = array<i32>} : memref<4x1092xf32, #tpu.memory_space<vmem>>, vector<4x32xf32>,
    %cst_239 = arith.constant 0.000000e+00 : f32
    %259 = vector.broadcast %cst_239 : f32 to vector<8x1024xf32>
    %c0_240 = arith.constant 0 : index
    %c1_241 = arith.constant 1 : index
    %260 = vector.load %arg11[%c0_240, %c1_241] : memref<4x1092xf32, #tpu.memory_space<vmem>>, vector<4x1024xf32>
    %c0_242 = arith.constant 0 : index
    %c3_243 = arith.constant 3 : index
    %261 = vector.load %arg11[%c0_242, %c3_243] : memref<4x1092xf32, #tpu.memory_space<vmem>>, vector<4x1024xf32>
    %c0_i32_244 = arith.constant 0 : i32
    %262 = vector.broadcast %c0_i32_244 : i32 to vector<4x1024xi32>
    %263 = arith.cmpi eq, %2, %262 : vector<4x1024xi32>
    %264 = arith.select %263, %261, %260 : vector<4x1024xi1>, vector<4x1024xf32>
    %c0_245 = arith.constant 0 : index
    %c0_246 = arith.constant 0 : index
    %c0_247 = arith.constant 0 : index
    %265 = vector.load %arg8[%c0_245, %c0_246, %c0_247] : memref<9x8x4xf32, #tpu.memory_space<vmem>>, vector<1x8x4xf32>
    %266 = vector.shape_cast %265 : vector<1x8x4xf32> to vector<8x4xf32>
    %cst_248 = arith.constant dense<0.000000e+00> : vector<8x1024xf32>
    %267 = tpu.matmul %266, %264, %cst_248 {dimension_numbers = #tpu.dot_dimension_numbers<[1], [0], [0], [1], [0, 0, 1, 1], [], []>} : vector<8x4xf32>, vector<4x1024xf32>, vector<8x1024xf32> -> vector<8x1024xf32>
    %268 = arith.addf %259, %267 : vector<8x1024xf32>
    %c0_249 = arith.constant 0 : index
    %c2_250 = arith.constant 2 : index
    %269 = vector.load %arg11[%c0_249, %c2_250] : memref<4x1092xf32, #tpu.memory_space<vmem>>, vector<4x1024xf32>
    %c1_251 = arith.constant 1 : index
    %c0_252 = arith.constant 0 : index
    %c0_253 = arith.constant 0 : index
    %270 = vector.load %arg8[%c1_251, %c0_252, %c0_253] : memref<9x8x4xf32, #tpu.memory_space<vmem>>, vector<1x8x4xf32>
    %271 = vector.shape_cast %270 : vector<1x8x4xf32> to vector<8x4xf32>
    %cst_254 = arith.constant dense<0.000000e+00> : vector<8x1024xf32>
    %272 = tpu.matmul %271, %269, %cst_254 {dimension_numbers = #tpu.dot_dimension_numbers<[1], [0], [0], [1], [0, 0, 1, 1], [], []>} : vector<8x4xf32>, vector<4x1024xf32>, vector<8x1024xf32> -> vector<8x1024xf32>
    %273 = arith.addf %268, %272 : vector<8x1024xf32>
    %c0_255 = arith.constant 0 : index
    %c3_256 = arith.constant 3 : index
    %274 = vector.load %arg11[%c0_255, %c3_256] : memref<4x1092xf32, #tpu.memory_space<vmem>>, vector<4x1024xf32>
    %c0_257 = arith.constant 0 : index
    %c1_258 = arith.constant 1 : index
    %275 = vector.load %arg11[%c0_257, %c1_258] : memref<4x1092xf32, #tpu.memory_space<vmem>>, vector<4x1024xf32>
    %c31_i32_259 = arith.constant 31 : i32
    %276 = vector.broadcast %c31_i32_259 : i32 to vector<4x1024xi32>
    %277 = arith.cmpi eq, %2, %276 : vector<4x1024xi32>
    %278 = arith.select %277, %275, %274 : vector<4x1024xi1>, vector<4x1024xf32>
    %c2_260 = arith.constant 2 : index
    %c0_261 = arith.constant 0 : index
    %c0_262 = arith.constant 0 : index
    %279 = vector.load %arg8[%c2_260, %c0_261, %c0_262] : memref<9x8x4xf32, #tpu.memory_space<vmem>>, vector<1x8x4xf32>
    %280 = vector.shape_cast %279 : vector<1x8x4xf32> to vector<8x4xf32>
    %cst_263 = arith.constant dense<0.000000e+00> : vector<8x1024xf32>
    %281 = tpu.matmul %280, %278, %cst_263 {dimension_numbers = #tpu.dot_dimension_numbers<[1], [0], [0], [1], [0, 0, 1, 1], [], []>} : vector<8x4xf32>, vector<4x1024xf32>, vector<8x1024xf32> -> vector<8x1024xf32>
    %282 = arith.addf %273, %281 : vector<8x1024xf32>
    %c0_264 = arith.constant 0 : index
    %c33_265 = arith.constant 33 : index
    %283 = vector.load %arg11[%c0_264, %c33_265] : memref<4x1092xf32, #tpu.memory_space<vmem>>, vector<4x1024xf32>
    %c0_266 = arith.constant 0 : index
    %c35_267 = arith.constant 35 : index
    %284 = vector.load %arg11[%c0_266, %c35_267] : memref<4x1092xf32, #tpu.memory_space<vmem>>, vector<4x1024xf32>
    %c0_i32_268 = arith.constant 0 : i32
    %285 = vector.broadcast %c0_i32_268 : i32 to vector<4x1024xi32>
    %286 = arith.cmpi eq, %2, %285 : vector<4x1024xi32>
    %287 = arith.select %286, %284, %283 : vector<4x1024xi1>, vector<4x1024xf32>
    %c3_269 = arith.constant 3 : index
    %c0_270 = arith.constant 0 : index
    %c0_271 = arith.constant 0 : index
    %288 = vector.load %arg8[%c3_269, %c0_270, %c0_271] : memref<9x8x4xf32, #tpu.memory_space<vmem>>, vector<1x8x4xf32>
    %289 = vector.shape_cast %288 : vector<1x8x4xf32> to vector<8x4xf32>
    %cst_272 = arith.constant dense<0.000000e+00> : vector<8x1024xf32>
    %290 = tpu.matmul %289, %287, %cst_272 {dimension_numbers = #tpu.dot_dimension_numbers<[1], [0], [0], [1], [0, 0, 1, 1], [], []>} : vector<8x4xf32>, vector<4x1024xf32>, vector<8x1024xf32> -> vector<8x1024xf32>
    %291 = arith.addf %282, %290 : vector<8x1024xf32>
    %c0_273 = arith.constant 0 : index
    %c34_274 = arith.constant 34 : index
    %292 = vector.load %arg11[%c0_273, %c34_274] : memref<4x1092xf32, #tpu.memory_space<vmem>>, vector<4x1024xf32>
    %c4_275 = arith.constant 4 : index
    %c0_276 = arith.constant 0 : index
    %c0_277 = arith.constant 0 : index
    %293 = vector.load %arg8[%c4_275, %c0_276, %c0_277] : memref<9x8x4xf32, #tpu.memory_space<vmem>>, vector<1x8x4xf32>
    %294 = vector.shape_cast %293 : vector<1x8x4xf32> to vector<8x4xf32>
    %cst_278 = arith.constant dense<0.000000e+00> : vector<8x1024xf32>
    %295 = tpu.matmul %294, %292, %cst_278 {dimension_numbers = #tpu.dot_dimension_numbers<[1], [0], [0], [1], [0, 0, 1, 1], [], []>} : vector<8x4xf32>, vector<4x1024xf32>, vector<8x1024xf32> -> vector<8x1024xf32>
    %296 = arith.addf %291, %295 : vector<8x1024xf32>
    %c0_279 = arith.constant 0 : index
    %c35_280 = arith.constant 35 : index
    %297 = vector.load %arg11[%c0_279, %c35_280] : memref<4x1092xf32, #tpu.memory_space<vmem>>, vector<4x1024xf32>
    %c0_281 = arith.constant 0 : index
    %c33_282 = arith.constant 33 : index
    %298 = vector.load %arg11[%c0_281, %c33_282] : memref<4x1092xf32, #tpu.memory_space<vmem>>, vector<4x1024xf32>
    %c31_i32_283 = arith.constant 31 : i32
    %299 = vector.broadcast %c31_i32_283 : i32 to vector<4x1024xi32>
    %300 = arith.cmpi eq, %2, %299 : vector<4x1024xi32>
    %301 = arith.select %300, %298, %297 : vector<4x1024xi1>, vector<4x1024xf32>
    %c5_284 = arith.constant 5 : index
    %c0_285 = arith.constant 0 : index
    %c0_286 = arith.constant 0 : index
    %302 = vector.load %arg8[%c5_284, %c0_285, %c0_286] : memref<9x8x4xf32, #tpu.memory_space<vmem>>, vector<1x8x4xf32>
    %303 = vector.shape_cast %302 : vector<1x8x4xf32> to vector<8x4xf32>
    %cst_287 = arith.constant dense<0.000000e+00> : vector<8x1024xf32>
    %304 = tpu.matmul %303, %301, %cst_287 {dimension_numbers = #tpu.dot_dimension_numbers<[1], [0], [0], [1], [0, 0, 1, 1], [], []>} : vector<8x4xf32>, vector<4x1024xf32>, vector<8x1024xf32> -> vector<8x1024xf32>
    %305 = arith.addf %296, %304 : vector<8x1024xf32>
    %c0_288 = arith.constant 0 : index
    %c65_289 = arith.constant 65 : index
    %306 = vector.load %arg11[%c0_288, %c65_289] : memref<4x1092xf32, #tpu.memory_space<vmem>>, vector<4x1024xf32>
    %c0_290 = arith.constant 0 : index
    %c67_291 = arith.constant 67 : index
    %307 = vector.load %arg11[%c0_290, %c67_291] : memref<4x1092xf32, #tpu.memory_space<vmem>>, vector<4x1024xf32>
    %c0_i32_292 = arith.constant 0 : i32
    %308 = vector.broadcast %c0_i32_292 : i32 to vector<4x1024xi32>
    %309 = arith.cmpi eq, %2, %308 : vector<4x1024xi32>
    %310 = arith.select %309, %307, %306 : vector<4x1024xi1>, vector<4x1024xf32>
    %c6_293 = arith.constant 6 : index
    %c0_294 = arith.constant 0 : index
    %c0_295 = arith.constant 0 : index
    %311 = vector.load %arg8[%c6_293, %c0_294, %c0_295] : memref<9x8x4xf32, #tpu.memory_space<vmem>>, vector<1x8x4xf32>
    %312 = vector.shape_cast %311 : vector<1x8x4xf32> to vector<8x4xf32>
    %cst_296 = arith.constant dense<0.000000e+00> : vector<8x1024xf32>
    %313 = tpu.matmul %312, %310, %cst_296 {dimension_numbers = #tpu.dot_dimension_numbers<[1], [0], [0], [1], [0, 0, 1, 1], [], []>} : vector<8x4xf32>, vector<4x1024xf32>, vector<8x1024xf32> -> vector<8x1024xf32>
    %314 = arith.addf %305, %313 : vector<8x1024xf32>
    %c0_297 = arith.constant 0 : index
    %c66_298 = arith.constant 66 : index
    %315 = vector.load %arg11[%c0_297, %c66_298] : memref<4x1092xf32, #tpu.memory_space<vmem>>, vector<4x1024xf32>
    %c7_299 = arith.constant 7 : index
    %c0_300 = arith.constant 0 : index
    %c0_301 = arith.constant 0 : index
    %316 = vector.load %arg8[%c7_299, %c0_300, %c0_301] : memref<9x8x4xf32, #tpu.memory_space<vmem>>, vector<1x8x4xf32>
    %317 = vector.shape_cast %316 : vector<1x8x4xf32> to vector<8x4xf32>
    %cst_302 = arith.constant dense<0.000000e+00> : vector<8x1024xf32>
    %318 = tpu.matmul %317, %315, %cst_302 {dimension_numbers = #tpu.dot_dimension_numbers<[1], [0], [0], [1], [0, 0, 1, 1], [], []>} : vector<8x4xf32>, vector<4x1024xf32>, vector<8x1024xf32> -> vector<8x1024xf32>
    %319 = arith.addf %314, %318 : vector<8x1024xf32>
    %c0_303 = arith.constant 0 : index
    %c67_304 = arith.constant 67 : index
    %320 = vector.load %arg11[%c0_303, %c67_304] : memref<4x1092xf32, #tpu.memory_space<vmem>>, vector<4x1024xf32>
    %c0_305 = arith.constant 0 : index
    %c65_306 = arith.constant 65 : index
    %321 = vector.load %arg11[%c0_305, %c65_306] : memref<4x1092xf32, #tpu.memory_space<vmem>>, vector<4x1024xf32>
    %c31_i32_307 = arith.constant 31 : i32
    %322 = vector.broadcast %c31_i32_307 : i32 to vector<4x1024xi32>
    %323 = arith.cmpi eq, %2, %322 : vector<4x1024xi32>
    %324 = arith.select %323, %321, %320 : vector<4x1024xi1>, vector<4x1024xf32>
    %c8_308 = arith.constant 8 : index
    %c0_309 = arith.constant 0 : index
    %c0_310 = arith.constant 0 : index
    %325 = vector.load %arg8[%c8_308, %c0_309, %c0_310] : memref<9x8x4xf32, #tpu.memory_space<vmem>>, vector<1x8x4xf32>
    %326 = vector.shape_cast %325 : vector<1x8x4xf32> to vector<8x4xf32>
    %cst_311 = arith.constant dense<0.000000e+00> : vector<8x1024xf32>
    %327 = tpu.matmul %326, %324, %cst_311 {dimension_numbers = #tpu.dot_dimension_numbers<[1], [0], [0], [1], [0, 0, 1, 1], [], []>} : vector<8x4xf32>, vector<4x1024xf32>, vector<8x1024xf32> -> vector<8x1024xf32>
    %328 = arith.addf %319, %327 : vector<8x1024xf32>
    %c0_312 = arith.constant 0 : index
    %c0_313 = arith.constant 0 : index
    %329 = vector.load %arg9[%c0_312, %c0_313] : memref<8x2xf32, #tpu.memory_space<vmem>>, vector<8x1xf32>
    %330 = vector.broadcast %329 : vector<8x1xf32> to vector<8x1024xf32>
    %331 = arith.mulf %328, %330 : vector<8x1024xf32>
    %c0_314 = arith.constant 0 : index
    %c1_315 = arith.constant 1 : index
    %332 = vector.load %arg9[%c0_314, %c1_315] : memref<8x2xf32, #tpu.memory_space<vmem>>, vector<8x1xf32>
    %333 = vector.broadcast %332 : vector<8x1xf32> to vector<8x1024xf32>
    %334 = arith.addf %331, %333 : vector<8x1024xf32>
    %cst_316 = arith.constant 0.000000e+00 : f32
    %335 = vector.broadcast %cst_316 : f32 to vector<8x1024xf32>
    %336 = arith.maximumf %334, %335 : vector<8x1024xf32>
    %c0_317 = arith.constant 0 : index
    %c0_318 = arith.constant 0 : index
    %c0_319 = arith.constant 0 : index
    %337 = vector.load %arg10[%c0_317, %c0_318, %c0_319] : memref<1x8x1024xf32, #tpu.memory_space<vmem>>, vector<1x8x1024xf32>
    %338 = vector.shape_cast %337 : vector<1x8x1024xf32> to vector<8x1024xf32>
    %339 = vector.shape_cast %336 : vector<8x1024xf32> to vector<1x8x1024xf32>
    tpu.vector_store %arg10[%c0_317, %c0_318, %c0_319], %339 {strides = array<i32>} : memref<1x8x1024xf32, #tpu.memory_space<vmem>>, vector<1x8x1024xf32>,
    return
  }
  func.func @transform_0(%arg0: i32) -> (i32, i32, i32) {
    %c0_i32 = arith.constant 0 : i32
    %c0_i32_0 = arith.constant 0 : i32
    %c0_i32_1 = arith.constant 0 : i32
    return %arg0, %c0_i32, %c0_i32_0 : i32, i32, i32
  }
  func.func @transform_1(%arg0: i32) -> (i32, i32, i32) {
    %c0_i32 = arith.constant 0 : i32
    %c0_i32_0 = arith.constant 0 : i32
    %c0_i32_1 = arith.constant 0 : i32
    return %arg0, %c0_i32, %c0_i32_0 : i32, i32, i32
  }
  func.func @transform_2(%arg0: i32) -> (i32, i32) {
    %c0_i32 = arith.constant 0 : i32
    %c0_i32_0 = arith.constant 0 : i32
    %c0_i32_1 = arith.constant 0 : i32
    return %c0_i32, %c0_i32_0 : i32, i32
  }
  func.func @transform_3(%arg0: i32) -> (i32, i32, i32) {
    %c0_i32 = arith.constant 0 : i32
    %c0_i32_0 = arith.constant 0 : i32
    %c0_i32_1 = arith.constant 0 : i32
    %c0_i32_2 = arith.constant 0 : i32
    return %c0_i32, %c0_i32_0, %c0_i32_1 : i32, i32, i32
  }
  func.func @transform_4(%arg0: i32) -> (i32, i32) {
    %c0_i32 = arith.constant 0 : i32
    %c0_i32_0 = arith.constant 0 : i32
    %c0_i32_1 = arith.constant 0 : i32
    return %c0_i32, %c0_i32_0 : i32, i32
  }
  func.func @transform_5(%arg0: i32) -> (i32, i32, i32) {
    %c0_i32 = arith.constant 0 : i32
    %c0_i32_0 = arith.constant 0 : i32
    %c0_i32_1 = arith.constant 0 : i32
    %c0_i32_2 = arith.constant 0 : i32
    return %c0_i32, %c0_i32_0, %c0_i32_1 : i32, i32, i32
  }
  func.func @transform_6(%arg0: i32) -> (i32, i32) {
    %c0_i32 = arith.constant 0 : i32
    %c0_i32_0 = arith.constant 0 : i32
    %c0_i32_1 = arith.constant 0 : i32
    return %c0_i32, %c0_i32_0 : i32, i32
  }
  func.func @transform_7(%arg0: i32) -> (i32, i32, i32) {
    %c0_i32 = arith.constant 0 : i32
    %c0_i32_0 = arith.constant 0 : i32
    %c0_i32_1 = arith.constant 0 : i32
    %c0_i32_2 = arith.constant 0 : i32
    return %c0_i32, %c0_i32_0, %c0_i32_1 : i32, i32, i32
  }
  func.func @transform_8(%arg0: i32) -> (i32, i32) {
    %c0_i32 = arith.constant 0 : i32
    %c0_i32_0 = arith.constant 0 : i32
    %c0_i32_1 = arith.constant 0 : i32
    return %c0_i32, %c0_i32_0 : i32, i32
  }
  func.func @transform_9(%arg0: i32) -> (i32, i32, i32) {
    %c0_i32 = arith.constant 0 : i32
    %c0_i32_0 = arith.constant 0 : i32
    %c0_i32_1 = arith.constant 0 : i32
    return %arg0, %c0_i32, %c0_i32_0 : i32, i32, i32
  }
}

</mosaic_0001>

<bundles_post_ra>
// kernel: upconv3_forward.1
= control target key start
LH: loop header
LB: loop body
LE: loop exit
PB: predicated region body
PF: predicated region fallthrough
CT: control target
= control target key end

     0   :  { %s11864_s30 = smov 0   ;;  %s15193_s0 = inlined_call_operand.vmem [shape: f32[2,64,16], index: 0, kind: input, shape index: {}]   ;;  %s15194_s1 = inlined_call_operand.vmem [shape: s32[2,64,16], index: 1, kind: input, shape index: {}]   ;;  %s15195_s2 = inlined_call_operand.vmem [shape: f32[64,64], index: 2, kind: input, shape index: {}]   ;;  %s15196_s3 = inlined_call_operand.vmem [shape: f32[9,4,4], index: 3, kind: input, shape index: {}]   ;;  %s15197_s4 = inlined_call_operand.vmem [shape: f32[4,2], index: 4, kind: input, shape index: {}]   ;;  %s15198_s5 = inlined_call_operand.vmem [shape: f32[9,4,4], index: 5, kind: input, shape index: {}]   ;;  %s15199_s6 = inlined_call_operand.vmem [shape: f32[4,2], index: 6, kind: input, shape index: {}]   ;;  %s15200_s7 = inlined_call_operand.vmem [shape: f32[9,8,4], index: 7, kind: input, shape index: {}]   ;;  %s15201_s8 = inlined_call_operand.vmem [shape: f32[8,2], index: 8, kind: input, shape index: {}]   ;;  %s15202_s9 = inlined_call_operand.vmem [shape: f32[2,8,1024], index: 9, kind: output, shape index: {}]  }
   0x1 LB: > { %s11258_s10 = sadd.s32 4294967295, %s11797_s30   ;;  %p11262_p0 = scmp.ge.s32.totalorder %s11797_s30, 1  ;;  %s11797_s30 = sphi %s11864_s30, %s19_s30  }
   0x2   : > { %p297_p1 = scmp.lt.s32.totalorder %s11797_s30, 3 }
   0x4   : > { %p298_p2 = pnand %p11262_p0, %p297_p1 }
   0x6   : > { %301 = sbr.rel (%p298_p2) target bundleno = 2299 (0x8fb), region = 56 }
   0xb   : > { %v475_v0 = vld [vmem:[%s15195_s2 + $0x18] sm:$0xff]  ;;  %v449_v1 = vld [vmem:[%s15195_s2 + $0x8] sm:$0xff]  ;;  %v474_v2 = vld [vmem:[%s15195_s2 + $0x10] sm:$0xff]  ;;  %p338_p3 = scmp.lt.s32.totalorder %s11258_s10, 1  ;;  %vm476_vm2 = vcmask 130048   ;;  %v15340_v35 = vmov 0 }
   0xc   : > { %11694 = vmatprep.subr.mxu0 %v475_v0  ;;  %11710 = vmatprep.subr.mxu1 %v449_v1  ;;  %v448_v3 = vld [vmem:[%s15195_s2] sm:$0xff]  ;;  %v11887_v4 = vld [vmem:[%s15195_s2 + $0x28] sm:$0xff]  ;;  %v11892_v5 = vld [vmem:[%s15195_s2 + $0x38] sm:$0xff]  ;;  %v15344_v44 = vmov 0  ;;  %v15352_v54 = vmov 0  ;;  %v15358_v62 = vmov 0 }
   0xd   : > { %11695 = vmatpush3.msra.mxu0 %v475_v0  ;;  %11711 = vmatpush3.msra.mxu1 %v449_v1  ;;  %s16003_s10 = smov (!%p338_p3, %s11258_s10), 1  ;;  %v759_v40 = vld [vmem:[%s15195_s2 + $0x20] sm:$0xff]  ;;  %v914_v50 = vld [vmem:[%s15195_s2 + $0x30] sm:$0xff]  ;;  %v15360_v63 = vmov 0  ;;  %v15362_v0 = vmov 0  ;;  %s11800_s14 = smov 98  }
   0xe   : > { %11696 = vmatprep.subr.mxu0 %v474_v2  ;;  %11712 = vmatprep.subr.mxu1 %v448_v3  ;;  %s11894_s23 = sshll.u32 %s16003_s10, 6  ;;  %s11801_s15 = smov 34  }
   0xf   : > { %11697 = vmatpush3.msra.mxu0 %v474_v2  ;;  %11713 = vmatpush3.msra.mxu1 %v448_v3  ;;  %s11900_s26 = scalar_lea.vmem %s15194_s1, %s11894_s23  ;;  %s11909_s29 = scalar_lea.vmem %s15193_s0, %s11894_s23 }
  0x10   : > { %11726 = vmatprep.subr.mxu0 %v11887_v4  ;;  %11742 = vmatprep.subr.mxu1 %v11892_v5  ;;  %v384_v6 = vld [vmem:[%s11900_s26] sm:$0xff]  ;;  %v385_v9 = vld [vmem:[%s11900_s26 + $0x8] sm:$0xff]  ;;  %v386_v10 = vld [vmem:[%s11900_s26 + $0x10] sm:$0xff]  ;;  %s11802_s16 = smov 64   ;;  %s11803_s17 = smov 125  }
  0x11   : > { %v392_v7 = vand.u32 1, %v384_v6  ;;  %v400_v8 = vshra.s32 %v384_v6, 5  ;;  %v401_v11 = vshra.s32 %v385_v9, 5  ;;  %v393_v14 = vand.u32 1, %v385_v9  ;;  %v387_v16 = vld [vmem:[%s11900_s26 + $0x18] sm:$0xff]  ;;  %v11919_v17 = vld [vmem:[%s11909_s29] sm:$0xff] }
  0x12   : > { %v402_v15 = vshra.s32 %v386_v10, 5  ;;  %v11928_v20 = vld [vmem:[%s11900_s26 + $0x20] sm:$0xff]  ;;  %v394_v21 = vand.u32 1, %v386_v10  ;;  %v403_v22 = vshra.s32 %v387_v16, 5  ;;  %v11933_v23 = vld [vmem:[%s11900_s26 + $0x28] sm:$0xff]  ;;  %v395_v28 = vand.u32 1, %v387_v16 }
  0x13   : > { %v408_v12 = vand.u32 1, %v400_v8  ;;  %vm11913_vm0 = vcmp.eq.s32.totalorder %v392_v7, 1  ;;  %v11921_v18 = vand.u32 1, %v401_v11  ;;  %vm11923_vm3 = vcmp.eq.s32.totalorder %v392_v7, 0  ;;  %v11947_v27 = vld [vmem:[%s11909_s29 + $0x8] sm:$0xff]  ;;  %v11951_v30 = vld [vmem:[%s11900_s26 + $0x30] sm:$0xff] }
  0x14   : > { %vm11937_vm6 = vcmp.eq.s32.totalorder %v393_v14, 1  ;;  %v11941_v26 = vand.u32 1, %v402_v15  ;;  %v404_v29 = vshra.s32 %v11928_v20, 5  ;;  %vm11954_vm8 = vcmp.eq.s32.totalorder %v393_v14, 0  ;;  %v11972_v37 = vld [vmem:[%s11900_s26 + $0x38] sm:$0xff]  ;;  %v11989_v42 = vld [vmem:[%s11909_s29 + $0x10] sm:$0xff] }
  0x15   : > { %vm416_vm1 = vcmp.eq.s32.totalorder %v408_v12, 0  ;;  %vm417_vm5 = vcmp.eq.s32.totalorder %v11921_v18, 0  ;;  %v11958_v33 = vand.u32 1, %v403_v22  ;;  %v405_v34 = vshra.s32 %v11933_v23, 5  ;;  %v12029_v52 = vld [vmem:[%s11909_s29 + $0x18] sm:$0xff]  ;;  %v12070_v61 = vld [vmem:[%s11909_s29 + $0x20] sm:$0xff] }
  0x16   : > { %vm458_vm4 = vmand %vm416_vm1, %vm11913_vm0  ;;  %vm735_vm9 = vcmp.eq.s32.totalorder %v408_v12, 1  ;;  %vm11966_vm11 = vcmp.eq.s32.totalorder %v394_v21, 1  ;;  %v396_v36 = vand.u32 1, %v11928_v20  ;;  %vm418_vm12 = vcmp.eq.s32.totalorder %v11941_v26, 0  ;;  %v12129_v10 = vld [vmem:[%s11909_s29 + $0x30] sm:$0xff]  ;;  %v12153_v15 = vld [vmem:[%s11909_s29 + $0x38] sm:$0xff] }
  0x17   : > { %v466_v24 = vsel %vm458_vm4, %v11919_v17, 0.0  ;;  %vm432_vm7 = vmand %vm416_vm1, %vm11923_vm3  ;;  %v15341_v35 = vsel %vm11966_vm11, 4294967295, %v15340_v35  ;;  %v11976_v39 = vand.u32 1, %v404_v29  ;;  %v406_v41 = vshra.s32 %v11951_v30, 5  ;;  %s11804_s18 = smov 126   ;;  %s11805_s19 = smov 127  }
  0x18   : > { %11698 = vmatprep.mubr.msk.f32.mxu0 %vm476_vm2, %v466_v24  ;;  %v440_v31 = vsel %vm432_vm7, %v11919_v17, 0.0  ;;  %vm459_vm10 = vmand %vm417_vm5, %vm11937_vm6  ;;  %vm736_vm13 = vcmp.eq.s32.totalorder %v11921_v18, 1  ;;  %vm11991_vm15 = vcmp.eq.s32.totalorder %v394_v21, 0  ;;  %vm11995_vm1 = vcmp.eq.s32.totalorder %v395_v28, 1  ;;  %s11806_s20 = smov 93   ;;  %s11807_s21 = smov 95  }
  0x19   : > { %11714 = vmatprep.mubr.msk.f32.mxu1 %vm476_vm2, %v440_v31  ;;  %v467_v38 = vsel %vm459_vm10, %v11947_v27, 0.0  ;;  %vm433_vm14 = vmand %vm417_vm5, %vm11954_vm8  ;;  %v15345_v44 = vsel %vm11995_vm1, 4294967295, %v15344_v44  ;;  %v397_v45 = vand.u32 1, %v11933_v23  ;;  %vm419_vm5 = vcmp.eq.s32.totalorder %v11958_v33, 0  ;;  %s11808_s22 = smov 94   ;;  %s11809_s24 = smov 61  }
  0x1a   : > { %11699 = vmatmul.mubr.msk.f32.vlgmr.msra.gmra.mxu0 %vm476_vm2, %v467_v38  ;;  %vm12003_vm4 = vmand %vm735_vm9, %vm11923_vm3  ;;  %v441_v47 = vsel %vm433_vm14, %v11947_v27, 0.0  ;;  %v12010_v48 = vand.u32 1, %v405_v34  ;;  %v407_v49 = vshra.s32 %v11972_v37, 5  ;;  %vm12031_vm10 = vcmp.eq.s32.totalorder %v395_v28, 0  ;;  %s11810_s25 = smov 63   ;;  %s11811_s28 = smov 62  }
  0x1b   : > { %11727 = vmatpush3.msra.mxu0 %v11887_v4  ;;  %vm12019_vm3 = vmand %vm735_vm9, %vm11913_vm0  ;;  %11715 = vmatmul.mubr.msk.f32.vlgmr.msra.gmra.mxu1 %vm476_vm2, %v441_v47  ;;  %vm12035_vm14 = vcmp.eq.s32.totalorder %v396_v36, 1  ;;  %v398_v57 = vand.u32 1, %v11951_v30  ;;  %v12051_v58 = vand.u32 1, %v406_v41  ;;  %vm12072_vm9 = vcmp.eq.s32.totalorder %v396_v36, 0 }
  0x1c   : > { %vm460_vm7 = vmand %vm418_vm12, %vm11966_vm11  ;;  %v15353_v54 = vsel %vm12035_vm14, 4294967295, %v15352_v54  ;;  %11728 = vmatprep.subr.mxu0 %v759_v40  ;;  %11743 = vmatpush3.msra.mxu1 %v11892_v5  ;;  %v15359_v62 = vsel %vm12072_vm9, 4294967295, %v15358_v62  ;;  %v399_v2 = vand.u32 1, %v11972_v37  ;;  %v12096_v3 = vand.u32 1, %v407_v49  ;;  %v12105_v5 = vld [vmem:[%s11909_s29 + $0x28] sm:$0xff] }
  0x1d   : > { %v468_v55 = vsel %vm460_vm7, %v11989_v42, 0.0  ;;  %vm12044_vm0 = vmand %vm418_vm12, %vm11991_vm15  ;;  %11729 = vmatpush3.msra.mxu0 %v759_v40  ;;  %11744 = vmatprep.subr.mxu1 %v914_v50  ;;  %v15368_v8 = vmov 0  ;;  %vm737_vm11 = vcmp.eq.s32.totalorder %v11941_v26, 1  ;;  %v751_v20 = vsel %vm12003_vm4, %v11919_v17, 0.0 }
  0x1e   : > { %vm12057_vm7 = vmand %vm736_vm13, %vm11954_vm8  ;;  %11701 = vmatprep.mubr.msk.f32.mxu0 %vm476_vm2, %v468_v55  ;;  %v442_v60 = vsel %vm12044_vm0, %v11989_v42, 0.0  ;;  %vm12076_vm8 = vcmp.eq.s32.totalorder %v397_v45, 1  ;;  %11745 = vmatpush3.msra.mxu1 %v914_v50  ;;  %v906_v22 = vsel %vm12019_vm3, %v11919_v17, 0.0 }
  0x1f   : > { %vm461_vm12 = vmand %vm419_vm5, %vm11995_vm1  ;;  %v15361_v63 = vsel %vm12076_vm8, 4294967295, %v15360_v63  ;;  %11717 = vmatprep.mubr.msk.f32.mxu1 %vm476_vm2, %v442_v60  ;;  %v752_v25 = vsel %vm12057_vm7, %v11947_v27, 0.0  ;;  %vm15387_vm7 = vnez %v15341_v35 }
  0x20   : > { %vm12084_vm0 = vmand %vm736_vm13, %vm11937_vm6  ;;  %v469_v1 = vsel %vm461_vm12, %v12029_v52, 0.0  ;;  %vm15364_vm6 = vcmp.eq.s32.totalorder %v11976_v39, 0 }
  0x21   : > { %v15363_v0 = vsel %vm12084_vm0, 4294967295, %v15362_v0  ;;  %vm435_vm1 = vmand %vm419_vm5, %vm12031_vm10  ;;  %11702 = vmatmul.mubr.msk.f32.gmra.mxu0 %vm476_vm2, %v469_v1  ;;  %vm12107_vm5 = vcmp.eq.s32.totalorder %v397_v45, 0  ;;  %vm12118_vm0 = vcmp.eq.s32.totalorder %v398_v57, 1 }
  0x22   : > { %v443_v4 = vsel %vm435_vm1, %v12029_v52, 0.0  ;;  %vm462_vm13 = vmand %vm15364_vm6, %vm12035_vm14  ;;  %v15369_v8 = vsel %vm12118_vm0, 4294967295, %v15368_v8  ;;  %vm12131_vm14 = vcmp.eq.s32.totalorder %v398_v57, 0 }
  0x23   : > { %11718 = vmatmul.mubr.msk.f32.gmra.mxu1 %vm476_vm2, %v443_v4  ;;  %v470_v7 = vsel %vm462_vm13, %v12070_v61, 0.0  ;;  %vm15367_vm12 = vmmov %vm15364_vm6  ;;  %vm15370_vm6 = vcmp.eq.s32.totalorder %v12010_v48, 0 }
  0x24   : > { %vm436_vm1 = vmand %vm15367_vm12, %vm12072_vm9  ;;  %11704 = vmatprep.mubr.msk.f32.mxu0 %vm476_vm2, %v470_v7  ;;  %vm12142_vm9 = vcmp.eq.s32.totalorder %v399_v2, 1 }
  0x25   : > { %v444_v9 = vsel %vm436_vm1, %v12070_v61, 0.0  ;;  %vm463_vm13 = vmand %vm15370_vm6, %vm12076_vm8  ;;  %vm12155_vm8 = vcmp.eq.s32.totalorder %v399_v2, 0 }
  0x26   : > { %11720 = vmatprep.mubr.msk.f32.mxu1 %vm476_vm2, %v444_v9  ;;  %v471_v12 = vsel %vm463_vm13, %v12105_v5, 0.0  ;;  %vm15373_vm12 = vmmov %vm15370_vm6  ;;  %vm15376_vm6 = vcmp.eq.s32.totalorder %v12051_v58, 0  ;;  %v15217_v9 = vmov 0.0  }
  0x27   : > { %vm437_vm1 = vmand %vm15373_vm12, %vm12107_vm5  ;;  %11705 = vmatmul.mubr.msk.f32.gmra.mxu0 %vm476_vm2, %v471_v12  ;;  %370 = vst [vmem:[#allocation2] sm:$0xff] %v15217_v9 }
  0x28   : > { %v445_v14 = vsel %vm437_vm1, %v12105_v5, 0.0  ;;  %vm464_vm13 = vmand %vm15376_vm6, %vm12118_vm0  ;;  %371 = vst [vmem:[#allocation2 + $0x8] sm:$0xff] %v15217_v9 }
  0x29   : > { %11721 = vmatmul.mubr.msk.f32.gmra.mxu1 %vm476_vm2, %v445_v14  ;;  %v472_v18 = vsel %vm464_vm13, %v12129_v10, 0.0  ;;  %vm15379_vm12 = vmmov %vm15376_vm6  ;;  %vm15380_vm6 = vcmp.eq.s32.totalorder %v12096_v3, 0  ;;  %vm738_vm13 = vcmp.eq.s32.totalorder %v11958_v33, 1  ;;  %372 = vst [vmem:[#allocation2 + $0x10] sm:$0xff] %v15217_v9 }
  0x2a   : > { %vm438_vm1 = vmand %vm15379_vm12, %vm12131_vm14  ;;  %11707 = vmatprep.mubr.msk.f32.mxu0 %vm476_vm2, %v472_v18  ;;  %373 = vst [vmem:[#allocation2 + $0x18] sm:$0xff] %v15217_v9 }
  0x2b   : > { %v446_v19 = vsel %vm438_vm1, %v12129_v10, 0.0  ;;  %vm465_vm0 = vmand %vm15380_vm6, %vm12142_vm9 }
  0x2c   : > { %11723 = vmatprep.mubr.msk.f32.mxu1 %vm476_vm2, %v446_v19  ;;  %v473_v21 = vsel %vm465_vm0, %v12153_v15, 0.0  ;;  %vm15381_vm12 = vmmov %vm15380_vm6  ;;  %vm15386_vm0 = vnez %v15363_v0  ;;  %vm740_vm6 = vcmp.eq.s32.totalorder %v12010_v48, 1 }
  0x2d   : > { %vm439_vm1 = vmand %vm15381_vm12, %vm12155_vm8  ;;  %11708 = vmatmul.mubr.msk.f32.gmra.mxu0 %vm476_vm2, %v473_v21  ;;  %v907_v28 = vsel %vm15386_vm0, %v11947_v27, 0.0  ;;  %vm15388_vm12 = vnez %v15345_v44 }
  0x2e   : > { %v447_v23 = vsel %vm439_vm1, %v12153_v15, 0.0  ;;  %vm12191_vm4 = vmand %vm737_vm11, %vm11991_vm15  ;;  %11730 = vmatprep.mubr.msk.f32.mxu0 %vm476_vm2, %v751_v20  ;;  %vm739_vm15 = vcmp.eq.s32.totalorder %v11976_v39, 1 }
  0x2f   : > { %11724 = vmatmul.mubr.msk.f32.gmra.mxu1 %vm476_vm2, %v447_v23  ;;  %vm12204_vm3 = vmand %vm738_vm13, %vm12031_vm10  ;;  %v753_v29 = vsel %vm12191_vm4, %v11989_v42, 0.0  ;;  %vm15391_vm4 = vnez %v15359_v62 }
  0x30   : > { %11746 = vmatprep.mubr.msk.f32.mxu1 %vm476_vm2, %v906_v22  ;;  %vm900_vm10 = vmand %vm737_vm11, %vm15387_vm7  ;;  %v754_v31 = vsel %vm12204_vm3, %v12029_v52, 0.0  ;;  %vm15396_vm3 = vnez %v15353_v54  ;;  %vm742_vm7 = vcmp.eq.s32.totalorder %v12096_v3, 1 }
  0x31   : > { %v908_v30 = vsel %vm900_vm10, %v11989_v42, 0.0  ;;  %vm12226_vm1 = vmand %vm738_vm13, %vm15388_vm12  ;;  %11731 = vmatmul.mubr.msk.f32.vlgmr.msra.gmra.mxu0 %vm476_vm2, %v752_v25  ;;  %vm741_vm13 = vcmp.eq.s32.totalorder %v12051_v58, 1  ;;  %vm15397_vm10 = vnez %v15361_v63 }
  0x32   : > { %vm12235_vm0 = vmand %vm739_vm15, %vm15391_vm4  ;;  %11733 = vmatprep.mubr.msk.f32.mxu0 %vm476_vm2, %v753_v29  ;;  %v909_v33 = vsel %vm12226_vm1, %v12029_v52, 0.0 }
  0x33   : > { %11747 = vmatmul.mubr.msk.f32.vlgmr.msra.gmra.mxu1 %vm476_vm2, %v907_v28  ;;  %vm12248_vm11 = vmand %vm740_vm6, %vm12107_vm5  ;;  %v755_v34 = vsel %vm12235_vm0, %v12070_v61, 0.0  ;;  %vm1078_vm0 = vcmask 277508  }
  0x34   : > { %11749 = vmatprep.mubr.msk.f32.mxu1 %vm476_vm2, %v908_v30  ;;  %vm902_vm5 = vmand %vm739_vm15, %vm15396_vm3  ;;  %v756_v36 = vsel %vm12248_vm11, %v12105_v5, 0.0  ;;  %vm1067_vm11 = vcmask 797968   ;;  %vm1074_vm3 = vcmask 801792  }
  0x35   : > { %v910_v35 = vsel %vm902_vm5, %v12070_v61, 0.0  ;;  %vm903_vm12 = vmand %vm740_vm6, %vm15397_vm10  ;;  %11734 = vmatmul.mubr.msk.f32.gmra.mxu0 %vm476_vm2, %v754_v31  ;;  %vm15398_vm6 = vnez %v15369_v8  ;;  %vm15212_vm5 = vcmask 273424   ;;  %vm15232_vm10 = vcmask 1043456  }
  0x36   : > { %vm749_vm1 = vmand %vm741_vm13, %vm12131_vm14  ;;  %11736 = vmatprep.mubr.msk.f32.mxu0 %vm476_vm2, %v755_v34  ;;  %v911_v37 = vsel %vm903_vm12, %v12105_v5, 0.0  ;;  %vm15235_vm12 = vcmask 31744  }
  0x37   : > { %11750 = vmatmul.mubr.msk.f32.gmra.mxu1 %vm476_vm2, %v909_v33  ;;  %vm750_vm15 = vmand %vm742_vm7, %vm12155_vm8  ;;  %v757_v38 = vsel %vm749_vm1, %v12129_v10, 0.0  ;;  %vm1077_vm8 = vcmask 1044240   ;;  %vm15210_vm1 = vcmask 535824  }
  0x38   : > { %11752 = vmatprep.mubr.msk.f32.mxu1 %vm476_vm2, %v910_v35  ;;  %vm904_vm14 = vmand %vm741_vm13, %vm15398_vm6  ;;  %v758_v40 = vsel %vm750_vm15, %v12153_v15, 0.0  ;;  %vm15226_vm15 = vcmask 1022976  }
  0x39   : > { %v912_v39 = vsel %vm904_vm14, %v12129_v10, 0.0  ;;  %vm905_vm4 = vmand %vm742_vm7, %vm12142_vm9  ;;  %11737 = vmatmul.mubr.msk.f32.gmra.mxu0 %vm476_vm2, %v756_v36  ;;  %vm374_vm9 = vcmask 551936   ;;  %vm15224_vm7 = vcmask 1031168  }
  0x3a   : > { %11739 = vmatprep.mubr.msk.f32.mxu0 %vm476_vm2, %v757_v38  ;;  %v913_v41 = vsel %vm905_vm4, %v12153_v15, 0.0  ;;  %375 = vst.msk [vmem:[#allocation2 + $0x20] sm:$0xf] %vm374_vm9, %v15217_v9  ;;  %vm12331_vm13 = vmor %vm1078_vm0, %vm1077_vm8  ;;  %vm15233_vm4 = vcmask 1039360  }
  0x3b   : > { %11753 = vmatmul.mubr.msk.f32.gmra.mxu1 %vm476_vm2, %v911_v37 }
  0x3c   : > { %11755 = vmatprep.mubr.msk.f32.mxu1 %vm476_vm2, %v912_v39 }
  0x3d   : > { %11740 = vmatmul.mubr.msk.f32.gmra.mxu0 %vm476_vm2, %v758_v40 }
  0x3e   : > { %1410 = vmatprep.mubr.f32.mxu0 %v15217_v9 }
  0x3f   : > { %11756 = vmatmul.mubr.msk.f32.gmra.mxu1 %vm476_vm2, %v913_v41  ;;  %vm15211_vm2 = vcmask 523264  }
  0x40   : > { %1481 = vmatprep.mubr.f32.mxu1 %v15217_v9 }
  0xda   : > { %v11700_v42 = vpop.f32.mrf.mxu0 }
  0xdb   : > { %v11716_v43 = vpop.f32.mrf.mxu1 }
  0xdc   : > { %v567_v44 = vpop.f32.mrf.mxu0  ;;  %v702_v57 = vadd.f32 %v11716_v43, %v11700_v42 }
  0xdd   : > { %v696_v45 = vpop.f32.mrf.mxu1 }
  0xde   : > { %v697_v60 = vadd.f32 %v696_v45, %v567_v44 }
  0xe1   : > { %v11703_v46 = vpop.f32.mrf.mxu0 }
  0xe3   : > { %v11719_v47 = vpop.f32.mrf.mxu1  ;;  %v577_v48 = vpop.f32.mrf.mxu0 }
  0xe4   : > { %v712_v0 = vadd.f32 %v11719_v47, %v11703_v46 }
  0xe5   : > { %v706_v49 = vpop.f32.mrf.mxu1 }
  0xe6   : > { %v707_v5 = vadd.f32 %v706_v49, %v577_v48 }
  0xe7   : > { %v11706_v50 = vpop.f32.mrf.mxu0 }
  0xe9   : > { %v11722_v51 = vpop.f32.mrf.mxu1  ;;  %v587_v52 = vpop.f32.mrf.mxu0 }
  0xea   : > { %v722_v11 = vadd.f32 %v11722_v51, %v11706_v50 }
  0xeb   : > { %v716_v53 = vpop.f32.mrf.mxu1 }
  0xec   : > { %v717_v16 = vadd.f32 %v716_v53, %v587_v52 }
  0xed   : > { %v11709_v54 = vpop.f32.mrf.mxu0 }
  0xef   : > { %v11725_v55 = vpop.f32.mrf.mxu1  ;;  %v597_v56 = vpop.f32.mrf.mxu0 }
  0xf0   : > { %v732_v22 = vadd.f32 %v11725_v55, %v11709_v54 }
  0xf1   : > { %v726_v58 = vpop.f32.mrf.mxu1  ;;  %v11732_v59 = vpop.f32.mrf.mxu0 }
  0xf2   : > { %v891_v61 = vadd.f32 %v11732_v59, %v702_v57  ;;  %v727_v29 = vadd.f32 %v726_v58, %v597_v56 }
  0xf3   : > { %v11748_v62 = vpop.f32.mrf.mxu1  ;;  %v851_v63 = vpop.f32.mrf.mxu0 }
  0xf4   : > { %v1046_v1 = vadd.f32 %v11748_v62, %v891_v61  ;;  %v890_v2 = vadd.f32 %v851_v63, %v697_v60 }
  0xf5   : > { %v1006_v3 = vpop.f32.mrf.mxu1  ;;  %v11735_v4 = vpop.f32.mrf.mxu0 }
  0xf6   : > { %1055 = vst.msk [vmem:[#allocation3 + $0x8] sm:$0xff] %vm15211_vm2, %v1046_v1  ;;  %v1045_v6 = vadd.f32 %v1006_v3, %v890_v2  ;;  %v893_v7 = vadd.f32 %v11735_v4, %v712_v0 }
  0xf7   : > { %v11751_v8 = vpop.f32.mrf.mxu1  ;;  %v861_v10 = vpop.f32.mrf.mxu0 }
  0xf8   : > { %1054 = vst.msk [vmem:[#allocation3] sm:$0xff] %vm15211_vm2, %v1045_v6  ;;  %v892_v12 = vadd.f32 %v861_v10, %v707_v5  ;;  %v1048_v13 = vadd.f32 %v11751_v8, %v893_v7 }
  0xf9   : > { %v1016_v14 = vpop.f32.mrf.mxu1  ;;  %v11738_v15 = vpop.f32.mrf.mxu0 }
  0xfa   : > { %1057 = vst.msk [vmem:[#allocation3 + $0x18] sm:$0xff] %vm15211_vm2, %v1048_v13  ;;  %v895_v18 = vadd.f32 %v11738_v15, %v722_v11  ;;  %v1047_v19 = vadd.f32 %v1016_v14, %v892_v12 }
  0xfb   : > { %v11754_v20 = vpop.f32.mrf.mxu1  ;;  %v871_v21 = vpop.f32.mrf.mxu0 }
  0xfc   : > { %1056 = vst.msk [vmem:[#allocation3 + $0x10] sm:$0xff] %vm15211_vm2, %v1047_v19  ;;  %v894_v23 = vadd.f32 %v871_v21, %v717_v16  ;;  %v1050_v24 = vadd.f32 %v11754_v20, %v895_v18 }
  0xfd   : > { %v1026_v25 = vpop.f32.mrf.mxu1  ;;  %v11741_v17 = vpop.f32.mrf.mxu0  ;;  %v1087_v28 = vld [vmem:[#allocation3 + $0xc] sm:$0xf]  ;;  %v1081_v36 = vld [vmem:[#allocation3 + $0x8] sm:$0xf] }
  0xfe   : > { %1059 = vst.msk [vmem:[#allocation3 + $0x28] sm:$0xff] %vm15211_vm2, %v1050_v24  ;;  %v897_v30 = vadd.f32 %v11741_v17, %v732_v22  ;;  %v1049_v27 = vadd.f32 %v1026_v25, %v894_v23  ;;  %1089 = vrot.lane.b32.xlu1 %v1087_v28, %s11800_s14 }
  0xff   : > { %v11757_v26 = vpop.f32.mrf.mxu1  ;;  %v881_v31 = vpop.f32.mrf.mxu0  ;;  %v1069_v32 = vld [vmem:[#allocation3 + $0x4] sm:$0xf]  ;;  %v1062_v38 = vld [vmem:[#allocation3] sm:$0xf] }
 0x100   : > { %1058 = vst.msk [vmem:[#allocation3 + $0x20] sm:$0xff] %vm15211_vm2, %v1049_v27  ;;  %v896_v33 = vadd.f32 %v881_v31, %v727_v29  ;;  %v1052_v34 = vadd.f32 %v11757_v26, %v897_v30  ;;  %1071 = vrot.lane.b32.xlu0 %v1069_v32, %s11800_s14 }
 0x101   : > { %v1036_v35 = vpop.f32.mrf.mxu1  ;;  %v1109_v39 = vld [vmem:[#allocation3 + $0x18] sm:$0xf]  ;;  %v1115_v40 = vld [vmem:[#allocation3 + $0x1c] sm:$0xf] }
 0x102   : > { %1061 = vst.msk [vmem:[#allocation3 + $0x38] sm:$0xff] %vm15211_vm2, %v1052_v34  ;;  %v1051_v37 = vadd.f32 %v1036_v35, %v896_v33  ;;  %1083 = vrot.lane.b32.xlu1 %v1081_v36, %s11801_s15 }
 0x103   : > { %v1095_v41 = vld [vmem:[#allocation3 + $0x10] sm:$0xf]  ;;  %v1101_v42 = vld [vmem:[#allocation3 + $0x14] sm:$0xf] }
 0x104   : > { %1060 = vst.msk [vmem:[#allocation3 + $0x30] sm:$0xff] %vm15211_vm2, %v1051_v37  ;;  %1064 = vrot.lane.b32.xlu0 %v1062_v38, %s11801_s15 }
 0x105   : > { %v1137_v43 = vld [vmem:[#allocation3 + $0x28] sm:$0xf]  ;;  %v1143_v44 = vld [vmem:[#allocation3 + $0x2c] sm:$0xf] }
 0x106   : > { %1111 = vrot.lane.b32.xlu1 %v1109_v39, %s11801_s15 }
 0x107   : > { %v1123_v45 = vld [vmem:[#allocation3 + $0x20] sm:$0xf]  ;;  %v1129_v46 = vld [vmem:[#allocation3 + $0x24] sm:$0xf] }
 0x108   : > { %1117 = vrot.lane.b32.xlu0 %v1115_v40, %s11800_s14 }
 0x109   : > { %v1165_v49 = vld [vmem:[#allocation3 + $0x38] sm:$0xf]  ;;  %v1171_v50 = vld [vmem:[#allocation3 + $0x3c] sm:$0xf] }
 0x10a   : > { %1097 = vrot.lane.b32.xlu1 %v1095_v41, %s11801_s15 }
 0x10b   : > { %v1151_v47 = vld [vmem:[#allocation3 + $0x30] sm:$0xf]  ;;  %v1157_v48 = vld [vmem:[#allocation3 + $0x34] sm:$0xf] }
 0x10c   : > { %1103 = vrot.lane.b32.xlu0 %v1101_v42, %s11800_s14 }
 0x10e   : > { %1139 = vrot.lane.b32.xlu1 %v1137_v43, %s11801_s15 }
 0x110   : > { %1145 = vrot.lane.b32.xlu0 %v1143_v44, %s11800_s14  ;;  %v12525_v44 = vld [vmem:[%s15196_s3 + $0x4] sm:$0xf] }
 0x112   : > { %1125 = vrot.lane.b32.xlu1 %v1123_v45, %s11801_s15 }
 0x114   : > { %1131 = vrot.lane.b32.xlu0 %v1129_v46, %s11800_s14 }
 0x116   : > { %1153 = vrot.lane.b32.xlu1 %v1151_v47, %s11801_s15 }
 0x118   : > { %1159 = vrot.lane.b32.xlu0 %v1157_v48, %s11800_s14 }
 0x11a   : > { %1167 = vrot.lane.b32.xlu1 %v1165_v49, %s11801_s15 }
 0x11c   : > { %1173 = vrot.lane.b32.xlu0 %v1171_v50, %s11800_s14 }
 0x170   : > { %v1090_v51 = vpop.permute.xlu1 %1089 }
 0x171   : > { %v1091_v55 = vrot.slane %v1090_v51, 4 }
 0x172   : > { %v1072_v52 = vpop.permute.xlu0 %1071 }
 0x173   : > { %v1073_v53 = vrot.slane %v1072_v52, 4  ;;  %v1092_v60 = vsel %vm1074_vm3, %v1091_v55, %v1090_v51 }
 0x174   : > { %v1084_v54 = vpop.permute.xlu1 %1083 }
 0x175   : > { %v1075_v58 = vsel %vm1074_vm3, %v1073_v53, %v1072_v52 }
 0x176   : > { %v1065_v57 = vpop.permute.xlu0 %1064 }
 0x177   : > { %1068 = vst.msk [vmem:[#allocation2] sm:$0xf] %vm1067_vm11, %v1065_v57 }
 0x178   : > { %1080 = vst.msk [vmem:[#allocation2] sm:$0xff] %vm12331_vm13, %v1075_v58  ;;  %v1112_v59 = vpop.permute.xlu1 %1111 }
 0x179   : > { %1086 = vst.msk [vmem:[#allocation2 + $0x4] sm:$0xf] %vm1067_vm11, %v1084_v54 }
 0x17a   : > { %1094 = vst.msk [vmem:[#allocation2 + $0x4] sm:$0xff] %vm12331_vm13, %v1092_v60  ;;  %v1118_v61 = vpop.permute.xlu0 %1117 }
 0x17b   : > { %v1119_v0 = vrot.slane %v1118_v61, 4 }
 0x17c   : > { %v1098_v62 = vpop.permute.xlu1 %1097 }
 0x17d   : > { %1100 = vst.msk [vmem:[#allocation2 + $0x8] sm:$0xf] %vm1067_vm11, %v1098_v62  ;;  %v1120_v6 = vsel %vm1074_vm3, %v1119_v0, %v1118_v61 }
 0x17e   : > { %v1104_v63 = vpop.permute.xlu0 %1103 }
 0x17f   : > { %v1105_v1 = vrot.slane %v1104_v63, 4  ;;  %v1179_v2 = vld [vmem:[#allocation2] sm:$0xf] }
 0x180   : > { %v1140_v3 = vpop.permute.xlu1 %1139  ;;  %1181 = vrot.lane.b32.xlu0 %v1179_v2, %s11802_s16 }
 0x181   : > { %v1106_v4 = vsel %vm1074_vm3, %v1105_v1, %v1104_v63 }
 0x182   : > { %1108 = vst.msk [vmem:[#allocation2 + $0x8] sm:$0xff] %vm12331_vm13, %v1106_v4  ;;  %v1146_v5 = vpop.permute.xlu0 %1145 }
 0x183   : > { %1114 = vst.msk [vmem:[#allocation2 + $0xc] sm:$0xf] %vm1067_vm11, %v1112_v59  ;;  %v1147_v10 = vrot.slane %v1146_v5, 4 }
 0x184   : > { %1122 = vst.msk [vmem:[#allocation2 + $0xc] sm:$0xff] %vm12331_vm13, %v1120_v6  ;;  %v1126_v7 = vpop.permute.xlu1 %1125 }
 0x185   : > { %1128 = vst.msk [vmem:[#allocation2 + $0x10] sm:$0xf] %vm1067_vm11, %v1126_v7  ;;  %v1148_v15 = vsel %vm1074_vm3, %v1147_v10, %v1146_v5 }
 0x186   : > { %v1132_v8 = vpop.permute.xlu0 %1131 }
 0x187   : > { %v1133_v11 = vrot.slane %v1132_v8, 4 }
 0x188   : > { %v1154_v12 = vpop.permute.xlu1 %1153 }
 0x189   : > { %v1134_v13 = vsel %vm1074_vm3, %v1133_v11, %v1132_v8 }
 0x18a   : > { %1136 = vst.msk [vmem:[#allocation2 + $0x10] sm:$0xff] %vm12331_vm13, %v1134_v13  ;;  %v1160_v14 = vpop.permute.xlu0 %1159 }
 0x18b   : > { %1142 = vst.msk [vmem:[#allocation2 + $0x14] sm:$0xf] %vm1067_vm11, %v1140_v3  ;;  %v1161_v16 = vrot.slane %v1160_v14, 4  ;;  %v12358_v18 = vld [vmem:[#allocation2 + $0x8] sm:$0xff] }
 0x18c   : > { %1150 = vst.msk [vmem:[#allocation2 + $0x14] sm:$0xff] %vm12331_vm13, %v1148_v15  ;;  %1221 = vrot.lane.b32.xlu0 %v12358_v18, %s11803_s17  ;;  %1302 = vrot.lane.b32.xlu1 %v12358_v18, %s11804_s18  ;;  %v1168_v20 = vpop.permute.xlu1 %1167  ;;  %v12372_v22 = vcombine.high %v12358_v18, %v12358_v18 }
 0x18d   : > { %1156 = vst.msk [vmem:[#allocation2 + $0x18] sm:$0xf] %vm1067_vm11, %v1154_v12  ;;  %v1162_v19 = vsel %vm1074_vm3, %v1161_v16, %v1160_v14 }
 0x18e   : > { %1164 = vst.msk [vmem:[#allocation2 + $0x18] sm:$0xff] %vm12331_vm13, %v1162_v19  ;;  %v1174_v21 = vpop.permute.xlu0 %1173 }
 0x18f   : > { %1170 = vst.msk [vmem:[#allocation2 + $0x1c] sm:$0xf] %vm1067_vm11, %v1168_v20  ;;  %v1175_v23 = vrot.slane %v1174_v21, 4  ;;  %v15209_v20 = vmov 0  }
 0x190   : > { %1256 = vrot.lane.b32.xlu0 %v12358_v18, %s11805_s19  ;;  %1223 = vrot.lane.b32.xlu1 %v12372_v22, %s11803_s17 }
 0x191   : > { %v1176_v24 = vsel %vm1074_vm3, %v1175_v23, %v1174_v21  ;;  %11781 = vset.pattern.permute.xlu1 %v15209_v20  ;;  %v15213_v21 = vmov 1   ;;  %vm15223_vm3 = vcmask 777216  }
 0x192   : > { %1178 = vst.msk [vmem:[#allocation2 + $0x1c] sm:$0xff] %vm12331_vm13, %v1176_v24  ;;  %11782 = vset.pattern.permute.xlu0 %v15213_v21 }
 0x193   : > { %v12390_v25 = vld [vmem:[#allocation2 + $0x10] sm:$0xff] }
 0x194   : > { %2296 = vrot.lane.b32.xlu0 %v12358_v18, %s11806_s20  ;;  %1258 = vrot.lane.b32.xlu1 %v12372_v22, %s11805_s19  ;;  %v12398_v17 = vcombine.high %v12390_v25, %v12390_v25 }
 0x198   : > { %2331 = vrot.lane.b32.xlu0 %v12358_v18, %s11807_s21  ;;  %2298 = vrot.lane.b32.xlu1 %v12372_v22, %s11806_s20 }
 0x199   : > { %v1186_v28 = vld [vmem:[#allocation2 + $0x1c] sm:$0xff] }
 0x19a   : > { %v12431_v29 = vld [vmem:[#allocation2 + $0x18] sm:$0xff] }
 0x19b   : > { %v12451_v30 = vcombine.high %v12431_v29, %v12431_v29 }
 0x19c   : > { %1304 = vrot.lane.b32.xlu0 %v12372_v22, %s11804_s18  ;;  %1306 = vrot.lane.b32.xlu1 %v12390_v25, %s11804_s18 }
 0x1a0   : > { %1225 = vrot.lane.b32.xlu0 %v12390_v25, %s11803_s17  ;;  %1308 = vrot.lane.b32.xlu1 %v12398_v17, %s11804_s18 }
 0x1a4   : > { %1260 = vrot.lane.b32.xlu0 %v12390_v25, %s11805_s19  ;;  %1227 = vrot.lane.b32.xlu1 %v12398_v17, %s11803_s17 }
 0x1a8   : > { %2300 = vrot.lane.b32.xlu0 %v12390_v25, %s11806_s20  ;;  %1262 = vrot.lane.b32.xlu1 %v12398_v17, %s11805_s19 }
 0x1ac   : > { %2335 = vrot.lane.b32.xlu0 %v12390_v25, %s11807_s21  ;;  %1188 = vrot.lane.b32.xlu1 %v1186_v28, %s11802_s16 }
 0x1b0   : > { %2711 = vrot.lane.b32.xlu0 %v12358_v18, %s11808_s22  ;;  %2333 = vrot.lane.b32.xlu1 %v12372_v22, %s11807_s21 }
 0x1b4   : > { %2715 = vrot.lane.b32.xlu0 %v12390_v25, %s11808_s22  ;;  %2302 = vrot.lane.b32.xlu1 %v12398_v17, %s11806_s20 }
 0x1b8   : > { %2717 = vrot.lane.b32.xlu0 %v12398_v17, %s11808_s22  ;;  %2337 = vrot.lane.b32.xlu1 %v12398_v17, %s11807_s21 }
 0x1bc   : > { %3394 = vrot.lane.b32.xlu0 %v12372_v22, %s11809_s24  ;;  %2713 = vrot.lane.b32.xlu1 %v12372_v22, %s11808_s22 }
 0x1c0   : > { %1310 = vrot.lane.b32.xlu0 %v12431_v29, %s11804_s18  ;;  %3392 = vrot.lane.b32.xlu1 %v12358_v18, %s11809_s24 }
 0x1c4   : > { %1229 = vrot.lane.b32.xlu0 %v12431_v29, %s11803_s17  ;;  %3396 = vrot.lane.b32.xlu1 %v12390_v25, %s11809_s24 }
 0x1c8   : > { %1264 = vrot.lane.b32.xlu0 %v12431_v29, %s11805_s19  ;;  %3427 = vrot.lane.b32.xlu1 %v12358_v18, %s11810_s25 }
 0x1cc   : > { %2304 = vrot.lane.b32.xlu0 %v12431_v29, %s11806_s20  ;;  %2719 = vrot.lane.b32.xlu1 %v12431_v29, %s11808_s22 }
 0x1d0   : > { %2339 = vrot.lane.b32.xlu0 %v12431_v29, %s11807_s21  ;;  %1312 = vrot.lane.b32.xlu1 %v12451_v30, %s11804_s18 }
 0x1d4   : > { %2721 = vrot.lane.b32.xlu0 %v12451_v30, %s11808_s22  ;;  %1231 = vrot.lane.b32.xlu1 %v12451_v30, %s11803_s17 }
 0x1d8   : > { %1266 = vrot.lane.b32.xlu1 %v12451_v30, %s11805_s19 }
 0x1dc   : > { %2306 = vrot.lane.b32.xlu1 %v12451_v30, %s11806_s20 }
 0x1e0   : > { %2341 = vrot.lane.b32.xlu1 %v12451_v30, %s11807_s21 }
 0x1f2   : > { %v1182_v27 = vpop.permute.xlu0 %1181 }
 0x1f3   : > { %1185 = vst.msk [vmem:[#allocation2] sm:$0xf] %vm15212_vm5, %v1182_v27  ;;  %vm15225_vm5 = vcmask 769024  }
 0x1fa   : > { %v12468_v26 = vld [vmem:[#allocation2] sm:$0xff] }
 0x1fb   : > { %1217 = vrot.lane.b32.xlu1 %v12468_v26, %s11803_s17  ;;  %1298 = vrot.lane.b32.xlu0 %v12468_v26, %s11804_s18  ;;  %v12492_v35 = vcombine.high %v12468_v26, %v12468_v26 }
 0x1fe   : > { %v12474_v31 = vpop.permute.xlu1 %1302  ;;  %v12476_v32 = vpop.permute.xlu0 %1221 }
 0x1ff   : > { %2292 = vrot.lane.b32.xlu1 %v12468_v26, %s11806_s20  ;;  %1252 = vrot.lane.b32.xlu0 %v12468_v26, %s11805_s19 }
 0x202   : > { %v12482_v33 = vpop.permute.xlu1 %1223  ;;  %v12484_v34 = vpop.permute.xlu0 %1256 }
 0x203   : > { %2707 = vrot.lane.b32.xlu1 %v12468_v26, %s11808_s22  ;;  %2327 = vrot.lane.b32.xlu0 %v12468_v26, %s11807_s21 }
 0x206   : > { %v12494_v36 = vpop.permute.xlu1 %1258  ;;  %v12496_v37 = vpop.permute.xlu0 %2296 }
 0x207   : > { %1219 = vrot.lane.b32.xlu1 %v12492_v35, %s11803_s17  ;;  %1300 = vrot.lane.b32.xlu0 %v12492_v35, %s11804_s18 }
 0x20a   : > { %v12502_v38 = vpop.permute.xlu1 %2298  ;;  %v12504_v39 = vpop.permute.xlu0 %2331 }
 0x20b   : > { %1254 = vrot.lane.b32.xlu1 %v12492_v35, %s11805_s19  ;;  %3390 = vrot.lane.b32.xlu0 %v12492_v35, %s11809_s24 }
 0x20e   : > { %v12510_v40 = vpop.permute.xlu1 %1306  ;;  %v1305_v41 = vpop.permute.xlu0 %1304 }
 0x20f   : > { %v1319_v42 = vsel %vm15224_vm7, %v12474_v31, %v1305_v41  ;;  %2294 = vrot.lane.b32.xlu1 %v12492_v35, %s11806_s20  ;;  %3425 = vrot.lane.b32.xlu0 %v12492_v35, %s11810_s25  ;;  %v1320_v43 = vsel %vm15224_vm7, %v1305_v41, %v12510_v40 }
 0x210   : > { %11305 = vmatprep.subr.msk.mxu1 %vm15232_vm10, %v1320_v43 }
 0x211   : > { %11306 = vmatpush1.msk.msra.mxu1 %vm15232_vm10, %v1319_v42 }
 0x212   : > { %v12527_v45 = vpop.permute.xlu1 %1308  ;;  %11307 = vmatmul.mubr.msk.f32.vlgmr.msra.gmra.mxu1 %vm15235_vm12, %v12525_v44  ;;  %v12540_v48 = vpop.permute.xlu0 %1225 }
 0x213   : > { %2329 = vrot.lane.b32.xlu1 %v12492_v35, %s11807_s21  ;;  %1623 = vmatprep.mubr.f32.mxu1 %v15217_v9 }
 0x216   : > { %v12534_v46 = vpop.permute.xlu1 %1227  ;;  %v12546_v51 = vpop.permute.xlu0 %1260 }
 0x217   : > { %2709 = vrot.lane.b32.xlu1 %v12492_v35, %s11808_s22 }
 0x21a   : > { %v12538_v47 = vpop.permute.xlu1 %1262  ;;  %v12554_v54 = vpop.permute.xlu0 %2300 }
 0x21b   : > { %3431 = vrot.lane.b32.xlu1 %v12390_v25, %s11810_s25 }
 0x21e   : > { %v1189_v49 = vpop.permute.xlu1 %1188  ;;  %v12562_v58 = vpop.permute.xlu0 %2335 }
 0x21f   : > { %v1190_v50 = vrot.slane %v1189_v49, 4  ;;  %3423 = vrot.lane.b32.xlu1 %v12468_v26, %s11810_s25 }
 0x221   : > { %v1191_v52 = vsel %vm15211_vm2, %v1189_v49, %v1190_v50  ;;  %vm15216_vm2 = vcmask 760832  }
 0x222   : > { %1194 = vst.msk [vmem:[#allocation2 + $0x20] sm:$0xf] %vm15210_vm1, %v1191_v52  ;;  %v12550_v53 = vpop.permute.xlu1 %2333  ;;  %v12570_v61 = vpop.permute.xlu0 %2711 }
 0x223   : > { %3400 = vrot.lane.b32.xlu1 %v12431_v29, %s11809_s24 }
 0x226   : > { %v12556_v55 = vpop.permute.xlu1 %2302  ;;  %v12578_v63 = vpop.permute.xlu0 %2715 }
 0x227   : > { %3435 = vrot.lane.b32.xlu1 %v12431_v29, %s11810_s25 }
 0x229   : > { %v1199_v56 = vld [vmem:[#allocation2 + $0x20] sm:$0xf] }
 0x22a   : > { %v2695_v57 = vld [vmem:[#allocation2 + $0x20] sm:$0xf]  ;;  %1314 = vrot.lane.b32.xlu0 %v1199_v56, %s11804_s18  ;;  %v12564_v59 = vpop.permute.xlu1 %2337  ;;  %v12587_v2 = vpop.permute.xlu0 %2717 }
 0x22b   : > { %2723 = vrot.lane.b32.xlu1 %v2695_v57, %s11808_s22  ;;  %v3378_v60 = vld [vmem:[#allocation2 + $0x20] sm:$0xf] }
 0x22c   : > { %v2282_v1 = vld [vmem:[#allocation2 + $0x20] sm:$0xf] }
 0x22d   : > { %v3791_v19 = vld [vmem:[#allocation2 + $0x20] sm:$0xf] }
 0x22e   : > { %1233 = vrot.lane.b32.xlu0 %v1199_v56, %s11803_s17  ;;  %v12572_v62 = vpop.permute.xlu1 %2713  ;;  %v12596_v4 = vpop.permute.xlu0 %3394 }
 0x22f   : > { %3807 = vrot.lane.b32.xlu1 %v12358_v18, %s11811_s28  ;;  %15401 = vst [vmem:[#allocation4_spill] sm:$0xff] %v12596_v4  ;;  %v4470_v18 = vld [vmem:[%s15197_s4] sm:$0xf] }
 0x232   : > { %1268 = vrot.lane.b32.xlu0 %v1199_v56, %s11805_s19  ;;  %v12580_v0 = vpop.permute.xlu1 %3392  ;;  %v12604_v6 = vpop.permute.xlu0 %1310 }
 0x233   : > { %3404 = vrot.lane.b32.xlu1 %v3378_v60, %s11809_s24 }
 0x236   : > { %3429 = vrot.lane.b32.xlu0 %v12372_v22, %s11810_s25  ;;  %v12589_v3 = vpop.permute.xlu1 %3396  ;;  %v12610_v8 = vpop.permute.xlu0 %1229 }
 0x237   : > { %3439 = vrot.lane.b32.xlu1 %v3378_v60, %s11810_s25 }
 0x23a   : > { %3388 = vrot.lane.b32.xlu0 %v12468_v26, %s11809_s24  ;;  %v12598_v5 = vpop.permute.xlu1 %3427  ;;  %v12618_v11 = vpop.permute.xlu0 %1264 }
 0x23b   : > { %3811 = vrot.lane.b32.xlu1 %v12390_v25, %s11811_s28 }
 0x23e   : > { %2308 = vrot.lane.b32.xlu0 %v2282_v1, %s11806_s20  ;;  %v12606_v7 = vpop.permute.xlu1 %2719  ;;  %v12624_v13 = vpop.permute.xlu0 %2304 }
 0x23f   : > { %3813 = vrot.lane.b32.xlu1 %v12398_v17, %s11811_s28 }
 0x242   : > { %2343 = vrot.lane.b32.xlu0 %v2282_v1, %s11807_s21  ;;  %v12612_v10 = vpop.permute.xlu1 %1312  ;;  %v12632_v15 = vpop.permute.xlu0 %2339  ;;  %v1322_v1 = vsel %vm15224_vm7, %v12527_v45, %v12604_v6 }
 0x243   : > { %3817 = vrot.lane.b32.xlu1 %v12451_v30, %s11811_s28 }
 0x246   : > { %3398 = vrot.lane.b32.xlu0 %v12398_v17, %s11809_s24  ;;  %v12620_v12 = vpop.permute.xlu1 %1231 }
 0x247   : > { %4473 = vperm.xlu1 %11781, %v4470_v18  }
 0x24a   : > { %3402 = vrot.lane.b32.xlu0 %v12451_v30, %s11809_s24  ;;  %v12626_v14 = vpop.permute.xlu1 %1266 }
 0x24e   : > { %3433 = vrot.lane.b32.xlu0 %v12398_v17, %s11810_s25  ;;  %v12634_v16 = vpop.permute.xlu1 %2306  ;;  %v353_v17 = vlaneseq }
 0x252   : > { %3437 = vrot.lane.b32.xlu0 %v12451_v30, %s11810_s25  ;;  %v12644_v23 = vpop.permute.xlu1 %2341  ;;  %v12648_v30 = vand.u32 127, %v353_v17 }
 0x254   : > { %v355_v27 = vadd.s32 128, %v12648_v30  ;;  %v359_v41 = vadd.s32 640, %v12648_v30  ;;  %v362_v43 = vand.u32 31, %v12648_v30  ;;  %v358_v57 = vadd.s32 512, %v12648_v30 }
 0x255   : > { %v12876_v4 = vadd.s32 768, %v12648_v30 }
 0x256   : > { %3805 = vrot.lane.b32.xlu0 %v12492_v35, %s11811_s28  ;;  %v363_v42 = vand.u32 31, %v355_v27  ;;  %v367_v60 = vand.u32 31, %v359_v41  ;;  %vm12670_vm14 = vcmp.eq.s32.totalorder %v362_v43, 0  ;;  %vm12737_vm11 = vcmp.eq.s32.totalorder %v362_v43, 31 }
 0x258   : > { %vm12666_vm6 = vcmp.eq.s32.totalorder %v363_v42, 0  ;;  %vm12695_vm9 = vcmp.eq.s32.totalorder %v367_v60, 0  ;;  %vm12722_vm0 = vcmp.eq.s32.totalorder %v363_v42, 31  ;;  %v15417_v42 = vmov 0 }
 0x259   : > { %v15418_v42 = vsel %vm12737_vm11, 4294967295, %v15417_v42  ;;  %vm12742_vm13 = vcmp.eq.s32.totalorder %v367_v60, 31  ;;  %v15423_v60 = vmov 0 }
 0x25a   : > { %3809 = vrot.lane.b32.xlu0 %v12372_v22, %s11811_s28  ;;  %v12642_v22 = vpop.permute.xlu0 %2721  ;;  %15419 = vst [vmem:[#allocation10_spill] sm:$0xff] %v15418_v42 }
 0x25e   : > { %3803 = vrot.lane.b32.xlu0 %v12468_v26, %s11811_s28 }
 0x262   : > { %3815 = vrot.lane.b32.xlu0 %v12431_v29, %s11811_s28 }
 0x266   : > { %3819 = vrot.lane.b32.xlu0 %v3791_v19, %s11811_s28  ;;  %v15405_v19 = vmov 0 }
 0x267   : > { %v15406_v19 = vsel %vm12670_vm14, 4294967295, %v15405_v19 }
 0x268   : > { %15407 = vst [vmem:[#allocation6_spill] sm:$0xff] %v15406_v19 }
 0x26a   : > { %4485 = vperm.xlu0 %11782, %v4470_v18   ;;  %v15402_v18 = vmov 0 }
 0x26b   : > { %v15403_v18 = vsel %vm12666_vm6, 4294967295, %v15402_v18 }
 0x26c   : > { %15404 = vst [vmem:[#allocation5_spill] sm:$0xff] %v15403_v18 }
 0x26d   : > { %v1218_v24 = vpop.permute.xlu1 %1217  ;;  %v1299_v25 = vpop.permute.xlu0 %1298 }
 0x271   : > { %v12646_v28 = vpop.permute.xlu1 %2292  ;;  %v1253_v29 = vpop.permute.xlu0 %1252 }
 0x275   : > { %v12651_v26 = vpop.permute.xlu1 %2707  ;;  %v12653_v35 = vpop.permute.xlu0 %2327 }
 0x279   : > { %v1220_v49 = vpop.permute.xlu1 %1219  ;;  %v1301_v50 = vpop.permute.xlu0 %1300 }
 0x27a   : > { %v1317_v52 = vsel %vm15224_vm7, %v1299_v25, %v1301_v50  ;;  %v1318_v56 = vsel %vm15224_vm7, %v1301_v50, %v12474_v31  ;;  %v1321_v31 = vsel %vm15224_vm7, %v12510_v40, %v12527_v45  ;;  %v1236_v25 = vsel %vm15226_vm15, %v1218_v24, %v1220_v49 }
 0x27b   : > { %11302 = vmatprep.subr.msk.mxu0 %vm15232_vm10, %v1318_v56  ;;  %v1237_v27 = vsel %vm15226_vm15, %v1220_v49, %v12476_v32  ;;  %v366_v40 = vand.u32 31, %v358_v57  ;;  %v1276_v45 = vsel %vm15233_vm4, %v12538_v47, %v12618_v11  ;;  %v1275_v56 = vsel %vm15233_vm4, %v12546_v51, %v12538_v47 }
 0x27c   : > { %11303 = vmatpush1.msk.msra.mxu0 %vm15232_vm10, %v1317_v52  ;;  %v1241_v52 = vsel %vm15226_vm15, %v12534_v46, %v12610_v8  ;;  %v15414_v47 = vmov 0 }
 0x27d   : > { %v1255_v17 = vpop.permute.xlu1 %1254  ;;  %11304 = vmatmul.mubr.msk.f32.vlgmr.msra.gmra.mxu0 %vm15235_vm12, %v12525_v44  ;;  %11308 = vmatprep.subr.msk.mxu0 %vm15232_vm10, %v1322_v1  ;;  %v1292_v1 = vsel %vm12695_vm9, %v1241_v52, %v1276_v45  ;;  %vm12717_vm8 = vcmp.eq.s32.totalorder %v366_v40, 0  ;;  %v15415_v47 = vsel %vm12722_vm0, 4294967295, %v15414_v47  ;;  %v1954_v43 = vsel %vm12742_vm13, %v1276_v45, %v1241_v52 }
 0x27e   : > { %v1271_v41 = vsel %vm15233_vm4, %v1253_v29, %v1255_v17  ;;  %v1272_v50 = vsel %vm15233_vm4, %v1255_v17, %v12484_v34  ;;  %11309 = vmatpush1.msk.msra.mxu0 %vm15232_vm10, %v1321_v31  ;;  %1552 = vmatprep.mubr.f32.mxu0 %v15217_v9  ;;  %v15408_v29 = vmov 0  ;;  %v12715_v31 = vld [vmem:[%s15196_s3] sm:$0xf]  ;;  %v15411_v17 = vmov 0  ;;  %15416 = vst [vmem:[#allocation9_spill] sm:$0xff] %v15415_v47 }
 0x27f   : > { %v1288_v24 = vsel %vm12666_vm6, %v1237_v27, %v1272_v50  ;;  %v1287_v49 = vsel %vm12670_vm14, %v1236_v25, %v1271_v41  ;;  %v15409_v29 = vsel %vm12695_vm9, 4294967295, %v15408_v29  ;;  %v15412_v17 = vsel %vm12717_vm8, 4294967295, %v15411_v17 }
 0x280   : > { %15410 = vst [vmem:[#allocation7_spill] sm:$0xff] %v15409_v29  ;;  %11314 = vmatprep.subr.msk.mxu0 %vm15232_vm10, %v1288_v24  ;;  %15413 = vst [vmem:[#allocation8_spill] sm:$0xff] %v15412_v17  ;;  %v1240_v24 = vsel %vm15226_vm15, %v12540_v48, %v12534_v46  ;;  %v1950_v20 = vsel %vm12722_vm0, %v1272_v50, %v1237_v27  ;;  %v15420_v46 = vmov 0  ;;  %vm12759_vm1 = vcmp.eq.s32.totalorder %v366_v40, 31 }
 0x281   : > { %11310 = vmatmul.mubr.msk.f32.vlgmr.msra.gmra.mxu0 %vm15235_vm12, %v12525_v44  ;;  %v2295_v57 = vpop.permute.xlu1 %2294  ;;  %v15421_v46 = vsel %vm12742_vm13, 4294967295, %v15420_v46  ;;  %v15424_v60 = vsel %vm12759_vm1, 4294967295, %v15423_v60  ;;  %v12783_v45 = vsel %vm15223_vm3, %v12564_v59, %v12632_v15 }
 0x282   : > { %11315 = vmatpush1.msk.msra.mxu0 %vm15232_vm10, %v1287_v49  ;;  %1721 = vmatprep.mubr.f32.mxu0 %v15217_v9  ;;  %v1291_v49 = vsel %vm12717_vm8, %v1240_v24, %v1275_v56  ;;  %15422 = vst [vmem:[#allocation11_spill] sm:$0xff] %v15421_v46  ;;  %15425 = vst [vmem:[#allocation12_spill] sm:$0xff] %v15424_v60  ;;  %v2312_v27 = vsel %vm15216_vm2, %v2295_v57, %v12496_v37 }
 0x283   : > { %11320 = vmatprep.subr.msk.mxu0 %vm15232_vm10, %v1292_v1  ;;  %v12788_v52 = vsel %vm15216_vm2, %v12646_v28, %v2295_v57  ;;  %v12806_v28 = vpop.permute.xlu0 %3390 }
 0x285   : > { %11316 = vmatmul.mubr.msk.f32.vlgmr.msra.gmra.mxu0 %vm15235_vm12, %v12715_v31  ;;  %v2330_v1 = vpop.permute.xlu1 %2329 }
 0x286   : > { %11321 = vmatpush1.msk.msra.mxu0 %vm15232_vm10, %v1291_v49  ;;  %1863 = vmatprep.mubr.f32.mxu0 %v15217_v9  ;;  %v1949_v49 = vsel %vm12737_vm11, %v1271_v41, %v1236_v25  ;;  %v2347_v25 = vsel %vm15223_vm3, %v2330_v1, %v12504_v39  ;;  %v1953_v41 = vsel %vm12759_vm1, %v1275_v56, %v1240_v24 }
 0x287   : > { %11327 = vmatprep.subr.msk.mxu0 %vm15232_vm10, %v1950_v20  ;;  %v12757_v20 = vld [vmem:[%s15196_s3 + $0x8] sm:$0xf]  ;;  %v12774_v50 = vsel %vm15223_vm3, %v12653_v35, %v2330_v1  ;;  %v2363_v40 = vsel %vm12666_vm6, %v2312_v27, %v2347_v25  ;;  %v12793_v35 = vsel %vm15216_vm2, %v12556_v55, %v12624_v13  ;;  %v12804_v24 = vsel %vm15223_vm3, %v12562_v58, %v12564_v59  ;;  %v12817_v1 = vld [vmem:[%s15196_s3 + $0xc] sm:$0xf] }
 0x288   : > { %v2362_v56 = vsel %vm12670_vm14, %v12788_v52, %v12774_v50  ;;  %v2367_v57 = vsel %vm12695_vm9, %v12793_v35, %v12783_v45  ;;  %v12823_v59 = vsel %vm15216_vm2, %v12554_v54, %v12556_v55 }
 0x289   : > { %11322 = vmatmul.mubr.msk.f32.vlgmr.msra.gmra.mxu0 %vm15235_vm12, %v12715_v31 }
 0x28a   : > { %11328 = vmatpush1.msk.msra.mxu0 %vm15232_vm10, %v1949_v49  ;;  %2050 = vmatprep.mubr.f32.mxu0 %v15217_v9  ;;  %v2710_v49 = vpop.permute.xlu1 %2709 }
 0x28b   : > { %11333 = vmatprep.subr.msk.mxu0 %vm15232_vm10, %v1954_v43  ;;  %v12826_v43 = vadd.s32 384, %v12648_v30  ;;  %v2727_v55 = vsel %vm15225_vm5, %v2710_v49, %v12570_v61  ;;  %v2726_v21 = vsel %vm15225_vm5, %v12651_v26, %v2710_v49  ;;  %v12862_v26 = vadd.s32 896, %v12648_v30 }
 0x28d   : > { %11329 = vmatmul.mubr.msk.f32.vlgmr.msra.gmra.mxu0 %vm15235_vm12, %v12757_v20 }
 0x28e   : > { %11334 = vmatpush1.msk.msra.mxu0 %vm15232_vm10, %v1953_v41  ;;  %2192 = vmatprep.mubr.f32.mxu0 %v15217_v9  ;;  %v2366_v41 = vsel %vm12717_vm8, %v12823_v59, %v12804_v24  ;;  %v12869_v49 = vpop.permute.xlu1 %3431 }
 0x28f   : > { %11340 = vmatprep.subr.msk.mxu0 %vm15232_vm10, %v2363_v40  ;;  %v12835_v40 = vadd.s32 256, %v12648_v30  ;;  %v15430_v30 = vmov 0 }
 0x291   : > { %11335 = vmatmul.mubr.msk.f32.vlgmr.msra.gmra.mxu0 %vm15235_vm12, %v12757_v20  ;;  %v15429_v29 = vand.u32 31, %v12835_v40 }
 0x292   : > { %11341 = vmatpush1.msk.msra.mxu0 %vm15232_vm10, %v2362_v56  ;;  %2463 = vmatprep.mubr.f32.mxu0 %v15217_v9  ;;  %v12842_v56 = vpop.permute.xlu0 %3425 }
 0x293   : > { %11346 = vmatprep.subr.msk.mxu0 %vm15232_vm10, %v2367_v57  ;;  %v365_v57 = vand.u32 31, %v12826_v43  ;;  %v12858_v43 = vld [vmem:[%s15196_s3 + $0x10] sm:$0xf]  ;;  %vm12892_vm3 = vcmp.eq.s32.totalorder %v15429_v29, 0  ;;  %v1238_v29 = vsel %vm15226_vm15, %v12476_v32, %v12482_v33 }
 0x294   : > { %v15431_v30 = vsel %vm12892_vm3, 4294967295, %v15430_v30 }
 0x295   : > { %11342 = vmatmul.mubr.msk.f32.vlgmr.msra.gmra.mxu0 %vm15235_vm12, %v12817_v1  ;;  %vm12871_vm2 = vcmp.eq.s32.totalorder %v365_v57, 0  ;;  %15432 = vst [vmem:[#allocation14_spill] sm:$0xff] %v15431_v30 }
 0x296   : > { %11347 = vmatpush1.msk.msra.mxu0 %vm15232_vm10, %v2366_v41  ;;  %2605 = vmatprep.mubr.f32.mxu0 %v15217_v9  ;;  %v2731_v41 = vsel %vm15225_vm5, %v12587_v2, %v12606_v7 }
 0x297   : > { %11353 = vmatprep.subr.msk.mxu0 %vm15232_vm10, %v2727_v55 }
 0x299   : > { %11348 = vmatmul.mubr.msk.f32.vlgmr.msra.gmra.mxu0 %vm15235_vm12, %v12817_v1 }
 0x29a   : > { %11354 = vmatpush1.msk.msra.mxu0 %vm15232_vm10, %v2726_v21  ;;  %2817 = vmatprep.mubr.f32.mxu0 %v15217_v9  ;;  %v12867_v21 = vsel %vm15233_vm4, %v12494_v36, %v12546_v51  ;;  %v15426_v9 = vmov 0  ;;  %v2730_v51 = vsel %vm15225_vm5, %v12578_v63, %v12587_v2  ;;  %v3046_v2 = vsel %vm12722_vm0, %v2347_v25, %v2312_v27  ;;  %v3424_v25 = vpop.permute.xlu1 %3423  ;;  %v12940_v27 = vld [vmem:[%s15196_s3 + $0x14] sm:$0xf] }
 0x29b   : > { %11359 = vmatprep.subr.msk.mxu0 %vm15232_vm10, %v2731_v41  ;;  %v15427_v9 = vsel %vm12871_vm2, 4294967295, %v15426_v9  ;;  %v12881_v41 = vsel %vm15233_vm4, %v12484_v34, %v12494_v36  ;;  %v1239_v34 = vsel %vm15226_vm15, %v12482_v33, %v12540_v48  ;;  %v1323_v36 = vsel %vm15224_vm7, %v12604_v6, %v12612_v10 }
 0x29c   : > { %v1315_v55 = vpop.permute.xlu0 %1314  ;;  %15428 = vst [vmem:[#allocation13_spill] sm:$0xff] %v15427_v9  ;;  %v1290_v48 = vsel %vm12871_vm2, %v1239_v34, %v12867_v21  ;;  %v369_v6 = vand.u32 31, %v12862_v26  ;;  %v1289_v32 = vsel %vm12892_vm3, %v1238_v29, %v12881_v41  ;;  %v368_v33 = vand.u32 31, %v12876_v4 }
 0x29d   : > { %v1324_v17 = vsel %vm15224_vm7, %v12612_v10, %v1315_v55  ;;  %11355 = vmatmul.mubr.msk.f32.vlgmr.msra.gmra.mxu0 %vm15235_vm12, %v12858_v43  ;;  %vm15231_vm7 = vcmask 515072   ;;  %v3050_v4 = vsel %vm12742_vm13, %v12783_v45, %v12793_v35  ;;  %v15434_v26 = vmov 0 }
 0x29e   : > { %11360 = vmatpush1.msk.msra.mxu0 %vm15232_vm10, %v2730_v51  ;;  %11311 = vmatprep.subr.msk.mxu1 %vm15232_vm10, %v1324_v17  ;;  %v15433_v17 = vmov 0.0   ;;  %vm12942_vm5 = vcmp.eq.s32.totalorder %v369_v6, 0  ;;  %vm12957_vm15 = vcmp.eq.s32.totalorder %v368_v33, 0  ;;  %v15437_v35 = vmov 0 }
 0x29f   : > { %11366 = vmatprep.subr.msk.mxu0 %vm15232_vm10, %v3046_v2  ;;  %11312 = vmatpush1.msk.msra.mxu1 %vm15232_vm10, %v1323_v36  ;;  %v15435_v26 = vsel %vm12942_vm5, 4294967295, %v15434_v26  ;;  %v15438_v35 = vsel %vm12957_vm15, 4294967295, %v15437_v35  ;;  %vm15234_vm13 = vcmask 498688   ;;  %v15441_v51 = vmov 0 }
 0x2a0   : > { %11313 = vmatmul.mubr.msk.f32.vlgmr.msra.gmra.mxu1 %vm15235_vm12, %v12525_v44  ;;  %11317 = vmatprep.subr.msk.mxu1 %vm15232_vm10, %v1290_v48  ;;  %v1234_v10 = vpop.permute.xlu0 %1233  ;;  %v3045_v44 = vsel %vm12737_vm11, %v12774_v50, %v12788_v52  ;;  %15436 = vst [vmem:[#allocation15_spill] sm:$0xff] %v15435_v26  ;;  %v1277_v50 = vsel %vm15233_vm4, %v12618_v11, %v12626_v14  ;;  %15439 = vst [vmem:[#allocation16_spill] sm:$0xff] %v15438_v35  ;;  %vm15440_vm11 = vcmask 1022976   ;;  %v15447_v48 = vand.u32 31, %v12835_v40 }
 0x2a1   : > { %2959 = vmatprep.mubr.f32.mxu0 %v15433_v17  ;;  %11318 = vmatpush1.msk.msra.mxu1 %vm15232_vm10, %v1289_v32  ;;  %v12952_v52 = vsel %vm15231_vm7, %v12842_v56, %v12598_v5  ;;  %v1243_v55 = vsel %vm15440_vm11, %v12620_v12, %v1234_v10  ;;  %vm12966_vm7 = vcmp.eq.s32.totalorder %v365_v57, 31  ;;  %v12976_v2 = vsel %vm15234_vm13, %v12806_v28, %v12580_v0 }
 0x2a2   : > { %11361 = vmatmul.mubr.msk.f32.vlgmr.msra.gmra.mxu0 %vm15235_vm12, %v12858_v43  ;;  %1792 = vmatprep.mubr.f32.mxu1 %v15433_v17  ;;  %v15442_v51 = vsel %vm12966_vm7, 4294967295, %v15441_v51  ;;  %v15448_v10 = vmov 0  ;;  %v15453_v32 = vmov 0  ;;  %v1952_v40 = vsel %vm12966_vm7, %v12867_v21, %v1239_v34 }
 0x2a3   : > { %11367 = vmatpush1.msk.msra.mxu0 %vm15232_vm10, %v3045_v44  ;;  %3146 = vmatprep.mubr.f32.mxu0 %v15433_v17  ;;  %15443 = vst [vmem:[#allocation17_spill] sm:$0xff] %v15442_v51  ;;  %v15459_v44 = vmov 0  ;;  %vm15466_vm0 = vcmask 515072  }
 0x2a4   : > { %11372 = vmatprep.subr.msk.mxu0 %vm15232_vm10, %v3050_v4  ;;  %11319 = vmatmul.mubr.msk.f32.vlgmr.msra.gmra.mxu1 %vm15235_vm12, %v12715_v31  ;;  %v1269_v45 = vpop.permute.xlu0 %1268  ;;  %vm15444_vm10 = vmmov %vm15440_vm11  ;;  %vm15445_vm11 = vcmask 1043456   ;;  %v13053_v4 = vld [vmem:[%s15196_s3 + $0x18] sm:$0xf] }
 0x2a5   : > { %v1278_v11 = vsel %vm15233_vm4, %v12626_v14, %v1269_v45  ;;  %1934 = vmatprep.mubr.f32.mxu1 %v15433_v17  ;;  %v1242_v36 = vsel %vm15444_vm10, %v12610_v8, %v12620_v12  ;;  %v3049_v14 = vsel %vm12759_vm1, %v12804_v24, %v12823_v59  ;;  %v3459_v8 = vsel %vm12666_vm6, %v12976_v2, %v12952_v52  ;;  %vm15446_vm10 = vmmov %vm15445_vm11  ;;  %v13000_v24 = vpop.permute.xlu1 %3400 }
 0x2a6   : > { %11368 = vmatmul.mubr.msk.f32.vlgmr.msra.gmra.mxu0 %vm15235_vm12, %v12940_v27  ;;  %v1294_v57 = vsel %vm12942_vm5, %v1243_v55, %v1278_v11  ;;  %v1293_v12 = vsel %vm12957_vm15, %v1242_v36, %v1277_v50  ;;  %vm12996_vm4 = vcmp.eq.s32.totalorder %v15447_v48, 31  ;;  %vm15451_vm13 = vmmov %vm15446_vm10  ;;  %vm13006_vm12 = vcmp.eq.s32.totalorder %v369_v6, 31 }
 0x2a7   : > { %11373 = vmatpush1.msk.msra.mxu0 %vm15445_vm11, %v3049_v14  ;;  %11323 = vmatprep.subr.msk.mxu1 %vm15446_vm10, %v1294_v57  ;;  %v15449_v10 = vsel %vm12996_vm4, 4294967295, %v15448_v10  ;;  %vm15452_vm11 = vmmov %vm15446_vm10  ;;  %v15454_v32 = vsel %vm13006_vm12, 4294967295, %v15453_v32  ;;  %vm15456_vm10 = vcmask 31744   ;;  %v1951_v6 = vsel %vm12996_vm4, %v12881_v41, %v1238_v29 }
 0x2a8   : > { %15450 = vst [vmem:[#allocation18_spill] sm:$0xff] %v15449_v10  ;;  %11379 = vmatprep.subr.msk.mxu0 %vm15451_vm13, %v3459_v8  ;;  %11324 = vmatpush1.msk.msra.mxu1 %vm15452_vm11, %v1293_v12  ;;  %v13004_v59 = vpop.permute.xlu0 %3429  ;;  %15455 = vst [vmem:[#allocation19_spill] sm:$0xff] %v15454_v32  ;;  %v1956_v21 = vsel %vm13006_vm12, %v1278_v11, %v1243_v55  ;;  %v13040_v29 = vsel %vm15466_vm0, %v3424_v25, %v12842_v56  ;;  %vm15470_vm0 = vcmask 1043456  }
 0x2a9   : > { %3288 = vmatprep.mubr.f32.mxu0 %v15433_v17  ;;  %11325 = vmatmul.mubr.msk.f32.vlgmr.msra.gmra.mxu1 %vm15456_vm10, %v12715_v31  ;;  %vm15457_vm6 = vmmov %vm15452_vm11  ;;  %vm13022_vm11 = vcmp.eq.s32.totalorder %v368_v33, 31  ;;  %v13058_v56 = vpop.permute.xlu1 %3435 }
 0x2aa   : > { %11330 = vmatprep.subr.msk.mxu1 %vm15457_vm6, %v1952_v40  ;;  %vm15458_vm13 = vmmov %vm15456_vm10  ;;  %v15460_v44 = vsel %vm13022_vm11, 4294967295, %v15459_v44  ;;  %vm15462_vm10 = vcmask 777216   ;;  %2121 = vmatprep.mubr.f32.mxu1 %v15433_v17  ;;  %v1955_v33 = vsel %vm13022_vm11, %v1277_v50, %v1242_v36 }
 0x2ab   : > { %11374 = vmatmul.mubr.msk.f32.vlgmr.msra.gmra.mxu0 %vm15458_vm13, %v12940_v27  ;;  %15461 = vst [vmem:[#allocation20_spill] sm:$0xff] %v15460_v44  ;;  %v2349_v31 = vsel %vm15462_vm10, %v12550_v53, %v12562_v58  ;;  %vm15463_vm1 = vmmov %vm15457_vm6  ;;  %vm15465_vm13 = vcmask 760832   ;;  %vm15468_vm10 = vcmask 31744  }
 0x2ac   : > { %11331 = vmatpush1.msk.msra.mxu1 %vm15463_vm1, %v1951_v6  ;;  %vm15464_vm6 = vmmov %vm15463_vm1  ;;  %v3389_v34 = vpop.permute.xlu0 %3388  ;;  %3559 = vmatprep.mubr.f32.mxu0 %v15433_v17  ;;  %v2314_v41 = vsel %vm15465_vm13, %v12502_v38, %v12554_v54  ;;  %vm15467_vm1 = vcmask 498688  }
 0x2ad   : > { %11336 = vmatprep.subr.msk.mxu1 %vm15464_vm6, %v1956_v21  ;;  %v13044_v58 = vsel %vm15467_vm1, %v3389_v34, %v12806_v28  ;;  %11332 = vmatmul.mubr.msk.f32.vlgmr.msra.gmra.mxu1 %vm15468_vm10, %v12757_v20  ;;  %vm15469_vm6 = vcmask 777216   ;;  %v2365_v25 = vsel %vm12871_vm2, %v2314_v41, %v2349_v31  ;;  %vm15471_vm13 = vmmov %vm15470_vm0  ;;  %vm15473_vm10 = vcmask 760832  }
 0x2ae   : > { %v2348_v54 = vsel %vm15469_vm6, %v12504_v39, %v12550_v53  ;;  %v3458_v28 = vsel %vm12670_vm14, %v13044_v58, %v13040_v29  ;;  %11337 = vmatpush1.msk.msra.mxu1 %vm15470_vm0, %v1955_v33  ;;  %2263 = vmatprep.mubr.f32.mxu1 %v15433_v17  ;;  %vm15472_vm1 = vmmov %vm15470_vm0  ;;  %v2313_v39 = vsel %vm15473_vm10, %v12496_v37, %v12502_v38  ;;  %vm15474_vm6 = vcmask 31744   ;;  %v2724_v38 = vpop.permute.xlu1 %2723 }
 0x2af   : > { %11343 = vmatprep.subr.msk.mxu1 %vm15471_vm13, %v2365_v25  ;;  %11380 = vmatpush1.msk.msra.mxu0 %vm15472_vm1, %v3458_v28  ;;  %vm15475_vm14 = vmmov %vm15474_vm6  ;;  %v2364_v50 = vsel %vm12892_vm3, %v2313_v39, %v2348_v54  ;;  %vm15476_vm13 = vcmask 777216   ;;  %v3047_v12 = vsel %vm12996_vm4, %v2348_v54, %v2313_v39  ;;  %v15502_v54 = vld [vmem:[#allocation4_spill] sm:$0xff] }
 0x2b0   : > { %11381 = vmatmul.mubr.msk.f32.vlgmr.msra.gmra.mxu0 %vm15474_vm6, %v13053_v4  ;;  %v2309_v53 = vpop.permute.xlu0 %2308  ;;  %v2352_v37 = vsel %vm15476_vm13, %v12632_v15, %v12644_v23  ;;  %vm15477_vm1 = vmmov %vm15473_vm10 }
 0x2b1   : > { %11338 = vmatmul.mubr.msk.f32.vlgmr.msra.gmra.mxu1 %vm15475_vm14, %v12757_v20  ;;  %3701 = vmatprep.mubr.f32.mxu0 %v15433_v17  ;;  %v2318_v55 = vsel %vm15477_vm1, %v12634_v16, %v2309_v53  ;;  %vm15478_vm14 = vmmov %vm15476_vm13 }
 0x2b2   : > { %11344 = vmatpush1.msk.msra.mxu1 %vm15470_vm0, %v2364_v50  ;;  %2534 = vmatprep.mubr.f32.mxu1 %v15433_v17  ;;  %vm15479_vm10 = vmmov %vm15474_vm6  ;;  %v13112_v57 = vpop.permute.xlu1 %3807 }
 0x2b3   : > { %vm15480_vm6 = vmmov %vm15477_vm1  ;;  %vm15482_vm1 = vcmask 769024  }
 0x2b4   : > { %v2344_v45 = vpop.permute.xlu0 %2343  ;;  %v2317_v11 = vsel %vm15480_vm6, %v12624_v13, %v12634_v16  ;;  %vm15481_vm13 = vmmov %vm15470_vm0  ;;  %v2729_v14 = vsel %vm15482_vm1, %v12572_v62, %v12578_v63 }
 0x2b5   : > { %v2353_v20 = vsel %vm15478_vm14, %v12644_v23, %v2344_v45  ;;  %11345 = vmatmul.mubr.msk.f32.vlgmr.msra.gmra.mxu1 %vm15479_vm10, %v12817_v1  ;;  %v2368_v15 = vsel %vm12957_vm15, %v2317_v11, %v2352_v37  ;;  %vm15483_vm14 = vmmov %vm15482_vm1  ;;  %v3051_v25 = vsel %vm13022_vm11, %v2352_v37, %v2317_v11 }
 0x2b6   : > { %v2369_v36 = vsel %vm12942_vm5, %v2318_v55, %v2353_v20  ;;  %2676 = vmatprep.mubr.f32.mxu1 %v15433_v17  ;;  %v2728_v13 = vsel %vm15483_vm14, %v12570_v61, %v12572_v62  ;;  %vm15484_vm6 = vmmov %vm15470_vm0  ;;  %v3048_v62 = vsel %vm12966_vm7, %v2349_v31, %v2314_v41  ;;  %v3052_v6 = vsel %vm13006_vm12, %v2353_v20, %v2318_v55 }
 0x2b7   : > { %11349 = vmatprep.subr.msk.mxu1 %vm15470_vm0, %v2369_v36  ;;  %vm15485_vm0 = vmmov %vm15482_vm1 }
 0x2b8   : > { %11350 = vmatpush1.msk.msra.mxu1 %vm15481_vm13, %v2368_v15  ;;  %v3399_v23 = vpop.permute.xlu0 %3398  ;;  %v2733_v16 = vsel %vm15485_vm0, %v12642_v22, %v2724_v38  ;;  %vm15486_vm13 = vmmov %vm15484_vm6 }
 0x2b9   : > { %11351 = vmatmul.mubr.msk.f32.vlgmr.msra.gmra.mxu1 %vm15479_vm10, %v12817_v1  ;;  %11356 = vmatprep.subr.msk.mxu1 %vm15484_vm6, %v2729_v14  ;;  %vm15487_vm15 = vmmov %vm15484_vm6  ;;  %v3405_v1 = vpop.permute.xlu1 %3404 }
 0x2ba   : > { %11357 = vmatpush1.msk.msra.mxu1 %vm15486_vm13, %v2728_v13  ;;  %2888 = vmatprep.mubr.f32.mxu1 %v15433_v17  ;;  %vm15488_vm1 = vmmov %vm15485_vm0  ;;  %vm15493_vm13 = vcmask 515072  }
 0x2bb   : > { %11362 = vmatprep.subr.msk.mxu1 %vm15487_vm15, %v2733_v16  ;;  %v2732_v61 = vsel %vm15488_vm1, %v12606_v7, %v12642_v22  ;;  %vm15489_vm14 = vmmov %vm15479_vm10  ;;  %vm15491_vm15 = vcmask 498688  }
 0x2bc   : > { %v3403_v63 = vpop.permute.xlu0 %3402  ;;  %vm15490_vm10 = vmmov %vm15484_vm6  ;;  %v13131_v7 = vsel %vm15491_vm15, %v12589_v3, %v3399_v23 }
 0x2bd   : > { %11358 = vmatmul.mubr.msk.f32.vlgmr.msra.gmra.mxu1 %vm15489_vm14, %v12858_v43  ;;  %vm15492_vm0 = vmmov %vm15491_vm15  ;;  %v3440_v39 = vpop.permute.xlu1 %3439 }
 0x2be   : > { %11363 = vmatpush1.msk.msra.mxu1 %vm15490_vm10, %v2732_v61  ;;  %3030 = vmatprep.mubr.f32.mxu1 %v15433_v17  ;;  %v13135_v22 = vsel %vm15492_vm0, %v3399_v23, %v13000_v24  ;;  %vm15494_vm1 = vmmov %vm15493_vm13 }
 0x2bf   : > { %11369 = vmatprep.subr.msk.mxu1 %vm15484_vm6, %v3048_v62  ;;  %vm15495_vm10 = vmmov %vm15484_vm6 }
 0x2c0   : > { %v3434_v8 = vpop.permute.xlu0 %3433  ;;  %vm15498_vm6 = vmmov %vm15494_vm1 }
 0x2c1   : > { %v13139_v48 = vsel %vm15493_vm13, %v12869_v49, %v3434_v8  ;;  %v13143_v40 = vsel %vm15494_vm1, %v3434_v8, %v13058_v56  ;;  %11364 = vmatmul.mubr.msk.f32.vlgmr.msra.gmra.mxu1 %vm15489_vm14, %v12858_v43  ;;  %v13162_v43 = vsel %vm15498_vm6, %v13004_v59, %v12869_v49  ;;  %vm15499_vm15 = vmmov %vm15495_vm10  ;;  %vm15503_vm1 = vcmask 498688  }
 0x2c2   : > { %11370 = vmatpush1.msk.msra.mxu1 %vm15495_vm10, %v3047_v12  ;;  %v3463_v21 = vsel %vm12695_vm9, %v13135_v22, %v13143_v40  ;;  %3217 = vmatprep.mubr.f32.mxu1 %v15433_v17  ;;  %v3462_v41 = vsel %vm12717_vm8, %v13131_v7, %v13139_v48  ;;  %vm15500_vm0 = vmmov %vm15495_vm10  ;;  %v13170_v28 = vsel %vm15503_vm1, %v15502_v54, %v12589_v3 }
 0x2c3   : > { %11375 = vmatprep.subr.msk.mxu1 %vm15499_vm15, %v3052_v6  ;;  %11385 = vmatprep.subr.msk.mxu0 %vm15500_vm0, %v3463_v21  ;;  %vm15501_vm13 = vmmov %vm15500_vm0  ;;  %v13181_v49 = vsel %vm15498_vm6, %v12598_v5, %v13004_v59  ;;  %v3461_v3 = vsel %vm12871_vm2, %v13170_v28, %v13162_v43  ;;  %v13197_v5 = vsel %vm15503_vm1, %v12580_v0, %v15502_v54 }
 0x2c4   : > { %11386 = vmatpush1.msk.msra.mxu0 %vm15501_vm13, %v3462_v41  ;;  %v3438_v33 = vpop.permute.xlu0 %3437  ;;  %vm15504_vm10 = vmmov %vm15489_vm14  ;;  %v3460_v37 = vsel %vm12892_vm3, %v13197_v5, %v13181_v49  ;;  %vm15532_vm2 = vnez %v15424_v60  ;;  %v4143_v12 = vsel %vm12996_vm4, %v13181_v49, %v13197_v5 }
 0x2c5   : > { %11371 = vmatmul.mubr.msk.f32.vlgmr.msra.gmra.mxu1 %vm15489_vm14, %v12940_v27  ;;  %11387 = vmatmul.mubr.msk.f32.vlgmr.msra.gmra.mxu0 %vm15504_vm10, %v13053_v4  ;;  %vm15505_vm15 = vmmov %vm15500_vm0  ;;  %vm15252_vm14 = vcmask 506880   ;;  %v4145_v8 = vsel %vm15532_vm2, %v13139_v48, %v13131_v7 }
 0x2c6   : > { %11376 = vmatpush1.msk.msra.mxu1 %vm15505_vm15, %v3051_v25  ;;  %3359 = vmatprep.mubr.f32.mxu1 %v15433_v17  ;;  %vm15506_vm0 = vmmov %vm15498_vm6  ;;  %vm15508_vm6 = vcmask 31744  }
 0x2c7   : > { %v13190_v53 = vsel %vm15506_vm0, %v3438_v33, %v3440_v39  ;;  %11382 = vmatprep.subr.msk.mxu1 %vm15501_vm13, %v3461_v3  ;;  %3913 = vmatprep.mubr.f32.mxu0 %v15433_v17  ;;  %vm15507_vm10 = vmmov %vm15503_vm1 }
 0x2c8   : > { %v3806_v59 = vpop.permute.xlu0 %3805  ;;  %v13200_v50 = vsel %vm15507_vm10, %v3403_v63, %v3405_v1  ;;  %vm15509_vm15 = vmmov %vm15506_vm0  ;;  %v3413_v55 = vsel %vm15507_vm10, %v13000_v24, %v3403_v63  ;;  %v11391_v24 = vld [vmem:[%s15196_s3 + $0x1c] sm:$0xf] }
 0x2c9   : > { %11377 = vmatmul.mubr.msk.f32.vlgmr.msra.gmra.mxu1 %vm15508_vm6, %v12940_v27  ;;  %v3823_v38 = vsel %vm15252_vm14, %v3806_v59, %v13112_v57  ;;  %v13212_v0 = vsel %vm15509_vm15, %v13058_v56, %v3438_v33  ;;  %vm15510_vm0 = vmmov %vm15501_vm13  ;;  %v3465_v45 = vsel %vm12942_vm5, %v13200_v50, %v13190_v53  ;;  %v3812_v27 = vpop.permute.xlu1 %3811  ;;  %vm15513_vm15 = vnez %v15438_v35 }
 0x2ca   : > { %11383 = vmatpush1.msk.msra.mxu1 %vm15510_vm0, %v3460_v37  ;;  %vm15511_vm13 = vmmov %vm15510_vm0  ;;  %3630 = vmatprep.mubr.f32.mxu1 %v15433_v17  ;;  %v3464_v56 = vsel %vm15513_vm15, %v3413_v55, %v13212_v0  ;;  %v4147_v7 = vsel %vm13022_vm11, %v13212_v0, %v3413_v55 }
 0x2cb   : > { %11392 = vmatprep.subr.msk.mxu0 %vm15511_vm13, %v3823_v38  ;;  %vm15512_vm1 = vmmov %vm15510_vm0 }
 0x2cc   : > { %11388 = vmatprep.subr.msk.mxu1 %vm15512_vm1, %v3465_v45  ;;  %v3810_v20 = vpop.permute.xlu0 %3809  ;;  %vm15514_vm13 = vmmov %vm15510_vm0 }
 0x2cd   : > { %11384 = vmatmul.mubr.msk.f32.vlgmr.msra.gmra.mxu1 %vm15508_vm6, %v13053_v4  ;;  %v3825_v11 = vsel %vm15252_vm14, %v3810_v20, %v3812_v27  ;;  %v3824_v15 = vsel %vm15252_vm14, %v13112_v57, %v3810_v20  ;;  %vm15515_vm1 = vmmov %vm15508_vm6  ;;  %v3814_v14 = vpop.permute.xlu1 %3813 }
 0x2ce   : > { %11389 = vmatpush1.msk.msra.mxu1 %vm15510_vm0, %v3464_v56  ;;  %3772 = vmatprep.mubr.f32.mxu1 %v15433_v17  ;;  %vm15516_vm10 = vmmov %vm15510_vm0  ;;  %v3826_v57 = vsel %vm15252_vm14, %v3812_v27, %v3814_v14 }
 0x2cf   : > { %11395 = vmatprep.subr.msk.mxu1 %vm15514_vm13, %v3825_v11  ;;  %vm15517_vm6 = vmmov %vm15510_vm0 }
 0x2d0   : > { %v3804_v36 = vpop.permute.xlu0 %3803  ;;  %vm15518_vm0 = vmmov %vm15515_vm1 }
 0x2d1   : > { %v3822_v23 = vsel %vm15252_vm14, %v3804_v36, %v3806_v59  ;;  %11390 = vmatmul.mubr.msk.f32.vlgmr.msra.gmra.mxu1 %vm15515_vm1, %v13053_v4  ;;  %vm15519_vm13 = vmmov %vm15518_vm0  ;;  %v3818_v61 = vpop.permute.xlu1 %3817 }
 0x2d2   : > { %11396 = vmatpush1.msk.msra.mxu1 %vm15516_vm10, %v3824_v15  ;;  %11393 = vmatpush1.msk.msra.mxu0 %vm15517_vm6, %v3822_v23  ;;  %vm15520_vm15 = vmmov %vm15517_vm6  ;;  %vm15522_vm10 = vnez %v15415_v47  ;;  %v1483_v3 = vpop.f32.mrf.mxu1 }
 0x2d3   : > { %11394 = vmatmul.mubr.msk.f32.vlgmr.msra.gmra.mxu0 %vm15518_vm0, %v11391_v24  ;;  %3984 = vmatprep.mubr.f32.mxu1 %v15433_v17  ;;  %vm15521_vm1 = vmmov %vm15517_vm6  ;;  %v4142_v4 = vsel %vm15522_vm10, %v12952_v52, %v12976_v2  ;;  %vm15523_vm6 = vnez %v15418_v42  ;;  %v11404_v2 = vld [vmem:[%s15196_s3 + $0x20] sm:$0xf] }
 0x2d4   : > { %v3816_v13 = vpop.permute.xlu0 %3815  ;;  %4055 = vmatprep.mubr.f32.mxu0 %v15433_v17  ;;  %v4141_v63 = vsel %vm15523_vm6, %v13040_v29, %v13044_v58  ;;  %v4144_v58 = vsel %vm12966_vm7, %v13162_v43, %v13170_v28  ;;  %v1485_v5 = vpop.f32.mrf.mxu1 }
 0x2d5   : > { %11397 = vmatmul.mubr.msk.f32.vlgmr.msra.gmra.mxu1 %vm15519_vm13, %v11391_v24  ;;  %v3827_v16 = vsel %vm15252_vm14, %v3814_v14, %v3816_v13  ;;  %vm15524_vm13 = vmmov %vm15521_vm1  ;;  %v3828_v29 = vsel %vm15252_vm14, %v3816_v13, %v3818_v61 }
 0x2d6   : > { %11398 = vmatprep.subr.msk.mxu0 %vm15520_vm15, %v3827_v16  ;;  %4126 = vmatprep.mubr.f32.mxu1 %v15433_v17  ;;  %vm15525_vm15 = vmmov %vm15521_vm1 }
 0x2d7   : > { %11399 = vmatpush1.msk.msra.mxu0 %vm15521_vm1, %v3826_v57  ;;  %vm15526_vm1 = vnez %v15421_v46 }
 0x2d8   : > { %11400 = vmatmul.mubr.msk.f32.vlgmr.msra.gmra.mxu0 %vm15518_vm0, %v11391_v24  ;;  %11405 = vmatprep.subr.msk.mxu0 %vm15524_vm13, %v4142_v4  ;;  %v3820_v62 = vpop.permute.xlu0 %3819  ;;  %v4146_v52 = vsel %vm15526_vm1, %v13143_v40, %v13135_v22  ;;  %vm15527_vm0 = vmmov %vm15524_vm13  ;;  %v4148_v22 = vsel %vm13006_vm12, %v13190_v53, %v13200_v50 }
 0x2d9   : > { %v3829_v1 = vsel %vm15252_vm14, %v3818_v61, %v3820_v62  ;;  %11406 = vmatpush1.msk.msra.mxu0 %vm15525_vm15, %v4141_v63  ;;  %4242 = vmatprep.mubr.f32.mxu0 %v15433_v17  ;;  %vm15528_vm13 = vmmov %vm15527_vm0  ;;  %vm15530_vm15 = vcmask 31744  }
 0x2da   : > { %11401 = vmatprep.subr.msk.mxu1 %vm15527_vm0, %v3829_v1  ;;  %11411 = vmatprep.subr.msk.mxu0 %vm15528_vm13, %v4146_v52  ;;  %vm15529_vm5 = vmmov %vm15527_vm0 }
 0x2db   : > { %11402 = vmatpush1.msk.msra.mxu1 %vm15529_vm5, %v3828_v29  ;;  %vm15531_vm3 = vmmov %vm15530_vm15 }
 0x2dc   : > { %11403 = vmatmul.mubr.msk.f32.vlgmr.msra.gmra.mxu1 %vm15530_vm15, %v11391_v24  ;;  %11407 = vmatmul.mubr.msk.f32.vlgmr.msra.gmra.mxu0 %vm15531_vm3, %v11404_v2  ;;  %vm15533_vm14 = vmmov %vm15527_vm0 }
 0x2dd   : > { %11408 = vmatprep.subr.msk.mxu1 %vm15533_vm14, %v4144_v58  ;;  %11412 = vmatpush1.msk.msra.mxu0 %vm15527_vm0, %v4145_v8  ;;  %vm15534_vm5 = vmmov %vm15527_vm0 }
 0x2de   : > { %11409 = vmatpush1.msk.msra.mxu1 %vm15534_vm5, %v4143_v12  ;;  %4313 = vmatprep.mubr.f32.mxu1 %v15433_v17  ;;  %vm15535_vm3 = vmmov %vm15527_vm0  ;;  %vm4541_vm5 = vcmask 1043728  }
 0x2df   : > { %11414 = vmatprep.subr.msk.mxu1 %vm15535_vm3, %v4148_v22  ;;  %4384 = vmatprep.mubr.f32.mxu0 %v15433_v17  ;;  %vm15536_vm14 = vmmov %vm15530_vm15  ;;  %vm4542_vm3 = vcmask 1047556  }
 0x2e0   : > { %11410 = vmatmul.mubr.msk.f32.vlgmr.msra.gmra.mxu1 %vm15536_vm14, %v11404_v2  ;;  %vm15537_vm13 = vmmov %vm15536_vm14  ;;  %vm15285_vm14 = vcmask 277504  }
 0x2e1   : > { %11413 = vmatmul.mubr.msk.f32.vlgmr.msra.gmra.mxu0 %vm15537_vm13, %v11404_v2  ;;  %vm15538_vm15 = vmmov %vm15527_vm0  ;;  %4455 = vmatprep.mubr.f32.mxu1 %v15433_v17 }
 0x2e2   : > { %11415 = vmatpush1.msk.msra.mxu1 %vm15538_vm15, %v4147_v7  ;;  %4766 = vmatprep.mubr.f32.mxu0 %v15433_v17  ;;  %vm15539_vm0 = vmmov %vm15537_vm13  ;;  %vm15284_vm15 = vcmask 273408  }
 0x2e3   : > { %vm13341_vm13 = vmor %vm4542_vm3, %vm4541_vm5  ;;  %vm15551_vm3 = vcmask 1031168  }
 0x2e4   : > { %11416 = vmatmul.mubr.msk.f32.vlgmr.msra.gmra.mxu1 %vm15539_vm0, %v11404_v2  ;;  %vm15547_vm0 = vcmask 1043456  }
 0x2e5   : > { %4837 = vmatprep.mubr.f32.mxu1 %v15433_v17  ;;  %vm15548_vm11 = vmmov %vm15547_vm0 }
 0x2e6   : > { %vm15549_vm5 = vmmov %vm15547_vm0 }
 0x33d   : > { %v1412_v48 = vpop.f32.mrf.mxu0 }
 0x33f   : > { %v1414_v40 = vpop.f32.mrf.mxu0 }
 0x341   : > { %v1554_v6 = vpop.f32.mrf.mxu0 }
 0x343   : > { %v1556_v21 = vpop.f32.mrf.mxu0 }
 0x345   : > { %v1723_v41 = vpop.f32.mrf.mxu0 }
 0x346   : > { %v1724_v22 = vadd.f32 %v1723_v41, %v1412_v48 }
 0x347   : > { %v1725_v43 = vpop.f32.mrf.mxu0 }
 0x348   : > { %v1726_v10 = vadd.f32 %v1725_v43, %v1414_v40 }
 0x349   : > { %v1865_v33 = vpop.f32.mrf.mxu0 }
 0x34a   : > { %v1866_v51 = vadd.f32 %v1865_v33, %v1554_v6 }
 0x34b   : > { %v1867_v54 = vpop.f32.mrf.mxu0 }
 0x34c   : > { %v1868_v46 = vadd.f32 %v1867_v54, %v1556_v21 }
 0x34d   : > { %v2052_v28 = vpop.f32.mrf.mxu0 }
 0x34e   : > { %v2270_v35 = vadd.f32 %v2052_v28, %v1724_v22 }
 0x34f   : > { %v2054_v25 = vpop.f32.mrf.mxu0 }
 0x350   : > { %v2271_v42 = vadd.f32 %v2054_v25, %v1726_v10 }
 0x351   : > { %v2194_v49 = vpop.f32.mrf.mxu0 }
 0x352   : > { %v2274_v47 = vadd.f32 %v2194_v49, %v1866_v51 }
 0x353   : > { %v2196_v39 = vpop.f32.mrf.mxu0 }
 0x354   : > { %v2275_v48 = vadd.f32 %v2196_v39, %v1868_v46 }
 0x355   : > { %v2465_v53 = vpop.f32.mrf.mxu0 }
 0x356   : > { %v2683_v34 = vadd.f32 %v2465_v53, %v2270_v35 }
 0x357   : > { %v2467_v59 = vpop.f32.mrf.mxu0 }
 0x358   : > { %v2684_v41 = vadd.f32 %v2467_v59, %v2271_v42 }
 0x359   : > { %v2607_v37 = vpop.f32.mrf.mxu0 }
 0x35a   : > { %v2687_v17 = vadd.f32 %v2607_v37, %v2274_v47 }
 0x35b   : > { %v2609_v45 = vpop.f32.mrf.mxu0 }
 0x35c   : > { %v2688_v22 = vadd.f32 %v2609_v45, %v2275_v48 }
 0x35d   : > { %v2819_v55 = vpop.f32.mrf.mxu0 }
 0x35f   : > { %v2821_v11 = vpop.f32.mrf.mxu0 }
 0x360   : > { %v13310_v50 = vpop.f32.mrf.mxu1  ;;  %v3038_v10 = vadd.f32 %v2821_v11, %v2684_v41 }
 0x362   : > { %v1627_v38 = vpop.f32.mrf.mxu1  ;;  %v2961_v15 = vpop.f32.mrf.mxu0 }
 0x363   : > { %v3041_v51 = vadd.f32 %v2961_v15, %v2687_v17 }
 0x364   : > { %v1794_v0 = vpop.f32.mrf.mxu1  ;;  %v2963_v13 = vpop.f32.mrf.mxu0 }
 0x365   : > { %v1795_v43 = vadd.f32 %v1794_v0, %v1483_v3  ;;  %v3042_v53 = vadd.f32 %v2963_v13, %v2688_v22 }
 0x366   : > { %v1796_v27 = vpop.f32.mrf.mxu1  ;;  %v3148_v4 = vpop.f32.mrf.mxu0 }
 0x367   : > { %v1797_v33 = vadd.f32 %v1796_v27, %v1485_v5 }
 0x368   : > { %v3150_v62 = vpop.f32.mrf.mxu0 }
 0x369   : > { %v1936_v20 = vpop.f32.mrf.mxu1  ;;  %v3367_v47 = vadd.f32 %v3150_v62, %v3038_v10 }
 0x36a   : > { %v1937_v25 = vadd.f32 %v1936_v20, %v13310_v50 }
 0x36b   : > { %v1938_v56 = vpop.f32.mrf.mxu1  ;;  %v3290_v2 = vpop.f32.mrf.mxu0 }
 0x36c   : > { %v1939_v49 = vadd.f32 %v1938_v56, %v1627_v38  ;;  %v3370_v45 = vadd.f32 %v3290_v2, %v3041_v51 }
 0x36d   : > { %v2123_v36 = vpop.f32.mrf.mxu1  ;;  %v3292_v8 = vpop.f32.mrf.mxu0 }
 0x36e   : > { %v3371_v11 = vadd.f32 %v3292_v8, %v3042_v53 }
 0x36f   : > { %v2125_v24 = vpop.f32.mrf.mxu1 }
 0x370   : > { %v3561_v7 = vpop.f32.mrf.mxu0  ;;  %v2273_v54 = vadd.f32 %v2125_v24, %v1797_v33 }
 0x371   : > { %v2265_v23 = vpop.f32.mrf.mxu1 }
 0x372   : > { %v3563_v26 = vpop.f32.mrf.mxu0  ;;  %v2276_v59 = vadd.f32 %v2265_v23, %v1937_v25 }
 0x373   : > { %v2267_v14 = vpop.f32.mrf.mxu1  ;;  %v3780_v27 = vadd.f32 %v3563_v26, %v3367_v47 }
 0x374   : > { %v2277_v3 = vadd.f32 %v2267_v14, %v1939_v49 }
 0x375   : > { %v2536_v16 = vpop.f32.mrf.mxu1 }
 0x377   : > { %v2538_v57 = vpop.f32.mrf.mxu1 }
 0x378   : > { %v2686_v39 = vadd.f32 %v2538_v57, %v2273_v54 }
 0x379   : > { %v13312_v63 = vpop.f32.mrf.mxu1 }
 0x37a   : > { %v2689_v50 = vadd.f32 %v13312_v63, %v2276_v59 }
 0x37b   : > { %v13314_v61 = vpop.f32.mrf.mxu1 }
 0x37d   : > { %v2890_v1 = vpop.f32.mrf.mxu1 }
 0x37f   : > { %v2892_v52 = vpop.f32.mrf.mxu1 }
 0x381   : > { %v13316_v29 = vpop.f32.mrf.mxu1 }
 0x382   : > { %v3043_v14 = vadd.f32 %v13316_v29, %v2689_v50 }
 0x383   : > { %v13318_v58 = vpop.f32.mrf.mxu1 }
 0x385   : > { %v3219_v12 = vpop.f32.mrf.mxu1  ;;  %v3703_v9 = vpop.f32.mrf.mxu0 }
 0x387   : > { %v3221_v44 = vpop.f32.mrf.mxu1  ;;  %v3705_v19 = vpop.f32.mrf.mxu0 }
 0x388   : > { %v3784_v26 = vadd.f32 %v3705_v19, %v3371_v11 }
 0x389   : > { %v13320_v32 = vpop.f32.mrf.mxu1 }
 0x38a   : > { %15540 = vst [vmem:[#allocation4_spill] sm:$0xff] %v13320_v32  ;;  %v3037_v32 = vadd.f32 %v2819_v55, %v2683_v34  ;;  %v3040_v55 = vadd.f32 %v2892_v52, %v2686_v39  ;;  %v4486_v52 = vpop.permute.xlu0 %4485 }
 0x38b   : > { %v13322_v30 = vpop.f32.mrf.mxu1 }
 0x38c   : > { %15541 = vst [vmem:[#allocation21_spill] sm:$0xff] %v13322_v30  ;;  %v2272_v30 = vadd.f32 %v2123_v36, %v1795_v43  ;;  %v3366_v35 = vadd.f32 %v3148_v4, %v3037_v32  ;;  %v4474_v32 = vpop.permute.xlu1 %4473  ;;  %v3783_v36 = vadd.f32 %v3703_v9, %v3370_v45  ;;  %v3369_v24 = vadd.f32 %v3221_v44, %v3040_v55 }
 0x38d   : > { %v3632_v60 = vpop.f32.mrf.mxu1 }
 0x38e   : > { %v2685_v46 = vadd.f32 %v2536_v16, %v2272_v30  ;;  %v3779_v34 = vadd.f32 %v3561_v7, %v3366_v35  ;;  %v2690_v30 = vadd.f32 %v13314_v61, %v2277_v3 }
 0x38f   : > { %v3634_v31 = vpop.f32.mrf.mxu1 }
 0x390   : > { %v3039_v5 = vadd.f32 %v2890_v1, %v2685_v46  ;;  %v3044_v13 = vadd.f32 %v13318_v58, %v2690_v30  ;;  %v3782_v62 = vadd.f32 %v3634_v31, %v3369_v24 }
 0x391   : > { %v13324_v18 = vpop.f32.mrf.mxu1  ;;  %v15542_v2 = vld [vmem:[#allocation4_spill] sm:$0xff] }
 0x392   : > { %v3368_v38 = vadd.f32 %v3219_v12, %v3039_v5  ;;  %v3372_v8 = vadd.f32 %v15542_v2, %v3043_v14 }
 0x393   : > { %v13326_v40 = vpop.f32.mrf.mxu1  ;;  %v3915_v6 = vpop.f32.mrf.mxu0  ;;  %v15543_v12 = vld [vmem:[#allocation21_spill] sm:$0xff] }
 0x394   : > { %v4133_v17 = vadd.f32 %v3915_v6, %v3779_v34  ;;  %v3781_v16 = vadd.f32 %v3632_v60, %v3368_v38  ;;  %v3373_v9 = vadd.f32 %v15543_v12, %v3044_v13  ;;  %v3785_v19 = vadd.f32 %v13324_v18, %v3372_v8 }
 0x395   : > { %v3917_v28 = vpop.f32.mrf.mxu0  ;;  %v3986_v21 = vpop.f32.mrf.mxu1 }
 0x396   : > { %v4134_v15 = vadd.f32 %v3917_v28, %v3780_v27  ;;  %v4135_v44 = vadd.f32 %v3986_v21, %v3781_v16  ;;  %v3786_v28 = vadd.f32 %v13326_v40, %v3373_v9 }
 0x397   : > { %v3988_v37 = vpop.f32.mrf.mxu1 }
 0x398   : > { %v4057_v42 = vpop.f32.mrf.mxu0  ;;  %v4136_v41 = vadd.f32 %v3988_v37, %v3782_v62 }
 0x399   : > { %v4137_v1 = vadd.f32 %v4057_v42, %v3783_v36 }
 0x39a   : > { %v4059_v0 = vpop.f32.mrf.mxu0 }
 0x39b   : > { %v4138_v29 = vadd.f32 %v4059_v0, %v3784_v26 }
 0x39c   : > { %v4128_v20 = vpop.f32.mrf.mxu1  ;;  %v4244_v56 = vpop.f32.mrf.mxu0 }
 0x39d   : > { %v4462_v23 = vadd.f32 %v4244_v56, %v4133_v17  ;;  %v4139_v35 = vadd.f32 %v4128_v20, %v3785_v19 }
 0x39e   : > { %v4130_v57 = vpop.f32.mrf.mxu1  ;;  %v4246_v4 = vpop.f32.mrf.mxu0 }
 0x39f   : > { %v4463_v63 = vadd.f32 %v4246_v4, %v4134_v15  ;;  %v4476_v61 = vmul.f32 %v4474_v32, %v4462_v23  ;;  %v4140_v25 = vadd.f32 %v4130_v57, %v3786_v28  ;;  %v15544_v15 = vmov 0 }
 0x3a0   : > { %v4315_v7 = vpop.f32.mrf.mxu1  ;;  %v15545_v15 = vsel %vm13341_vm13, 4294967295, %v15544_v15 }
 0x3a1   : > { %v4386_v48 = vpop.f32.mrf.mxu0  ;;  %v4477_v6 = vmul.f32 %v4474_v32, %v4463_v63  ;;  %v4464_v60 = vadd.f32 %v4315_v7, %v4135_v44  ;;  %v4488_v33 = vadd.f32 %v4486_v52, %v4476_v61  ;;  %15546 = vst [vmem:[#allocation4_spill] sm:$0xff] %v15545_v15 }
 0x3a2   : > { %v4466_v58 = vadd.f32 %v4386_v48, %v4137_v1  ;;  %v4317_v43 = vpop.f32.mrf.mxu1 }
 0x3a3   : > { %v4388_v31 = vpop.f32.mrf.mxu0  ;;  %v4465_v10 = vadd.f32 %v4317_v43, %v4136_v41  ;;  %v4489_v21 = vadd.f32 %v4486_v52, %v4477_v6  ;;  %v4478_v47 = vmul.f32 %v4474_v32, %v4464_v60  ;;  %v4496_v18 = vmax.f32 %v4488_v33, 0.0 }
 0x3a4   : > { %v4480_v22 = vmul.f32 %v4474_v32, %v4466_v58  ;;  %v4467_v51 = vadd.f32 %v4388_v31, %v4138_v29  ;;  %v4457_v54 = vpop.f32.mrf.mxu1 }
 0x3a5   : > { %v4479_v49 = vmul.f32 %v4474_v32, %v4465_v10  ;;  %v4468_v34 = vadd.f32 %v4457_v54, %v4139_v35  ;;  %v4497_v53 = vmax.f32 %v4489_v21, 0.0  ;;  %v4490_v27 = vadd.f32 %v4486_v52, %v4478_v47 }
 0x3a6   : > { %v4481_v46 = vmul.f32 %v4474_v32, %v4467_v51  ;;  %v4492_v42 = vadd.f32 %v4486_v52, %v4480_v22  ;;  %v4459_v39 = vpop.f32.mrf.mxu1 }
 0x3a7   : > { %v4491_v3 = vadd.f32 %v4486_v52, %v4479_v49  ;;  %v4482_v5 = vmul.f32 %v4474_v32, %v4468_v34  ;;  %v4469_v37 = vadd.f32 %v4459_v39, %v4140_v25  ;;  %v4512_v40 = vcombine.low %v4496_v18, %v4497_v53  ;;  %v13528_v18 = vld [vmem:[%s15198_s5 + $0x4] sm:$0xf] }
 0x3a8   : > { %v4493_v59 = vadd.f32 %v4486_v52, %v4481_v46  ;;  %v4500_v0 = vmax.f32 %v4492_v42, 0.0  ;;  %v4498_v38 = vmax.f32 %v4490_v27, 0.0 }
 0x3a9   : > { %v4494_v55 = vadd.f32 %v4486_v52, %v4482_v5  ;;  %v4483_v17 = vmul.f32 %v4474_v32, %v4469_v37  ;;  %4516 = vrot.lane.b32.xlu1 %v4512_v40, %s11801_s15  ;;  %v4499_v50 = vmax.f32 %v4491_v3, 0.0 }
 0x3aa   : > { %v4501_v45 = vmax.f32 %v4493_v59, 0.0  ;;  %v15557_v59 = vmov 0.0  }
 0x3ab   : > { %v4495_v30 = vadd.f32 %v4486_v52, %v4483_v17  ;;  %v4502_v20 = vmax.f32 %v4494_v55, 0.0  ;;  %v4513_v36 = vcombine.low %v4498_v38, %v4499_v50 }
 0x3ac   : > { %v4514_v11 = vcombine.low %v4500_v0, %v4501_v45 }
 0x3ad   : > { %v4503_v56 = vmax.f32 %v4495_v30, 0.0 }
 0x3ae   : > { %4520 = vrot.lane.b32.xlu1 %v4514_v11, %s11801_s15 }
 0x3af   : > { %v4515_v24 = vcombine.low %v4502_v20, %v4503_v56  ;;  %v7812_v56 = vld [vmem:[%s15199_s6] sm:$0xf] }
 0x3b1   : > { %4522 = vrot.lane.b32.xlu0 %v4515_v24, %s11801_s15 }
 0x3b2   : > { %4518 = vrot.lane.b32.xlu1 %v4513_v36, %s11801_s15 }
 0x41b   : > { %v4517_v32 = vpop.permute.xlu1 %4516 }
 0x41c   : > { %v4524_v23 = vrot.slane %v4517_v32, 4 }
 0x41e   : > { %v4529_v14 = vsel %vm15285_vm14, %v4524_v23, %v4517_v32 }
 0x41f   : > { %4544 = vst.msk [vmem:[#allocation2] sm:$0xff] %vm13341_vm13, %v4529_v14  ;;  %v15559_v14 = vmov 1   ;;  %vm15567_vm13 = vcmask 1022976  }
 0x420   : > { %v4521_v13 = vpop.permute.xlu1 %4520 }
 0x421   : > { %v4526_v57 = vrot.slane %v4521_v13, 4 }
 0x423   : > { %v4523_v26 = vpop.permute.xlu0 %4522 }
 0x424   : > { %v4519_v16 = vpop.permute.xlu1 %4518  ;;  %v4527_v4 = vrot.slane %v4523_v26, 4 }
 0x425   : > { %v4525_v62 = vrot.slane %v4519_v16, 4 }
 0x426   : > { %v4534_v1 = vsel %vm15547_vm0, %v4526_v57, %v4527_v4  ;;  %v4550_v52 = vld [vmem:[#allocation2] sm:$0xf]  ;;  %4549 = vst.msk [vmem:[#allocation2 + $0x20] sm:$0xf] %vm15284_vm15, %v4527_v4  ;;  %vm15552_vm0 = vmmov %vm15551_vm3  ;;  %vm15554_vm15 = vcmask 523264  }
 0x427   : > { %v4530_v63 = vsel %vm15548_vm11, %v4524_v23, %v4525_v62  ;;  %v13352_v61 = vsel %vm15285_vm14, %v4534_v1, %v4523_v26  ;;  %4552 = vrot.lane.b32.xlu0 %v4550_v52, %s11802_s16  ;;  %v4532_v8 = vsel %vm15549_vm5, %v4525_v62, %v4526_v57  ;;  %vm15550_vm11 = vcmask 273424  }
 0x428   : > { %v13355_v2 = vsel %vm15285_vm14, %v4530_v63, %v4519_v16  ;;  %4547 = vst [vmem:[#allocation2 + $0x18] sm:$0xff] %v13352_v61  ;;  %v13363_v12 = vsel %vm15285_vm14, %v4532_v8, %v4521_v13  ;;  %v13438_v48 = vcombine.high %v13352_v61, %v13352_v61  ;;  %vm15555_vm14 = vcmask 31744  }
 0x429   : > { %4661 = vrot.lane.b32.xlu1 %v13355_v2, %s11804_s18  ;;  %v13371_v9 = vcombine.high %v13363_v12, %v13363_v12  ;;  %v13379_v44 = vcombine.high %v13355_v2, %v13355_v2 }
 0x42b   : > { %4582 = vrot.lane.b32.xlu0 %v13355_v2, %s11803_s17 }
 0x42d   : > { %4665 = vrot.lane.b32.xlu1 %v13363_v12, %s11804_s18 }
 0x42f   : > { %4586 = vrot.lane.b32.xlu0 %v13363_v12, %s11803_s17  ;;  %v4556_v7 = vld [vmem:[#allocation2 + $0x1c] sm:$0xff] }
 0x431   : > { %4667 = vrot.lane.b32.xlu1 %v13371_v9, %s11804_s18 }
 0x433   : > { %4616 = vrot.lane.b32.xlu0 %v13355_v2, %s11805_s19 }
 0x435   : > { %4584 = vrot.lane.b32.xlu1 %v13379_v44, %s11803_s17 }
 0x437   : > { %4620 = vrot.lane.b32.xlu0 %v13363_v12, %s11805_s19 }
 0x439   : > { %4618 = vrot.lane.b32.xlu1 %v13379_v44, %s11805_s19 }
 0x43b   : > { %5644 = vrot.lane.b32.xlu0 %v13355_v2, %s11806_s20 }
 0x43d   : > { %4588 = vrot.lane.b32.xlu1 %v13371_v9, %s11803_s17 }
 0x43f   : > { %5648 = vrot.lane.b32.xlu0 %v13363_v12, %s11806_s20 }
 0x441   : > { %4622 = vrot.lane.b32.xlu1 %v13371_v9, %s11805_s19 }
 0x443   : > { %5678 = vrot.lane.b32.xlu0 %v13355_v2, %s11807_s21 }
 0x445   : > { %5646 = vrot.lane.b32.xlu1 %v13379_v44, %s11806_s20 }
 0x447   : > { %4663 = vrot.lane.b32.xlu0 %v13379_v44, %s11804_s18 }
 0x449   : > { %4558 = vrot.lane.b32.xlu1 %v4556_v7, %s11802_s16 }
 0x44b   : > { %5682 = vrot.lane.b32.xlu0 %v13363_v12, %s11807_s21 }
 0x44d   : > { %5680 = vrot.lane.b32.xlu1 %v13379_v44, %s11807_s21 }
 0x44f   : > { %6057 = vrot.lane.b32.xlu0 %v13355_v2, %s11808_s22 }
 0x451   : > { %5650 = vrot.lane.b32.xlu1 %v13371_v9, %s11806_s20 }
 0x453   : > { %6061 = vrot.lane.b32.xlu0 %v13363_v12, %s11808_s22 }
 0x455   : > { %5684 = vrot.lane.b32.xlu1 %v13371_v9, %s11807_s21 }
 0x457   : > { %6063 = vrot.lane.b32.xlu0 %v13371_v9, %s11808_s22 }
 0x459   : > { %6059 = vrot.lane.b32.xlu1 %v13379_v44, %s11808_s22 }
 0x45b   : > { %6739 = vrot.lane.b32.xlu0 %v13379_v44, %s11809_s24 }
 0x45d   : > { %6737 = vrot.lane.b32.xlu1 %v13355_v2, %s11809_s24 }
 0x45f   : > { %4669 = vrot.lane.b32.xlu0 %v13352_v61, %s11804_s18 }
 0x461   : > { %6741 = vrot.lane.b32.xlu1 %v13363_v12, %s11809_s24 }
 0x463   : > { %4590 = vrot.lane.b32.xlu0 %v13352_v61, %s11803_s17 }
 0x465   : > { %6771 = vrot.lane.b32.xlu1 %v13355_v2, %s11810_s25 }
 0x467   : > { %4624 = vrot.lane.b32.xlu0 %v13352_v61, %s11805_s19 }
 0x469   : > { %6065 = vrot.lane.b32.xlu1 %v13352_v61, %s11808_s22 }
 0x46b   : > { %5652 = vrot.lane.b32.xlu0 %v13352_v61, %s11806_s20 }
 0x46d   : > { %4671 = vrot.lane.b32.xlu1 %v13438_v48, %s11804_s18 }
 0x46f   : > { %5686 = vrot.lane.b32.xlu0 %v13352_v61, %s11807_s21 }
 0x471   : > { %4592 = vrot.lane.b32.xlu1 %v13438_v48, %s11803_s17 }
 0x473   : > { %6067 = vrot.lane.b32.xlu0 %v13438_v48, %s11808_s22 }
 0x475   : > { %4626 = vrot.lane.b32.xlu1 %v13438_v48, %s11805_s19 }
 0x479   : > { %5654 = vrot.lane.b32.xlu1 %v13438_v48, %s11806_s20 }
 0x47d   : > { %5688 = vrot.lane.b32.xlu1 %v13438_v48, %s11807_s21 }
 0x499   : > { %v4553_v41 = vpop.permute.xlu0 %4552 }
 0x49a   : > { %4555 = vst.msk [vmem:[#allocation2] sm:$0xf] %vm15550_vm11, %v4553_v41  ;;  %vm15553_vm11 = vmmov %vm15549_vm5 }
 0x49b   : > { %v13457_v29 = vpop.permute.xlu1 %4661 }
 0x49d   : > { %v13459_v6 = vpop.permute.xlu0 %4582 }
 0x49f   : > { %v13461_v58 = vpop.permute.xlu1 %4665 }
 0x4a1   : > { %v13463_v19 = vld [vmem:[#allocation2] sm:$0xff]  ;;  %v13465_v60 = vpop.permute.xlu0 %4586 }
 0x4a2   : > { %4578 = vrot.lane.b32.xlu1 %v13463_v19, %s11803_s17  ;;  %4657 = vrot.lane.b32.xlu0 %v13463_v19, %s11804_s18  ;;  %v13491_v10 = vcombine.high %v13463_v19, %v13463_v19 }
 0x4a3   : > { %v13471_v43 = vpop.permute.xlu1 %4667 }
 0x4a5   : > { %v13473_v31 = vpop.permute.xlu0 %4616 }
 0x4a6   : > { %5640 = vrot.lane.b32.xlu1 %v13463_v19, %s11806_s20  ;;  %4612 = vrot.lane.b32.xlu0 %v13463_v19, %s11805_s19 }
 0x4a7   : > { %v13479_v33 = vpop.permute.xlu1 %4584 }
 0x4a9   : > { %v13481_v28 = vpop.permute.xlu0 %4620 }
 0x4aa   : > { %6053 = vrot.lane.b32.xlu1 %v13463_v19, %s11808_s22  ;;  %5674 = vrot.lane.b32.xlu0 %v13463_v19, %s11807_s21 }
 0x4ab   : > { %v13487_v22 = vpop.permute.xlu1 %4618 }
 0x4ad   : > { %v13493_v51 = vpop.permute.xlu0 %5644 }
 0x4ae   : > { %4580 = vrot.lane.b32.xlu1 %v13491_v10, %s11803_s17  ;;  %4659 = vrot.lane.b32.xlu0 %v13491_v10, %s11804_s18 }
 0x4af   : > { %v13499_v35 = vpop.permute.xlu1 %4588 }
 0x4b1   : > { %v13501_v54 = vpop.permute.xlu0 %5648 }
 0x4b2   : > { %4614 = vrot.lane.b32.xlu1 %v13491_v10, %s11805_s19  ;;  %6735 = vrot.lane.b32.xlu0 %v13491_v10, %s11809_s24 }
 0x4b3   : > { %v13507_v21 = vpop.permute.xlu1 %4622 }
 0x4b5   : > { %v13509_v25 = vpop.permute.xlu0 %5678 }
 0x4b6   : > { %5642 = vrot.lane.b32.xlu1 %v13491_v10, %s11806_s20  ;;  %6769 = vrot.lane.b32.xlu0 %v13491_v10, %s11810_s25 }
 0x4b7   : > { %v13515_v49 = vpop.permute.xlu1 %5646 }
 0x4b9   : > { %v4664_v46 = vpop.permute.xlu0 %4663 }
 0x4ba   : > { %5676 = vrot.lane.b32.xlu1 %v13491_v10, %s11807_s21  ;;  %v4677_v42 = vsel %vm15551_vm3, %v13457_v29, %v4664_v46  ;;  %v4678_v47 = vsel %vm15552_vm0, %v4664_v46, %v13461_v58  ;;  %vm15556_vm3 = vcmask 535824  }
 0x4bb   : > { %v4559_v34 = vpop.permute.xlu1 %4558  ;;  %11421 = vmatprep.subr.msk.mxu1 %vm15549_vm5, %v4678_v47 }
 0x4bc   : > { %v4560_v39 = vrot.slane %v4559_v34, 4  ;;  %11422 = vmatpush1.msk.msra.mxu1 %vm15553_vm11, %v4677_v42 }
 0x4bd   : > { %11423 = vmatmul.mubr.msk.f32.vlgmr.msra.gmra.mxu1 %vm15555_vm14, %v13528_v18  ;;  %v13555_v0 = vpop.permute.xlu0 %5682  ;;  %vm15561_vm14 = vmmov %vm15552_vm0 }
 0x4be   : > { %v4561_v53 = vsel %vm15554_vm15, %v4559_v34, %v4560_v39  ;;  %6055 = vrot.lane.b32.xlu1 %v13491_v10, %s11808_s22  ;;  %4979 = vmatprep.mubr.f32.mxu1 %v15557_v59  ;;  %vm15562_vm15 = vmmov %vm15552_vm0 }
 0x4bf   : > { %4563 = vst.msk [vmem:[#allocation2 + $0x20] sm:$0xf] %vm15556_vm3, %v4561_v53  ;;  %v13542_v5 = vpop.permute.xlu1 %5680  ;;  %vm15563_vm0 = vmmov %vm15549_vm5 }
 0x4c0   : > { %vm15564_vm5 = vmmov %vm15563_vm0 }
 0x4c1   : > { %v13563_v17 = vpop.permute.xlu0 %6057  ;;  %vm15565_vm11 = vmmov %vm15561_vm14 }
 0x4c2   : > { %6775 = vrot.lane.b32.xlu1 %v13363_v12, %s11810_s25  ;;  %vm15566_vm3 = vmmov %vm15565_vm11 }
 0x4c3   : > { %v13547_v37 = vpop.permute.xlu1 %5650  ;;  %v4679_v34 = vsel %vm15566_vm3, %v13461_v58, %v13471_v43  ;;  %vm15569_vm12 = vmmov %vm15563_vm0 }
 0x4c5   : > { %v13571_v50 = vpop.permute.xlu0 %6061 }
 0x4c6   : > { %v4568_v3 = vld [vmem:[#allocation2 + $0x20] sm:$0xf]  ;;  %6767 = vrot.lane.b32.xlu1 %v13463_v19, %s11810_s25 }
 0x4c7   : > { %4673 = vrot.lane.b32.xlu0 %v4568_v3, %s11804_s18  ;;  %v6041_v40 = vld [vmem:[#allocation2 + $0x20] sm:$0xf]  ;;  %v13557_v45 = vpop.permute.xlu1 %5684 }
 0x4c8   : > { %v6723_v27 = vld [vmem:[#allocation2 + $0x20] sm:$0xf] }
 0x4c9   : > { %v5630_v55 = vld [vmem:[#allocation2 + $0x20] sm:$0xf]  ;;  %v13579_v38 = vpop.permute.xlu0 %6063 }
 0x4ca   : > { %6745 = vrot.lane.b32.xlu1 %v13352_v61, %s11809_s24  ;;  %v7134_v4 = vld [vmem:[#allocation2 + $0x20] sm:$0xf] }
 0x4cb   : > { %4594 = vrot.lane.b32.xlu0 %v4568_v3, %s11803_s17  ;;  %v13565_v11 = vpop.permute.xlu1 %6059 }
 0x4cd   : > { %v13594_v36 = vpop.permute.xlu0 %6739 }
 0x4ce   : > { %6779 = vrot.lane.b32.xlu1 %v13352_v61, %s11810_s25  ;;  %15558 = vst [vmem:[#allocation21_spill] sm:$0xff] %v13594_v36 }
 0x4cf   : > { %4628 = vrot.lane.b32.xlu0 %v4568_v3, %s11805_s19  ;;  %v13573_v30 = vpop.permute.xlu1 %6737 }
 0x4d1   : > { %v13600_v32 = vpop.permute.xlu0 %4669 }
 0x4d2   : > { %6069 = vrot.lane.b32.xlu1 %v6041_v40, %s11808_s22  ;;  %v4680_v47 = vsel %vm15565_vm11, %v13471_v43, %v13600_v32  ;;  %vm15573_vm11 = vmmov %vm15569_vm12  ;;  %v15575_v43 = vld [vmem:[#allocation5_spill] sm:$0xff] }
 0x4d3   : > { %6773 = vrot.lane.b32.xlu0 %v13379_v44, %s11810_s25  ;;  %v13581_v20 = vpop.permute.xlu1 %6741  ;;  %vm15576_vm3 = vnez %v15575_v43 }
 0x4d5   : > { %v13609_v13 = vpop.permute.xlu0 %4590 }
 0x4d6   : > { %7150 = vrot.lane.b32.xlu1 %v13355_v2, %s11811_s28  ;;  %v15560_v2 = vmov 0  }
 0x4d7   : > { %6733 = vrot.lane.b32.xlu0 %v13463_v19, %s11809_s24  ;;  %v13596_v24 = vpop.permute.xlu1 %6771 }
 0x4d9   : > { %v13615_v16 = vpop.permute.xlu0 %4624 }
 0x4da   : > { %6749 = vrot.lane.b32.xlu1 %v6723_v27, %s11809_s24 }
 0x4db   : > { %5656 = vrot.lane.b32.xlu0 %v5630_v55, %s11806_s20  ;;  %v13602_v23 = vpop.permute.xlu1 %6065 }
 0x4dd   : > { %v13622_v62 = vpop.permute.xlu0 %5652 }
 0x4de   : > { %6783 = vrot.lane.b32.xlu1 %v6723_v27, %s11810_s25 }
 0x4df   : > { %5690 = vrot.lane.b32.xlu0 %v5630_v55, %s11807_s21  ;;  %v13611_v26 = vpop.permute.xlu1 %4671  ;;  %v15577_v55 = vld [vmem:[#allocation6_spill] sm:$0xff] }
 0x4e1   : > { %v13626_v63 = vpop.permute.xlu0 %5686 }
 0x4e2   : > { %7154 = vrot.lane.b32.xlu1 %v13363_v12, %s11811_s28 }
 0x4e3   : > { %6743 = vrot.lane.b32.xlu0 %v13371_v9, %s11809_s24  ;;  %v13617_v57 = vpop.permute.xlu1 %4592 }
 0x4e5   : > { %v13631_v8 = vpop.permute.xlu0 %6067 }
 0x4e6   : > { %7156 = vrot.lane.b32.xlu1 %v13371_v9, %s11811_s28 }
 0x4e7   : > { %6747 = vrot.lane.b32.xlu0 %v13438_v48, %s11809_s24  ;;  %v13624_v1 = vpop.permute.xlu1 %4626 }
 0x4ea   : > { %7160 = vrot.lane.b32.xlu1 %v13438_v48, %s11811_s28 }
 0x4eb   : > { %6777 = vrot.lane.b32.xlu0 %v13371_v9, %s11810_s25  ;;  %v13628_v52 = vpop.permute.xlu1 %5654 }
 0x4ee   : > { %7815 = vperm.xlu1 %11781, %v7812_v56  }
 0x4ef   : > { %6781 = vrot.lane.b32.xlu0 %v13438_v48, %s11810_s25  ;;  %v13633_v12 = vpop.permute.xlu1 %5688 }
 0x4f2   : > { %11784 = vset.pattern.permute.xlu1 %v15559_v14 }
 0x4f3   : > { %7148 = vrot.lane.b32.xlu0 %v13491_v10, %s11811_s28 }
 0x4f7   : > { %7152 = vrot.lane.b32.xlu0 %v13379_v44, %s11811_s28 }
 0x4fb   : > { %7146 = vrot.lane.b32.xlu0 %v13463_v19, %s11811_s28 }
 0x4ff   : > { %7158 = vrot.lane.b32.xlu0 %v13352_v61, %s11811_s28 }
 0x503   : > { %7162 = vrot.lane.b32.xlu0 %v7134_v4, %s11811_s28 }
 0x507   : > { %7827 = vperm.xlu0 %11782, %v7812_v56  }
 0x50b   : > { %11783 = vset.pattern.permute.xlu0 %v15560_v2 }
 0x514   : > { %v4579_v9 = vpop.permute.xlu1 %4578  ;;  %v4658_v61 = vpop.permute.xlu0 %4657 }
 0x518   : > { %v13635_v44 = vpop.permute.xlu1 %5640  ;;  %v4613_v7 = vpop.permute.xlu0 %4612 }
 0x51c   : > { %v13637_v48 = vpop.permute.xlu1 %6053  ;;  %v5675_v41 = vpop.permute.xlu0 %5674 }
 0x520   : > { %v4581_v19 = vpop.permute.xlu1 %4580  ;;  %v4660_v10 = vpop.permute.xlu0 %4659 }
 0x521   : > { %v4675_v46 = vsel %vm15561_vm14, %v4658_v61, %v4660_v10  ;;  %v4676_v42 = vsel %vm15562_vm15, %v4660_v10, %v13457_v29  ;;  %v4596_v39 = vsel %vm15567_vm13, %v4579_v9, %v4581_v19  ;;  %vm15568_vm14 = vcmask 31744   ;;  %vm15570_vm15 = vmmov %vm15567_vm13  ;;  %v15581_v61 = vld [vmem:[#allocation7_spill] sm:$0xff] }
 0x522   : > { %11418 = vmatprep.subr.msk.mxu0 %vm15563_vm0, %v4676_v42  ;;  %v4597_v29 = vsel %vm15570_vm15, %v4581_v19, %v13459_v6  ;;  %vm15571_vm0 = vcmask 1039360   ;;  %v4601_v4 = vsel %vm15570_vm15, %v13499_v35, %v13609_v13  ;;  %v13684_v19 = vld [vmem:[%s15198_s5] sm:$0xf] }
 0x523   : > { %11419 = vmatpush1.msk.msra.mxu0 %vm15564_vm5, %v4675_v46  ;;  %vm15572_vm5 = vmmov %vm15571_vm0 }
 0x524   : > { %v4615_v53 = vpop.permute.xlu1 %4614  ;;  %11420 = vmatmul.mubr.msk.f32.vlgmr.msra.gmra.mxu0 %vm15568_vm14, %v13528_v18  ;;  %11424 = vmatprep.subr.msk.mxu0 %vm15569_vm12, %v4680_v47  ;;  %vm15574_vm13 = vmmov %vm15571_vm0  ;;  %vm15578_vm12 = vnez %v15577_v55  ;;  %v4634_v9 = vsel %vm15572_vm5, %v13481_v28, %v13507_v21 }
 0x525   : > { %v4630_v3 = vsel %vm15571_vm0, %v4613_v7, %v4615_v53  ;;  %v4631_v40 = vsel %vm15572_vm5, %v4615_v53, %v13473_v31  ;;  %11425 = vmatpush1.msk.msra.mxu0 %vm15573_vm11, %v4679_v34  ;;  %4908 = vmatprep.mubr.f32.mxu0 %v15557_v59  ;;  %v4635_v58 = vsel %vm15574_vm13, %v13507_v21, %v13615_v16  ;;  %vm15579_vm14 = vmmov %vm15573_vm11  ;;  %vm15580_vm0 = vcmask 31744   ;;  %v15585_v21 = vld [vmem:[#allocation8_spill] sm:$0xff]  ;;  %v13698_v53 = vpop.permute.xlu0 %6735 }
 0x526   : > { %v4647_v27 = vsel %vm15576_vm3, %v4597_v29, %v4631_v40  ;;  %v4646_v56 = vsel %vm15578_vm12, %v4596_v39, %v4630_v3  ;;  %v4651_v7 = vsel %vm12695_vm9, %v4601_v4, %v4635_v58  ;;  %vm15582_vm13 = vmmov %vm15573_vm11  ;;  %v5298_v34 = vsel %vm15522_vm10, %v4631_v40, %v4597_v29  ;;  %v13712_v29 = vld [vmem:[%s15198_s5 + $0x8] sm:$0xf] }
 0x527   : > { %11430 = vmatprep.subr.msk.mxu0 %vm15579_vm14, %v4647_v27  ;;  %vm15583_vm14 = vmmov %vm15570_vm15  ;;  %v5297_v27 = vsel %vm15523_vm6, %v4630_v3, %v4596_v39 }
 0x528   : > { %v5643_v2 = vpop.permute.xlu1 %5642  ;;  %11426 = vmatmul.mubr.msk.f32.vlgmr.msra.gmra.mxu0 %vm15580_vm0, %v13528_v18  ;;  %v4600_v10 = vsel %vm15583_vm14, %v13465_v60, %v13499_v35  ;;  %vm15584_vm15 = vmmov %vm15580_vm0  ;;  %v15590_v35 = vld [vmem:[#allocation10_spill] sm:$0xff]  ;;  %vm15593_vm14 = vcmask 777216  }
 0x529   : > { %11431 = vmatpush1.msk.msra.mxu0 %vm15573_vm11, %v4646_v56  ;;  %5077 = vmatprep.mubr.f32.mxu0 %v15557_v59  ;;  %v4650_v42 = vsel %vm12717_vm8, %v4600_v10, %v4634_v9  ;;  %vm15586_vm0 = vmmov %vm15573_vm11  ;;  %v15592_v56 = vld [vmem:[#allocation11_spill] sm:$0xff]  ;;  %v13723_v3 = vpop.permute.xlu0 %6769 }
 0x52a   : > { %11436 = vmatprep.subr.msk.mxu0 %vm15582_vm13, %v4651_v7  ;;  %vm15588_vm5 = vmmov %vm15586_vm0  ;;  %v5302_v7 = vsel %vm15526_vm1, %v4635_v58, %v4601_v4  ;;  %v5301_v4 = vsel %vm15532_vm2, %v4634_v9, %v4600_v10 }
 0x52b   : > { %vm15589_vm11 = vmmov %vm15584_vm15 }
 0x52c   : > { %v5677_v46 = vpop.permute.xlu1 %5676  ;;  %11432 = vmatmul.mubr.msk.f32.vlgmr.msra.gmra.mxu0 %vm15584_vm15, %v13684_v19  ;;  %vm15591_vm13 = vmmov %vm15586_vm0 }
 0x52d   : > { %11437 = vmatpush1.msk.msra.mxu0 %vm15586_vm0, %v4650_v42  ;;  %5219 = vmatprep.mubr.f32.mxu0 %v15557_v59  ;;  %v13716_v40 = vsel %vm15593_vm14, %v5677_v46, %v13509_v25  ;;  %vm15594_vm15 = vmmov %vm15586_vm0  ;;  %vm15595_vm0 = vcmask 760832  }
 0x52e   : > { %11443 = vmatprep.subr.msk.mxu0 %vm15588_vm5, %v5298_v34  ;;  %v13721_v39 = vsel %vm15595_vm0, %v5643_v2, %v13493_v51  ;;  %vm15596_vm5 = vmmov %vm15589_vm11 }
 0x530   : > { %11438 = vmatmul.mubr.msk.f32.vlgmr.msra.gmra.mxu0 %vm15589_vm11, %v13684_v19  ;;  %v6056_v42 = vpop.permute.xlu1 %6055  ;;  %vm15598_vm11 = vmmov %vm15593_vm14 }
 0x531   : > { %11444 = vmatpush1.msk.msra.mxu0 %vm15591_vm13, %v5297_v27  ;;  %5398 = vmatprep.mubr.f32.mxu0 %v15557_v59  ;;  %v13730_v34 = vsel %vm15598_vm11, %v5675_v41, %v5677_v46  ;;  %v5709_v27 = vsel %vm15576_vm3, %v13721_v39, %v13716_v40  ;;  %vm15599_vm14 = vmmov %vm15598_vm11  ;;  %v13746_v41 = vsel %vm15595_vm0, %v13635_v44, %v5643_v2  ;;  %vm15602_vm11 = vcmask 31744  }
 0x532   : > { %11449 = vmatprep.subr.msk.mxu0 %vm15594_vm15, %v5302_v7  ;;  %v13741_v7 = vsel %vm15599_vm14, %v13557_v45, %v13626_v63  ;;  %vm15600_vm15 = vmmov %vm15591_vm13  ;;  %v5708_v46 = vsel %vm15578_vm12, %v13746_v41, %v13730_v34 }
 0x534   : > { %11445 = vmatmul.mubr.msk.f32.vlgmr.msra.gmra.mxu0 %vm15596_vm5, %v13712_v29  ;;  %vm15601_vm5 = vmmov %vm15595_vm0  ;;  %v13753_v10 = vpop.permute.xlu1 %6775  ;;  %vm15606_vm0 = vcmask 1039360  }
 0x535   : > { %11450 = vmatpush1.msk.msra.mxu0 %vm15591_vm13, %v5301_v4  ;;  %5540 = vmatprep.mubr.f32.mxu0 %v15557_v59  ;;  %v13751_v9 = vsel %vm15601_vm5, %v13547_v37, %v13622_v62  ;;  %vm15603_vm13 = vmmov %vm15599_vm14 }
 0x536   : > { %11456 = vmatprep.subr.msk.mxu0 %vm15600_vm15, %v5709_v27  ;;  %v13764_v44 = vsel %vm15603_vm13, %v13555_v0, %v13557_v45  ;;  %vm15604_vm14 = vmmov %vm15600_vm15  ;;  %v5713_v2 = vsel %vm12695_vm9, %v13751_v9, %v13741_v7  ;;  %v13775_v27 = vld [vmem:[%s15198_s5 + $0xc] sm:$0xf]  ;;  %vm15605_vm15 = vcmask 1031168   ;;  %v4633_v45 = vsel %vm15606_vm0, %v13487_v22, %v13481_v28 }
 0x537   : > { %vm15607_vm5 = vmmov %vm15605_vm15  ;;  %vm15611_vm9 = vcmask 760832  }
 0x538   : > { %11451 = vmatmul.mubr.msk.f32.vlgmr.msra.gmra.mxu0 %vm15602_vm11, %v13712_v29  ;;  %vm15608_vm11 = vmmov %vm15604_vm14 }
 0x539   : > { %v4674_v4 = vpop.permute.xlu0 %4673  ;;  %11457 = vmatpush1.msk.msra.mxu0 %vm15604_vm14, %v5708_v46  ;;  %5809 = vmatprep.mubr.f32.mxu0 %v15557_v59  ;;  %v4681_v46 = vsel %vm15607_vm5, %v13600_v32, %v13611_v26  ;;  %vm15609_vm13 = vmmov %vm15608_vm11  ;;  %vm15614_vm5 = vcmask 31744  }
 0x53a   : > { %v4682_v14 = vsel %vm15605_vm15, %v13611_v26, %v4674_v4  ;;  %11462 = vmatprep.subr.msk.mxu0 %vm15608_vm11, %v5713_v2  ;;  %vm15610_vm14 = vmmov %vm15606_vm0  ;;  %v13793_v4 = vsel %vm15611_vm9, %v13501_v54, %v13547_v37  ;;  %vm15613_vm0 = vcmask 1022976   ;;  %v15618_v37 = vld [vmem:[#allocation13_spill] sm:$0xff]  ;;  %v13816_v26 = vpop.permute.xlu1 %6767 }
 0x53b   : > { %11427 = vmatprep.subr.msk.mxu1 %vm15609_vm13, %v4682_v14  ;;  %v4632_v15 = vsel %vm15610_vm14, %v13473_v31, %v13487_v22  ;;  %vm15612_vm15 = vmmov %vm15608_vm11  ;;  %v4599_v28 = vsel %vm15613_vm0, %v13479_v33, %v13465_v60  ;;  %v5712_v32 = vsel %vm12717_vm8, %v13793_v4, %v13764_v44  ;;  %vm15617_vm14 = vcmask 769024  }
 0x53c   : > { %11428 = vmatpush1.msk.msra.mxu1 %vm15612_vm15, %v4681_v46  ;;  %11458 = vmatmul.mubr.msk.f32.vlgmr.msra.gmra.mxu0 %vm15614_vm5, %v13775_v27  ;;  %vm15615_vm11 = vmmov %vm15614_vm5  ;;  %v6072_v60 = vsel %vm15617_vm14, %v6056_v42, %v13563_v17  ;;  %vm15619_vm15 = vnez %v15618_v37  ;;  %vm15626_vm8 = vcmask 31744  }
 0x53d   : > { %11429 = vmatmul.mubr.msk.f32.vlgmr.msra.gmra.mxu1 %vm15615_vm11, %v13528_v18  ;;  %v4595_v31 = vpop.permute.xlu0 %4594  ;;  %vm15616_vm9 = vmmov %vm15613_vm0  ;;  %11463 = vmatpush1.msk.msra.mxu0 %vm15609_vm13, %v5712_v32  ;;  %v4649_v14 = vsel %vm15619_vm15, %v4599_v28, %v4633_v45  ;;  %v15622_v18 = vld [vmem:[#allocation14_spill] sm:$0xff] }
 0x53e   : > { %v4598_v22 = vsel %vm15616_vm9, %v13459_v6, %v13479_v33  ;;  %5951 = vmatprep.mubr.f32.mxu0 %v15557_v59  ;;  %vm15620_vm0 = vmmov %vm15609_vm13  ;;  %vm15623_vm11 = vnez %v15622_v18  ;;  %5148 = vmatprep.mubr.f32.mxu1 %v15557_v59  ;;  %vm15625_vm13 = vcmask 1039360   ;;  %v6071_v33 = vsel %vm15617_vm14, %v13637_v48, %v6056_v42 }
 0x53f   : > { %11469 = vmatprep.subr.msk.mxu0 %vm15620_vm0, %v6072_v60  ;;  %vm15621_vm5 = vmmov %vm15620_vm0  ;;  %v4648_v2 = vsel %vm15623_vm11, %v4598_v22, %v4632_v15  ;;  %v4636_v6 = vsel %vm15625_vm13, %v13615_v16, %v13624_v1  ;;  %v13841_v16 = vld [vmem:[%s15198_s5 + $0x10] sm:$0xf]  ;;  %vm15629_vm13 = vcmask 1022976  }
 0x540   : > { %11433 = vmatprep.subr.msk.mxu1 %vm15621_vm5, %v4649_v14  ;;  %vm15624_vm9 = vmmov %vm15620_vm0  ;;  %11464 = vmatmul.mubr.msk.f32.vlgmr.msra.gmra.mxu0 %vm15626_vm8, %v13775_v27  ;;  %v4603_v48 = vsel %vm15629_vm13, %v13617_v57, %v4595_v31  ;;  %v15633_v14 = vld [vmem:[#allocation15_spill] sm:$0xff]  ;;  %v13860_v31 = vpop.permute.xlu1 %6745 }
 0x541   : > { %11434 = vmatpush1.msk.msra.mxu1 %vm15624_vm9, %v4648_v2  ;;  %vm15627_vm0 = vmmov %vm15626_vm8  ;;  %v4629_v46 = vpop.permute.xlu0 %4628  ;;  %11470 = vmatpush1.msk.msra.mxu0 %vm15621_vm5, %v6071_v33  ;;  %vm15630_vm8 = vcmask 1039360   ;;  %v15636_v33 = vld [vmem:[#allocation16_spill] sm:$0xff] }
 0x542   : > { %11435 = vmatmul.mubr.msk.f32.vlgmr.msra.gmra.mxu1 %vm15627_vm0, %v13684_v19  ;;  %vm15628_vm9 = vmmov %vm15617_vm14  ;;  %6162 = vmatprep.mubr.f32.mxu0 %v15557_v59  ;;  %v4637_v42 = vsel %vm15630_vm8, %v13624_v1, %v4629_v46  ;;  %vm15637_vm11 = vnez %v15636_v33  ;;  %vm15639_vm8 = vcmask 31744   ;;  %v5300_v46 = vsel %vm12966_vm7, %v4633_v45, %v4599_v28  ;;  %v15648_v45 = vld [vmem:[#allocation19_spill] sm:$0xff] }
 0x543   : > { %v6076_v32 = vsel %vm15628_vm9, %v13579_v38, %v13602_v23  ;;  %vm15631_vm14 = vmmov %vm15629_vm13  ;;  %5290 = vmatprep.mubr.f32.mxu1 %v15557_v59  ;;  %vm15638_vm13 = vcmask 769024  }
 0x544   : > { %v4602_v60 = vsel %vm15631_vm14, %v13609_v13, %v13617_v57  ;;  %vm15632_vm0 = vmmov %vm15621_vm5  ;;  %vm15634_vm5 = vnez %v15633_v14  ;;  %v6075_v1 = vsel %vm15638_vm13, %v13571_v50, %v13579_v38  ;;  %11471 = vmatmul.mubr.msk.f32.vlgmr.msra.gmra.mxu0 %vm15639_vm8, %v13841_v16  ;;  %v6391_v57 = vsel %vm15522_vm10, %v13716_v40, %v13721_v39  ;;  %v13898_v39 = vld [vmem:[%s15198_s5 + $0x14] sm:$0xf] }
 0x545   : > { %11475 = vmatprep.subr.msk.mxu0 %vm15632_vm0, %v6076_v32  ;;  %v4653_v2 = vsel %vm15634_vm5, %v4603_v48, %v4637_v42  ;;  %vm15635_vm9 = vmmov %vm15632_vm0  ;;  %v4652_v36 = vsel %vm15637_vm11, %v4602_v60, %v4636_v6  ;;  %v13865_v13 = vpop.permute.xlu0 %6773  ;;  %6304 = vmatprep.mubr.f32.mxu0 %v15557_v59  ;;  %v5299_v32 = vsel %vm12996_vm4, %v4632_v15, %v4598_v22 }
 0x546   : > { %11439 = vmatprep.subr.msk.mxu1 %vm15635_vm9, %v4653_v2  ;;  %vm15640_vm14 = vmmov %vm15632_vm0  ;;  %11476 = vmatpush1.msk.msra.mxu0 %vm15632_vm0, %v6075_v1  ;;  %v6390_v40 = vsel %vm15523_vm6, %v13730_v34, %v13746_v41  ;;  %v6395_v15 = vsel %vm15526_vm1, %v13741_v7, %v13751_v9  ;;  %v13912_v7 = vpop.permute.xlu1 %6779  ;;  %vm15653_vm1 = vcmask 760832   ;;  %vm15654_vm6 = vcmask 31744  }
 0x547   : > { %11440 = vmatpush1.msk.msra.mxu1 %vm15640_vm14, %v4652_v36  ;;  %vm15641_vm9 = vmmov %vm15632_vm0  ;;  %v13919_v9 = vsel %vm15653_vm1, %v13515_v49, %v13501_v54  ;;  %v6394_v54 = vsel %vm15532_vm2, %v13764_v44, %v13793_v4 }
 0x548   : > { %11482 = vmatprep.subr.msk.mxu0 %vm15641_vm9, %v6391_v57  ;;  %vm15642_vm13 = vmmov %vm15639_vm8 }
 0x549   : > { %11441 = vmatmul.mubr.msk.f32.vlgmr.msra.gmra.mxu1 %vm15642_vm13, %v13684_v19  ;;  %vm15644_vm8 = vmmov %vm15632_vm0  ;;  %v6734_v19 = vpop.permute.xlu0 %6733 }
 0x54a   : > { %11446 = vmatprep.subr.msk.mxu1 %vm15644_vm8, %v5300_v46  ;;  %5469 = vmatprep.mubr.f32.mxu1 %v15557_v59  ;;  %vm15646_vm14 = vmmov %vm15642_vm13  ;;  %vm15649_vm13 = vnez %v15648_v45  ;;  %vm15650_vm8 = vcmask 777216  }
 0x54b   : > { %11477 = vmatmul.mubr.msk.f32.vlgmr.msra.gmra.mxu0 %vm15646_vm14, %v13841_v16  ;;  %11447 = vmatpush1.msk.msra.mxu1 %vm15632_vm0, %v5299_v32  ;;  %vm15647_vm9 = vmmov %vm15632_vm0  ;;  %v5304_v34 = vsel %vm15649_vm13, %v4637_v42, %v4603_v48  ;;  %v13905_v41 = vsel %vm15650_vm8, %v13542_v5, %v13555_v0  ;;  %vm15651_vm14 = vcmask 515072   ;;  %v15655_v0 = vld [vmem:[#allocation20_spill] sm:$0xff] }
 0x54c   : > { %11483 = vmatpush1.msk.msra.mxu0 %vm15647_vm9, %v6390_v40  ;;  %6491 = vmatprep.mubr.f32.mxu0 %v15557_v59  ;;  %v13910_v28 = vsel %vm15651_vm14, %v13723_v3, %v13596_v24  ;;  %vm15652_vm9 = vmmov %vm15632_vm0  ;;  %vm15656_vm8 = vnez %v15655_v0  ;;  %vm15657_vm14 = vcmask 777216   ;;  %v5711_v44 = vsel %vm15619_vm15, %v13919_v9, %v13905_v41 }
 0x54d   : > { %11488 = vmatprep.subr.msk.mxu0 %vm15632_vm0, %v6395_v15  ;;  %11452 = vmatprep.subr.msk.mxu1 %vm15652_vm9, %v5304_v34  ;;  %v5303_v22 = vsel %vm15656_vm8, %v4636_v6, %v4602_v60  ;;  %v13928_v48 = vsel %vm15657_vm14, %v13509_v25, %v13542_v5  ;;  %vm15658_vm0 = vcmask 498688   ;;  %vm15659_vm9 = vmmov %vm15654_vm6  ;;  %v5657_v6 = vpop.permute.xlu0 %5656 }
 0x54e   : > { %11448 = vmatmul.mubr.msk.f32.vlgmr.msra.gmra.mxu1 %vm15654_vm6, %v13712_v29  ;;  %v13933_v42 = vsel %vm15658_vm0, %v13698_v53, %v13573_v30  ;;  %vm15660_vm6 = vcmask 1043456   ;;  %vm15662_vm14 = vmmov %vm15658_vm0 }
 0x54f   : > { %11484 = vmatmul.mubr.msk.f32.vlgmr.msra.gmra.mxu0 %vm15659_vm9, %v13898_v39  ;;  %11453 = vmatpush1.msk.msra.mxu1 %vm15660_vm6, %v5303_v22  ;;  %vm15661_vm1 = vmmov %vm15660_vm6  ;;  %v6802_v25 = vsel %vm15576_vm3, %v13933_v42, %v13910_v28  ;;  %v13950_v5 = vsel %vm15662_vm14, %v6734_v19, %v13698_v53  ;;  %vm15665_vm6 = vcmask 760832   ;;  %v6070_v53 = vpop.permute.xlu1 %6069  ;;  %vm15667_vm14 = vcmask 31744  }
 0x550   : > { %11489 = vmatpush1.msk.msra.mxu0 %vm15661_vm1, %v6394_v54  ;;  %6633 = vmatprep.mubr.f32.mxu0 %v15557_v59  ;;  %vm15663_vm0 = vmmov %vm15661_vm1  ;;  %v5660_v4 = vsel %vm15665_vm6, %v13493_v51, %v13515_v49  ;;  %vm15666_vm1 = vcmask 515072   ;;  %vm15670_vm6 = vcmask 777216  }
 0x551   : > { %11495 = vmatprep.subr.msk.mxu0 %vm15663_vm0, %v6802_v25  ;;  %vm15664_vm9 = vmmov %vm15663_vm0  ;;  %v13964_v60 = vsel %vm15666_vm1, %v13816_v26, %v13723_v3  ;;  %5611 = vmatprep.mubr.f32.mxu1 %v15557_v59  ;;  %v5691_v49 = vpop.permute.xlu0 %5690  ;;  %v5698_v3 = vsel %vm15670_vm6, %v13626_v63, %v13633_v12  ;;  %vm15671_vm1 = vcmask 1043456   ;;  %v13986_v26 = vld [vmem:[%s15198_s5 + $0x18] sm:$0xf]  ;;  %v6392_v22 = vsel %vm12996_vm4, %v13928_v48, %v5660_v4 }
 0x552   : > { %11459 = vmatprep.subr.msk.mxu1 %vm15664_vm9, %v5711_v44  ;;  %v6801_v2 = vsel %vm15578_vm12, %v13950_v5, %v13964_v60  ;;  %vm15668_vm0 = vmmov %vm15667_vm14  ;;  %vm15669_vm9 = vnez %v15622_v18  ;;  %vm15676_vm12 = vcmask 31744  }
 0x553   : > { %11490 = vmatmul.mubr.msk.f32.vlgmr.msra.gmra.mxu0 %vm15667_vm14, %v13898_v39  ;;  %11454 = vmatmul.mubr.msk.f32.vlgmr.msra.gmra.mxu1 %vm15668_vm0, %v13712_v29  ;;  %v5710_v51 = vsel %vm15669_vm9, %v5660_v4, %v13928_v48  ;;  %vm15672_vm14 = vcmask 760832   ;;  %vm15673_vm0 = vmmov %vm15670_vm6  ;;  %v15700_v48 = vld [vmem:[#allocation21_spill] sm:$0xff] }
 0x554   : > { %11496 = vmatpush1.msk.msra.mxu0 %vm15671_vm1, %v6801_v2  ;;  %6902 = vmatprep.mubr.f32.mxu0 %v15557_v59  ;;  %v5665_v29 = vsel %vm15672_vm14, %v13628_v52, %v5657_v6  ;;  %v5699_v1 = vsel %vm15673_vm0, %v13633_v12, %v5691_v49  ;;  %vm15674_vm3 = vmmov %vm15671_vm1  ;;  %vm15679_vm0 = vcmask 769024  }
 0x555   : > { %11460 = vmatpush1.msk.msra.mxu1 %vm15674_vm3, %v5710_v51  ;;  %5880 = vmatprep.mubr.f32.mxu1 %v15557_v59  ;;  %v5715_v63 = vsel %vm15634_vm5, %v5665_v29, %v5699_v1  ;;  %vm15675_vm6 = vmmov %vm15672_vm14  ;;  %v6744_v46 = vpop.permute.xlu0 %6743  ;;  %v6397_v6 = vsel %vm15649_vm13, %v5699_v1, %v5665_v29 }
 0x556   : > { %v5664_v57 = vsel %vm15675_vm6, %v13622_v62, %v13628_v52  ;;  %11465 = vmatprep.subr.msk.mxu1 %vm15671_vm1, %v5715_v63  ;;  %vm15677_vm14 = vmmov %vm15676_vm12  ;;  %v6074_v62 = vsel %vm15679_vm0, %v13565_v11, %v13571_v50  ;;  %v14011_v52 = vpop.permute.xlu1 %7150 }
 0x557   : > { %11497 = vmatmul.mubr.msk.f32.vlgmr.msra.gmra.mxu0 %vm15676_vm12, %v13986_v26  ;;  %11461 = vmatmul.mubr.msk.f32.vlgmr.msra.gmra.mxu1 %vm15677_vm14, %v13775_v27  ;;  %v5714_v12 = vsel %vm15637_vm11, %v5664_v57, %v5698_v3  ;;  %vm15678_vm3 = vmmov %vm15671_vm1 }
 0x558   : > { %11466 = vmatpush1.msk.msra.mxu1 %vm15678_vm3, %v5714_v12  ;;  %6022 = vmatprep.mubr.f32.mxu1 %v15557_v59  ;;  %vm15680_vm6 = vmmov %vm15671_vm1  ;;  %v11507_v12 = vld [vmem:[%s15198_s5 + $0x1c] sm:$0xf] }
 0x559   : > { %11472 = vmatprep.subr.msk.mxu1 %vm15680_vm6, %v6074_v62  ;;  %7044 = vmatprep.mubr.f32.mxu0 %v15557_v59  ;;  %vm15681_vm12 = vmmov %vm15679_vm0  ;;  %v6748_v40 = vpop.permute.xlu0 %6747 }
 0x55a   : > { %v6073_v32 = vsel %vm15681_vm12, %v13563_v17, %v13565_v11  ;;  %vm15682_vm1 = vmmov %vm15677_vm14  ;;  %v6750_v15 = vpop.permute.xlu1 %6749  ;;  %v6393_v11 = vsel %vm12966_vm7, %v13905_v41, %v13919_v9 }
 0x55b   : > { %11467 = vmatmul.mubr.msk.f32.vlgmr.msra.gmra.mxu1 %vm15682_vm1, %v13775_v27  ;;  %vm15683_vm14 = vmmov %vm15679_vm0 }
 0x55c   : > { %v6078_v19 = vsel %vm15683_vm14, %v13631_v8, %v6070_v53  ;;  %11473 = vmatpush1.msk.msra.mxu1 %vm15678_vm3, %v6073_v32  ;;  %6233 = vmatprep.mubr.f32.mxu1 %v15557_v59  ;;  %vm15684_vm0 = vmmov %vm15678_vm3 }
 0x55d   : > { %11478 = vmatprep.subr.msk.mxu1 %vm15684_vm0, %v6078_v19  ;;  %vm15685_vm6 = vmmov %vm15681_vm12  ;;  %vm15686_vm12 = vcmask 498688   ;;  %v6778_v27 = vpop.permute.xlu0 %6777 }
 0x55e   : > { %v6077_v50 = vsel %vm15685_vm6, %v13602_v23, %v13631_v8  ;;  %v14030_v17 = vsel %vm15686_vm12, %v13581_v20, %v6744_v46  ;;  %vm15687_vm14 = vmmov %vm15686_vm12 }
 0x55f   : > { %11474 = vmatmul.mubr.msk.f32.vlgmr.msra.gmra.mxu1 %vm15682_vm1, %v13841_v16  ;;  %v14040_v34 = vsel %vm15687_vm14, %v6744_v46, %v13860_v31  ;;  %vm15688_vm3 = vmmov %vm15684_vm0  ;;  %vm15689_vm0 = vcmask 515072   ;;  %vm15692_vm1 = vnez %v15581_v61  ;;  %vm15693_vm14 = vnez %v15585_v21 }
 0x560   : > { %11479 = vmatpush1.msk.msra.mxu1 %vm15688_vm3, %v6077_v50  ;;  %6375 = vmatprep.mubr.f32.mxu1 %v15557_v59  ;;  %v14046_v23 = vsel %vm15689_vm0, %v13753_v10, %v6778_v27  ;;  %vm15690_vm6 = vmmov %vm15689_vm0  ;;  %vm15694_vm0 = vcmask 31744  }
 0x561   : > { %v14050_v8 = vsel %vm15690_vm6, %v6778_v27, %v13912_v7  ;;  %vm15691_vm12 = vmmov %vm15688_vm3  ;;  %v6805_v9 = vsel %vm15693_vm14, %v14030_v17, %v14046_v23  ;;  %v6782_v54 = vpop.permute.xlu0 %6781 }
 0x562   : > { %11485 = vmatprep.subr.msk.mxu1 %vm15691_vm12, %v6393_v11  ;;  %v6806_v41 = vsel %vm15692_vm1, %v14040_v34, %v14050_v8  ;;  %vm15695_vm6 = vmmov %vm15688_vm3  ;;  %vm15699_vm1 = vcmask 31744  }
 0x563   : > { %11501 = vmatprep.subr.msk.mxu0 %vm15688_vm3, %v6806_v41  ;;  %11480 = vmatmul.mubr.msk.f32.vlgmr.msra.gmra.mxu1 %vm15694_vm0, %v13841_v16  ;;  %vm15696_vm12 = vmmov %vm15688_vm3  ;;  %vm15697_vm3 = vcmask 515072   ;;  %v6784_v16 = vpop.permute.xlu1 %6783 }
 0x564   : > { %11502 = vmatpush1.msk.msra.mxu0 %vm15695_vm6, %v6805_v9  ;;  %11486 = vmatpush1.msk.msra.mxu1 %vm15696_vm12, %v6392_v22  ;;  %v14075_v25 = vsel %vm15697_vm3, %v13865_v13, %v13753_v10  ;;  %vm15698_vm0 = vmmov %vm15695_vm6  ;;  %vm15701_vm6 = vcmask 498688   ;;  %v6396_v10 = vsel %vm15656_vm8, %v5698_v3, %v5664_v57  ;;  %v14093_v53 = vsel %vm15697_vm3, %v13596_v24, %v13865_v13 }
 0x565   : > { %6562 = vmatprep.mubr.f32.mxu1 %v15557_v59  ;;  %11491 = vmatprep.subr.msk.mxu1 %vm15698_vm0, %v6397_v6  ;;  %v14084_v44 = vsel %vm15701_vm6, %v15700_v48, %v13581_v20  ;;  %vm15702_vm12 = vmmov %vm15699_vm1  ;;  %v7149_v4 = vpop.permute.xlu0 %7148 }
 0x566   : > { %11503 = vmatmul.mubr.msk.f32.vlgmr.msra.gmra.mxu0 %vm15699_vm1, %v13986_v26  ;;  %vm15703_vm1 = vmmov %vm15698_vm0  ;;  %v6804_v20 = vsel %vm15619_vm15, %v14084_v44, %v14075_v25  ;;  %vm15704_vm0 = vcmask 506880   ;;  %vm15710_vm15 = vcmask 31744  }
 0x567   : > { %7255 = vmatprep.mubr.f32.mxu0 %v15557_v59  ;;  %11487 = vmatmul.mubr.msk.f32.vlgmr.msra.gmra.mxu1 %vm15702_vm12, %v13898_v39  ;;  %v7165_v2 = vsel %vm15704_vm0, %v7149_v4, %v14011_v52  ;;  %vm15705_vm6 = vmmov %vm15697_vm3  ;;  %vm15708_vm3 = vcmask 498688   ;;  %v7155_v13 = vpop.permute.xlu1 %7154 }
 0x568   : > { %11492 = vmatpush1.msk.msra.mxu1 %vm15703_vm1, %v6396_v10  ;;  %6704 = vmatprep.mubr.f32.mxu1 %v15557_v59  ;;  %v14104_v51 = vsel %vm15705_vm6, %v6782_v54, %v6784_v16  ;;  %vm15706_vm12 = vmmov %vm15703_vm1  ;;  %v6753_v24 = vsel %vm15708_vm3, %v13573_v30, %v15700_v48 }
 0x569   : > { %11498 = vmatprep.subr.msk.mxu1 %vm15706_vm12, %v6804_v20  ;;  %vm15707_vm14 = vmmov %vm15703_vm1  ;;  %v6803_v3 = vsel %vm15669_vm9, %v6753_v24, %v14093_v53  ;;  %v7153_v29 = vpop.permute.xlu0 %7152 }
 0x56a   : > { %11508 = vmatprep.subr.msk.mxu0 %vm15707_vm14, %v7165_v2  ;;  %vm15709_vm1 = vmmov %vm15708_vm3  ;;  %vm15716_vm3 = vcmask 31744  }
 0x56b   : > { %v6758_v49 = vsel %vm15709_vm1, %v6748_v40, %v6750_v15  ;;  %11493 = vmatmul.mubr.msk.f32.vlgmr.msra.gmra.mxu1 %vm15710_vm15, %v13898_v39  ;;  %vm15711_vm0 = vmmov %vm15705_vm6 }
 0x56c   : > { %v6791_v1 = vsel %vm15711_vm0, %v13912_v7, %v6782_v54  ;;  %vm15712_vm6 = vmmov %vm15706_vm12  ;;  %v6808_v30 = vsel %vm15634_vm5, %v6758_v49, %v14104_v51  ;;  %6973 = vmatprep.mubr.f32.mxu1 %v15557_v59  ;;  %vm15715_vm12 = vcmask 506880  }
 0x56d   : > { %11499 = vmatpush1.msk.msra.mxu1 %vm15712_vm6, %v6803_v3  ;;  %vm15713_vm14 = vmmov %vm15712_vm6  ;;  %v7167_v63 = vsel %vm15715_vm12, %v7153_v29, %v7155_v13  ;;  %v7147_v57 = vpop.permute.xlu0 %7146 }
 0x56e   : > { %11504 = vmatprep.subr.msk.mxu1 %vm15713_vm14, %v6808_v30  ;;  %vm15714_vm15 = vmmov %vm15709_vm1 }
 0x56f   : > { %v6757_v39 = vsel %vm15714_vm15, %v13860_v31, %v6748_v40  ;;  %11500 = vmatmul.mubr.msk.f32.vlgmr.msra.gmra.mxu1 %vm15716_vm3, %v13986_v26  ;;  %vm15717_vm1 = vmmov %vm15712_vm6  ;;  %v7157_v31 = vpop.permute.xlu1 %7156 }
 0x570   : > { %v6807_v7 = vsel %vm15637_vm11, %v6757_v39, %v6791_v1  ;;  %7115 = vmatprep.mubr.f32.mxu1 %v15557_v59  ;;  %vm15718_vm0 = vmmov %vm15715_vm12 }
 0x571   : > { %11505 = vmatpush1.msk.msra.mxu1 %vm15717_vm1, %v6807_v7  ;;  %v7164_v46 = vsel %vm15718_vm0, %v7147_v57, %v7149_v4  ;;  %vm15719_vm6 = vmmov %vm15717_vm1  ;;  %v7159_v32 = vpop.permute.xlu0 %7158 }
 0x572   : > { %11511 = vmatprep.subr.msk.mxu1 %vm15719_vm6, %v7167_v63  ;;  %vm15720_vm14 = vmmov %vm15717_vm1  ;;  %v7169_v40 = vsel %vm15718_vm0, %v7157_v31, %v7159_v32 }
 0x573   : > { %11509 = vmatpush1.msk.msra.mxu0 %vm15720_vm14, %v7164_v46  ;;  %vm15721_vm15 = vmmov %vm15716_vm3  ;;  %11506 = vmatmul.mubr.msk.f32.vlgmr.msra.gmra.mxu1 %vm15716_vm3, %v13986_v26  ;;  %v7161_v50 = vpop.permute.xlu1 %7160  ;;  %v7484_v26 = vsel %vm15522_vm10, %v13910_v28, %v13933_v42  ;;  %v11520_v42 = vld [vmem:[%s15198_s5 + $0x20] sm:$0xf] }
 0x574   : > { %11510 = vmatmul.mubr.msk.f32.vlgmr.msra.gmra.mxu0 %vm15721_vm15, %v11507_v12  ;;  %vm15722_vm12 = vmmov %vm15718_vm0  ;;  %7326 = vmatprep.mubr.f32.mxu1 %v15557_v59 }
 0x575   : > { %v7166_v62 = vsel %vm15722_vm12, %v14011_v52, %v7153_v29  ;;  %7397 = vmatprep.mubr.f32.mxu0 %v15557_v59  ;;  %vm15723_vm6 = vmmov %vm15718_vm0  ;;  %v7163_v52 = vpop.permute.xlu0 %7162 }
 0x576   : > { %11512 = vmatpush1.msk.msra.mxu1 %vm15717_vm1, %v7166_v62  ;;  %v7168_v19 = vsel %vm15723_vm6, %v7155_v13, %v7157_v31  ;;  %vm15724_vm14 = vmmov %vm15717_vm1  ;;  %v7171_v11 = vsel %vm15718_vm0, %v7161_v50, %v7163_v52 }
 0x577   : > { %11514 = vmatprep.subr.msk.mxu0 %vm15724_vm14, %v7169_v40  ;;  %vm15725_vm15 = vmmov %vm15717_vm1 }
 0x578   : > { %11515 = vmatpush1.msk.msra.mxu0 %vm15725_vm15, %v7168_v19  ;;  %vm15726_vm12 = vmmov %vm15716_vm3  ;;  %vm15732_vm15 = vnez %v15592_v56 }
 0x579   : > { %11513 = vmatmul.mubr.msk.f32.vlgmr.msra.gmra.mxu1 %vm15726_vm12, %v11507_v12  ;;  %vm15727_vm5 = vmmov %vm15716_vm3  ;;  %vm15728_vm3 = vnez %v15590_v35  ;;  %11521 = vmatprep.subr.msk.mxu0 %vm15717_vm1, %v7484_v26  ;;  %v7488_v28 = vsel %vm15732_vm15, %v14050_v8, %v14040_v34  ;;  %v7485_v34 = vsel %vm12996_vm4, %v14093_v53, %v6753_v24  ;;  %v7490_v8 = vsel %vm15649_vm13, %v14104_v51, %v6758_v49 }
 0x57a   : > { %11516 = vmatmul.mubr.msk.f32.vlgmr.msra.gmra.mxu0 %vm15727_vm5, %v11507_v12  ;;  %v7483_v15 = vsel %vm15728_vm3, %v13964_v60, %v13950_v5  ;;  %7468 = vmatprep.mubr.f32.mxu1 %v15557_v59  ;;  %vm15729_vm6 = vmmov %vm15718_vm0  ;;  %vm15734_vm0 = vcmask 31744   ;;  %v7486_v5 = vsel %vm12966_vm7, %v14075_v25, %v14084_v44  ;;  %v7487_v60 = vsel %vm15532_vm2, %v14046_v23, %v14030_v17 }
 0x57b   : > { %v7170_v27 = vsel %vm15729_vm6, %v7159_v32, %v7161_v50  ;;  %vm15730_vm5 = vmmov %vm15717_vm1  ;;  %7584 = vmatprep.mubr.f32.mxu0 %v15557_v59  ;;  %v7489_v17 = vsel %vm15656_vm8, %v6791_v1, %v6757_v39  ;;  %vm15785_vm3 = vcmask 31744   ;;  %vm15818_vm8 = vcmask 1022976  }
 0x57c   : > { %11522 = vmatpush1.msk.msra.mxu0 %vm15730_vm5, %v7483_v15  ;;  %vm15731_vm14 = vmmov %vm15717_vm1  ;;  %vm15819_vm4 = vcmask 31744  }
 0x57d   : > { %11517 = vmatprep.subr.msk.mxu1 %vm15731_vm14, %v7171_v11  ;;  %vm15733_vm12 = vmmov %vm15717_vm1  ;;  %v4839_v44 = vpop.f32.mrf.mxu1 }
 0x57e   : > { %11527 = vmatprep.subr.msk.mxu0 %vm15733_vm12, %v7488_v28  ;;  %11518 = vmatpush1.msk.msra.mxu1 %vm15717_vm1, %v7170_v27  ;;  %vm15735_vm6 = vmmov %vm15734_vm0 }
 0x57f   : > { %11519 = vmatmul.mubr.msk.f32.vlgmr.msra.gmra.mxu1 %vm15734_vm0, %v11507_v12  ;;  %11523 = vmatmul.mubr.msk.f32.vlgmr.msra.gmra.mxu0 %vm15735_vm6, %v11520_v42  ;;  %vm15736_vm5 = vmmov %vm15717_vm1  ;;  %v4841_v53 = vpop.f32.mrf.mxu1 }
 0x580   : > { %11524 = vmatprep.subr.msk.mxu1 %vm15736_vm5, %v7486_v5  ;;  %vm15737_vm14 = vmmov %vm15717_vm1  ;;  %7655 = vmatprep.mubr.f32.mxu1 %v15557_v59 }
 0x581   : > { %11528 = vmatpush1.msk.msra.mxu0 %vm15737_vm14, %v7487_v60  ;;  %vm15738_vm12 = vmmov %vm15717_vm1  ;;  %7726 = vmatprep.mubr.f32.mxu0 %v15557_v59 }
 0x582   : > { %11525 = vmatpush1.msk.msra.mxu1 %vm15738_vm12, %v7485_v34  ;;  %vm15739_vm6 = vmmov %vm15734_vm0  ;;  %vm15754_vm12 = vcmask 277504  }
 0x583   : > { %11530 = vmatprep.subr.msk.mxu1 %vm15717_vm1, %v7490_v8  ;;  %11526 = vmatmul.mubr.msk.f32.vlgmr.msra.gmra.mxu1 %vm15734_vm0, %v11520_v42  ;;  %vm15740_vm5 = vmmov %vm15717_vm1 }
 0x584   : > { %11529 = vmatmul.mubr.msk.f32.vlgmr.msra.gmra.mxu0 %vm15739_vm6, %v11520_v42  ;;  %11531 = vmatpush1.msk.msra.mxu1 %vm15740_vm5, %v7489_v17  ;;  %vm15741_vm14 = vmmov %vm15734_vm0  ;;  %vm15758_vm6 = vcmask 273408  }
 0x585   : > { %7797 = vmatprep.mubr.f32.mxu1 %v15557_v59  ;;  %8103 = vmatprep.mubr.f32.mxu0 %v15557_v59  ;;  %vm15757_vm0 = vmmov %vm15740_vm5 }
 0x586   : > { %vm15759_vm5 = vmmov %vm15757_vm0 }
 0x587   : > { %11532 = vmatmul.mubr.msk.f32.vlgmr.msra.gmra.mxu1 %vm15741_vm14, %v11520_v42  ;;  %vm15760_vm14 = vmmov %vm15757_vm0 }
 0x588   : > { %8174 = vmatprep.mubr.f32.mxu1 %v15557_v59  ;;  %vm15761_vm13 = vmmov %vm15754_vm12 }
 0x5e4   : > { %v4768_v23 = vpop.f32.mrf.mxu0 }
 0x5e6   : > { %v4770_v41 = vpop.f32.mrf.mxu0 }
 0x5e8   : > { %v4910_v9 = vpop.f32.mrf.mxu0 }
 0x5ea   : > { %v4912_v22 = vpop.f32.mrf.mxu0 }
 0x5ec   : > { %v5079_v54 = vpop.f32.mrf.mxu0 }
 0x5ed   : > { %v5080_v14 = vadd.f32 %v5079_v54, %v4768_v23 }
 0x5ee   : > { %v5081_v6 = vpop.f32.mrf.mxu0 }
 0x5ef   : > { %v5082_v55 = vadd.f32 %v5081_v6, %v4770_v41 }
 0x5f0   : > { %v5221_v25 = vpop.f32.mrf.mxu0 }
 0x5f1   : > { %v5222_v0 = vadd.f32 %v5221_v25, %v4910_v9 }
 0x5f2   : > { %v5223_v16 = vpop.f32.mrf.mxu0 }
 0x5f3   : > { %v5224_v38 = vadd.f32 %v5223_v16, %v4912_v22 }
 0x5f4   : > { %v5400_v48 = vpop.f32.mrf.mxu0 }
 0x5f5   : > { %v5618_v33 = vadd.f32 %v5400_v48, %v5080_v14 }
 0x5f6   : > { %v5402_v10 = vpop.f32.mrf.mxu0 }
 0x5f7   : > { %v5619_v37 = vadd.f32 %v5402_v10, %v5082_v55 }
 0x5f8   : > { %v5542_v4 = vpop.f32.mrf.mxu0 }
 0x5f9   : > { %v5622_v36 = vadd.f32 %v5542_v4, %v5222_v0 }
 0x5fa   : > { %v5544_v20 = vpop.f32.mrf.mxu0 }
 0x5fb   : > { %v5623_v14 = vadd.f32 %v5544_v20, %v5224_v38 }
 0x5fc   : > { %v5811_v2 = vpop.f32.mrf.mxu0 }
 0x5fd   : > { %v4981_v51 = vpop.f32.mrf.mxu1  ;;  %v6029_v18 = vadd.f32 %v5811_v2, %v5618_v33 }
 0x5fe   : > { %v5813_v24 = vpop.f32.mrf.mxu0 }
 0x5ff   : > { %v14209_v13 = vpop.f32.mrf.mxu1  ;;  %v6030_v54 = vadd.f32 %v5813_v24, %v5619_v37 }
 0x600   : > { %15742 = vst [vmem:[#allocation21_spill] sm:$0xff] %v14209_v13  ;;  %v5953_v49 = vpop.f32.mrf.mxu0 }
 0x601   : > { %v6033_v6 = vadd.f32 %v5953_v49, %v5622_v36 }
 0x602   : > { %v5150_v3 = vpop.f32.mrf.mxu1  ;;  %v14211_v29 = vpop.f32.mrf.mxu0 }
 0x603   : > { %15743 = vst [vmem:[#allocation22_spill] sm:$0xff] %v14211_v29  ;;  %v5151_v58 = vadd.f32 %v5150_v3, %v4839_v44 }
 0x604   : > { %v5152_v1 = vpop.f32.mrf.mxu1  ;;  %v6164_v30 = vpop.f32.mrf.mxu0 }
 0x605   : > { %v6382_v29 = vadd.f32 %v6164_v30, %v6029_v18 }
 0x606   : > { %v6166_v63 = vpop.f32.mrf.mxu0 }
 0x607   : > { %v6383_v25 = vadd.f32 %v6166_v63, %v6030_v54  ;;  %v15748_v22 = vld [vmem:[#allocation21_spill] sm:$0xff] }
 0x609   : > { %v5292_v39 = vpop.f32.mrf.mxu1 }
 0x60a   : > { %v15749_v10 = vld [vmem:[#allocation22_spill] sm:$0xff] }
 0x60b   : > { %v5294_v7 = vpop.f32.mrf.mxu1  ;;  %v6306_v57 = vpop.f32.mrf.mxu0 }
 0x60c   : > { %v5295_v55 = vadd.f32 %v5294_v7, %v15748_v22  ;;  %v6386_v4 = vadd.f32 %v6306_v57, %v6033_v6 }
 0x60d   : > { %v14213_v31 = vpop.f32.mrf.mxu0 }
 0x60e   : > { %v5471_v12 = vpop.f32.mrf.mxu1  ;;  %15744 = vst [vmem:[#allocation23_spill] sm:$0xff] %v14213_v31 }
 0x60f   : > { %v6493_v40 = vpop.f32.mrf.mxu0  ;;  %v5620_v31 = vadd.f32 %v5471_v12, %v5151_v58  ;;  %v6034_v58 = vadd.f32 %v15749_v10, %v5623_v14 }
 0x610   : > { %v5473_v46 = vpop.f32.mrf.mxu1  ;;  %v6711_v48 = vadd.f32 %v6493_v40, %v6382_v29 }
 0x611   : > { %v6495_v26 = vpop.f32.mrf.mxu0 }
 0x612   : > { %v6712_v37 = vadd.f32 %v6495_v26, %v6383_v25 }
 0x613   : > { %v5613_v62 = vpop.f32.mrf.mxu1  ;;  %v6635_v11 = vpop.f32.mrf.mxu0 }
 0x614   : > { %v6715_v29 = vadd.f32 %v6635_v11, %v6386_v4 }
 0x615   : > { %v5615_v32 = vpop.f32.mrf.mxu1  ;;  %v14215_v42 = vpop.f32.mrf.mxu0  ;;  %v15750_v20 = vld [vmem:[#allocation23_spill] sm:$0xff] }
 0x616   : > { %15745 = vst [vmem:[#allocation24_spill] sm:$0xff] %v14215_v42  ;;  %v5153_v42 = vadd.f32 %v5152_v1, %v4841_v53  ;;  %v6387_v49 = vadd.f32 %v15750_v20, %v6034_v58 }
 0x617   : > { %v5882_v19 = vpop.f32.mrf.mxu1  ;;  %v6904_v34 = vpop.f32.mrf.mxu0 }
 0x618   : > { %v5621_v41 = vadd.f32 %v5473_v46, %v5153_v42  ;;  %v6031_v9 = vadd.f32 %v5882_v19, %v5620_v31  ;;  %v7122_v18 = vadd.f32 %v6904_v34, %v6711_v48 }
 0x619   : > { %v5884_v50 = vpop.f32.mrf.mxu1  ;;  %v6906_v45 = vpop.f32.mrf.mxu0 }
 0x61a   : > { %v6032_v33 = vadd.f32 %v5884_v50, %v5621_v41  ;;  %v7123_v1 = vadd.f32 %v6906_v45, %v6712_v37  ;;  %v7816_v50 = vpop.permute.xlu1 %7815 }
 0x61b   : > { %v6024_v52 = vpop.f32.mrf.mxu1 }
 0x61d   : > { %v6026_v15 = vpop.f32.mrf.mxu1  ;;  %v15751_v57 = vld [vmem:[#allocation24_spill] sm:$0xff] }
 0x61e   : > { %v6716_v31 = vadd.f32 %v15751_v57, %v6387_v49 }
 0x61f   : > { %v6235_v27 = vpop.f32.mrf.mxu1 }
 0x620   : > { %v6384_v16 = vadd.f32 %v6235_v27, %v6031_v9 }
 0x621   : > { %v6237_v28 = vpop.f32.mrf.mxu1 }
 0x622   : > { %v6385_v38 = vadd.f32 %v6237_v28, %v6032_v33 }
 0x623   : > { %v6377_v5 = vpop.f32.mrf.mxu1 }
 0x625   : > { %v14217_v60 = vpop.f32.mrf.mxu1 }
 0x626   : > { %15746 = vst [vmem:[#allocation25_spill] sm:$0xff] %v14217_v60  ;;  %v7046_v47 = vpop.f32.mrf.mxu0 }
 0x627   : > { %v6564_v8 = vpop.f32.mrf.mxu1 }
 0x628   : > { %v7048_v61 = vpop.f32.mrf.mxu0  ;;  %v6713_v36 = vadd.f32 %v6564_v8, %v6384_v16 }
 0x629   : > { %v6566_v17 = vpop.f32.mrf.mxu1 }
 0x62a   : > { %v6714_v7 = vadd.f32 %v6566_v17, %v6385_v38 }
 0x62b   : > { %v6706_v35 = vpop.f32.mrf.mxu1 }
 0x62d   : > { %v14219_v43 = vpop.f32.mrf.mxu1  ;;  %v15752_v26 = vld [vmem:[#allocation25_spill] sm:$0xff] }
 0x62e   : > { %15747 = vst [vmem:[#allocation26_spill] sm:$0xff] %v14219_v43  ;;  %v5293_v43 = vadd.f32 %v5292_v39, %v4981_v51  ;;  %v5625_v51 = vadd.f32 %v5615_v32, %v5295_v55 }
 0x62f   : > { %v6975_v56 = vpop.f32.mrf.mxu1 }
 0x630   : > { %v5624_v0 = vadd.f32 %v5613_v62, %v5293_v43  ;;  %v6036_v43 = vadd.f32 %v6026_v15, %v5625_v51  ;;  %v7124_v12 = vadd.f32 %v6975_v56, %v6713_v36  ;;  %v7126_v62 = vadd.f32 %v7046_v47, %v6715_v29  ;;  %v7828_v56 = vpop.permute.xlu0 %7827 }
 0x631   : > { %v6977_v59 = vpop.f32.mrf.mxu1 }
 0x632   : > { %v6035_v24 = vadd.f32 %v6024_v52, %v5624_v0  ;;  %v6389_v52 = vadd.f32 %v15752_v26, %v6036_v43  ;;  %v7125_v28 = vadd.f32 %v6977_v59, %v6714_v7 }
 0x633   : > { %v7117_v60 = vpop.f32.mrf.mxu1 }
 0x634   : > { %v7257_v21 = vpop.f32.mrf.mxu0  ;;  %v6388_v63 = vadd.f32 %v6377_v5, %v6035_v24 }
 0x635   : > { %v7119_v13 = vpop.f32.mrf.mxu1  ;;  %v7475_v30 = vadd.f32 %v7257_v21, %v7122_v18  ;;  %v7127_v21 = vadd.f32 %v7048_v61, %v6716_v31  ;;  %v15753_v8 = vld [vmem:[#allocation26_spill] sm:$0xff] }
 0x636   : > { %v7259_v23 = vpop.f32.mrf.mxu0  ;;  %v6717_v27 = vadd.f32 %v6706_v35, %v6388_v63  ;;  %v6718_v17 = vadd.f32 %v15753_v8, %v6389_v52 }
 0x637   : > { %v7476_v40 = vadd.f32 %v7259_v23, %v7123_v1 }
 0x638   : > { %v7128_v54 = vadd.f32 %v7117_v60, %v6717_v27  ;;  %v7129_v59 = vadd.f32 %v7119_v13, %v6718_v17 }
 0x639   : > { %v7328_v44 = vpop.f32.mrf.mxu1 }
 0x63a   : > { %v7399_v3 = vpop.f32.mrf.mxu0  ;;  %v7477_v11 = vadd.f32 %v7328_v44, %v7124_v12 }
 0x63b   : > { %v7330_v53 = vpop.f32.mrf.mxu1  ;;  %v7479_v42 = vadd.f32 %v7399_v3, %v7126_v62 }
 0x63c   : > { %v7401_v2 = vpop.f32.mrf.mxu0  ;;  %v7478_v47 = vadd.f32 %v7330_v53, %v7125_v28 }
 0x63d   : > { %v7480_v9 = vadd.f32 %v7401_v2, %v7127_v21 }
 0x63f   : > { %v7470_v39 = vpop.f32.mrf.mxu1  ;;  %v7586_v46 = vpop.f32.mrf.mxu0 }
 0x640   : > { %v7804_v19 = vadd.f32 %v7586_v46, %v7475_v30  ;;  %v7481_v48 = vadd.f32 %v7470_v39, %v7128_v54 }
 0x641   : > { %v7472_v32 = vpop.f32.mrf.mxu1  ;;  %v7588_v45 = vpop.f32.mrf.mxu0 }
 0x642   : > { %v7818_v15 = vmul.f32 %v7816_v50, %v7804_v19  ;;  %v7805_v5 = vadd.f32 %v7588_v45, %v7476_v40  ;;  %v7482_v33 = vadd.f32 %v7472_v32, %v7129_v59  ;;  %v15755_v19 = vld [vmem:[#allocation4_spill] sm:$0xff] }
 0x643   : > { %v7657_v34 = vpop.f32.mrf.mxu1  ;;  %vm15756_vm1 = vnez %v15755_v19 }
 0x644   : > { %v7806_v23 = vadd.f32 %v7657_v34, %v7477_v11  ;;  %v7728_v41 = vpop.f32.mrf.mxu0  ;;  %v7830_v14 = vadd.f32 %v7828_v56, %v7818_v15  ;;  %v7819_v6 = vmul.f32 %v7816_v50, %v7805_v5 }
 0x645   : > { %v7808_v25 = vadd.f32 %v7728_v41, %v7479_v42  ;;  %v7659_v35 = vpop.f32.mrf.mxu1 }
 0x646   : > { %v7807_v44 = vadd.f32 %v7659_v35, %v7478_v47  ;;  %v7730_v61 = vpop.f32.mrf.mxu0  ;;  %v7831_v3 = vadd.f32 %v7828_v56, %v7819_v6  ;;  %v7820_v16 = vmul.f32 %v7816_v50, %v7806_v23  ;;  %v7838_v58 = vmax.f32 %v7830_v14, 0.0 }
 0x647   : > { %v7822_v22 = vmul.f32 %v7816_v50, %v7808_v25  ;;  %v7809_v55 = vadd.f32 %v7730_v61, %v7480_v9  ;;  %v7799_v0 = vpop.f32.mrf.mxu1 }
 0x648   : > { %v7821_v10 = vmul.f32 %v7816_v50, %v7807_v44  ;;  %v7810_v60 = vadd.f32 %v7799_v0, %v7481_v48  ;;  %v7839_v4 = vmax.f32 %v7831_v3, 0.0  ;;  %v7832_v49 = vadd.f32 %v7828_v56, %v7820_v16 }
 0x649   : > { %v7834_v37 = vadd.f32 %v7828_v56, %v7822_v22  ;;  %v7823_v18 = vmul.f32 %v7816_v50, %v7809_v55  ;;  %v7801_v53 = vpop.f32.mrf.mxu1 }
 0x64a   : > { %v7824_v2 = vmul.f32 %v7816_v50, %v7810_v60  ;;  %v7811_v51 = vadd.f32 %v7801_v53, %v7482_v33  ;;  %v7854_v24 = vcombine.low %v7838_v58, %v7839_v4  ;;  %v7833_v13 = vadd.f32 %v7828_v56, %v7821_v10  ;;  %v15770_v60 = vld [vmem:[#allocation18_spill] sm:$0xff]  ;;  %v15771_v4 = vld [vmem:[#allocation13_spill] sm:$0xff] }
 0x64b   : > { %v7835_v38 = vadd.f32 %v7828_v56, %v7823_v18  ;;  %v7842_v29 = vmax.f32 %v7834_v37, 0.0  ;;  %v7840_v12 = vmax.f32 %v7832_v49, 0.0  ;;  %v15773_v18 = vld [vmem:[#allocation17_spill] sm:$0xff] }
 0x64c   : > { %v7836_v36 = vadd.f32 %v7828_v56, %v7824_v2  ;;  %v7825_v20 = vmul.f32 %v7816_v50, %v7811_v51  ;;  %7858 = vrot.lane.b32.xlu1 %v7854_v24, %s11801_s15  ;;  %v7841_v39 = vmax.f32 %v7833_v13, 0.0 }
 0x64d   : > { %v7843_v1 = vmax.f32 %v7835_v38, 0.0 }
 0x64e   : > { %v7837_v30 = vadd.f32 %v7828_v56, %v7825_v20  ;;  %v7844_v63 = vmax.f32 %v7836_v36, 0.0  ;;  %v7855_v57 = vcombine.low %v7840_v12, %v7841_v39  ;;  %v15776_v20 = vld [vmem:[#allocation8_spill] sm:$0xff] }
 0x64f   : > { %v7856_v43 = vcombine.low %v7842_v29, %v7843_v1 }
 0x650   : > { %v7845_v7 = vmax.f32 %v7837_v30, 0.0 }
 0x651   : > { %7862 = vrot.lane.b32.xlu0 %v7856_v43, %s11801_s15 }
 0x652   : > { %v7857_v46 = vcombine.low %v7844_v63, %v7845_v7 }
 0x654   : > { %7864 = vrot.lane.b32.xlu1 %v7857_v46, %s11801_s15 }
 0x655   : > { %7860 = vrot.lane.b32.xlu0 %v7855_v57, %s11801_s15 }
 0x6be   : > { %v7859_v31 = vpop.permute.xlu1 %7858 }
 0x6bf   : > { %v7866_v62 = vrot.slane %v7859_v31, 4 }
 0x6c1   : > { %v7870_v40 = vsel %vm15754_vm12, %v7866_v62, %v7859_v31  ;;  %v14454_v31 = vld [vmem:[%s15200_s7 + $0x8] sm:$0xff] }
 0x6c2   : > { %7882 = vst.msk [vmem:[#allocation2] sm:$0xff] %vm15756_vm1, %v7870_v40  ;;  %vm15762_vm1 = vmmov %vm15754_vm12 }
 0x6c3   : > { %v7863_v32 = vpop.permute.xlu0 %7862 }
 0x6c4   : > { %v7868_v26 = vrot.slane %v7863_v32, 4 }
 0x6c6   : > { %v7865_v50 = vpop.permute.xlu1 %7864 }
 0x6c7   : > { %v7861_v52 = vpop.permute.xlu0 %7860  ;;  %v7869_v27 = vrot.slane %v7865_v50, 4 }
 0x6c8   : > { %v7867_v28 = vrot.slane %v7861_v52, 4 }
 0x6c9   : > { %v7875_v11 = vsel %vm15757_vm0, %v7868_v26, %v7869_v27  ;;  %7886 = vst.msk [vmem:[#allocation2 + $0x20] sm:$0xf] %vm15758_vm6, %v7869_v27  ;;  %v7887_v15 = vld [vmem:[#allocation2] sm:$0xf]  ;;  %vm15764_vm0 = vcmask 1031168   ;;  %vm15765_vm6 = vcmask 1022976  }
 0x6ca   : > { %v7871_v45 = vsel %vm15759_vm5, %v7866_v62, %v7867_v28  ;;  %v7873_v21 = vsel %vm15760_vm14, %v7867_v28, %v7868_v26  ;;  %v14239_v42 = vsel %vm15761_vm13, %v7875_v11, %v7865_v50  ;;  %7889 = vrot.lane.b32.xlu1 %v7887_v15, %s11802_s16  ;;  %vm15763_vm13 = vcmask 273424   ;;  %vm15766_vm5 = vmmov %vm15765_vm6 }
 0x6cb   : > { %v14242_v5 = vsel %vm15754_vm12, %v7871_v45, %v7861_v52  ;;  %v14245_v34 = vsel %vm15762_vm1, %v7873_v21, %v7863_v32  ;;  %7885 = vst [vmem:[#allocation2 + $0x18] sm:$0xff] %v14239_v42  ;;  %v14326_v54 = vcombine.high %v14239_v42, %v14239_v42  ;;  %vm15767_vm14 = vcmask 1039360  }
 0x6cc   : > { %7883 = vst [vmem:[#allocation2 + $0x8] sm:$0xff] %v14242_v5  ;;  %7884 = vst [vmem:[#allocation2 + $0x10] sm:$0xff] %v14245_v34  ;;  %7998 = vrot.lane.b32.xlu0 %v14242_v5, %s11804_s18  ;;  %v14259_v56 = vcombine.high %v14245_v34, %v14245_v34  ;;  %v14267_v8 = vcombine.high %v14242_v5, %v14242_v5  ;;  %vm15772_vm1 = vnez %v15771_v4  ;;  %v15787_v32 = vmov 0.0  }
 0x6cd   : > { %vm15768_vm12 = vmmov %vm15767_vm14 }
 0x6ce   : > { %7919 = vrot.lane.b32.xlu1 %v14242_v5, %s11803_s17 }
 0x6d0   : > { %8002 = vrot.lane.b32.xlu0 %v14245_v34, %s11804_s18 }
 0x6d2   : > { %7923 = vrot.lane.b32.xlu1 %v14245_v34, %s11803_s17  ;;  %v7893_v17 = vld [vmem:[#allocation2 + $0x1c] sm:$0xff] }
 0x6d4   : > { %8004 = vrot.lane.b32.xlu0 %v14259_v56, %s11804_s18 }
 0x6d6   : > { %7953 = vrot.lane.b32.xlu1 %v14242_v5, %s11805_s19 }
 0x6d8   : > { %7921 = vrot.lane.b32.xlu0 %v14267_v8, %s11803_s17 }
 0x6da   : > { %7957 = vrot.lane.b32.xlu1 %v14245_v34, %s11805_s19 }
 0x6dc   : > { %7955 = vrot.lane.b32.xlu0 %v14267_v8, %s11805_s19 }
 0x6de   : > { %8981 = vrot.lane.b32.xlu1 %v14242_v5, %s11806_s20 }
 0x6e0   : > { %7925 = vrot.lane.b32.xlu0 %v14259_v56, %s11803_s17 }
 0x6e2   : > { %8985 = vrot.lane.b32.xlu1 %v14245_v34, %s11806_s20 }
 0x6e4   : > { %7959 = vrot.lane.b32.xlu0 %v14259_v56, %s11805_s19 }
 0x6e6   : > { %9015 = vrot.lane.b32.xlu1 %v14242_v5, %s11807_s21 }
 0x6e8   : > { %8983 = vrot.lane.b32.xlu0 %v14267_v8, %s11806_s20 }
 0x6ea   : > { %8000 = vrot.lane.b32.xlu1 %v14267_v8, %s11804_s18 }
 0x6ec   : > { %7895 = vrot.lane.b32.xlu0 %v7893_v17, %s11802_s16 }
 0x6ee   : > { %9019 = vrot.lane.b32.xlu1 %v14245_v34, %s11807_s21 }
 0x6f0   : > { %9017 = vrot.lane.b32.xlu0 %v14267_v8, %s11807_s21 }
 0x6f2   : > { %9394 = vrot.lane.b32.xlu1 %v14242_v5, %s11808_s22 }
 0x6f4   : > { %8987 = vrot.lane.b32.xlu0 %v14259_v56, %s11806_s20 }
 0x6f6   : > { %9398 = vrot.lane.b32.xlu1 %v14245_v34, %s11808_s22 }
 0x6f8   : > { %9021 = vrot.lane.b32.xlu0 %v14259_v56, %s11807_s21 }
 0x6fa   : > { %9400 = vrot.lane.b32.xlu1 %v14259_v56, %s11808_s22 }
 0x6fc   : > { %9396 = vrot.lane.b32.xlu0 %v14267_v8, %s11808_s22 }
 0x6fe   : > { %10076 = vrot.lane.b32.xlu1 %v14267_v8, %s11809_s24 }
 0x700   : > { %10074 = vrot.lane.b32.xlu0 %v14242_v5, %s11809_s24 }
 0x702   : > { %8006 = vrot.lane.b32.xlu1 %v14239_v42, %s11804_s18 }
 0x704   : > { %10078 = vrot.lane.b32.xlu0 %v14245_v34, %s11809_s24 }
 0x706   : > { %7927 = vrot.lane.b32.xlu1 %v14239_v42, %s11803_s17 }
 0x708   : > { %10108 = vrot.lane.b32.xlu0 %v14242_v5, %s11810_s25 }
 0x70a   : > { %7961 = vrot.lane.b32.xlu1 %v14239_v42, %s11805_s19 }
 0x70c   : > { %9402 = vrot.lane.b32.xlu0 %v14239_v42, %s11808_s22 }
 0x70e   : > { %8989 = vrot.lane.b32.xlu1 %v14239_v42, %s11806_s20 }
 0x710   : > { %8008 = vrot.lane.b32.xlu0 %v14326_v54, %s11804_s18 }
 0x712   : > { %9023 = vrot.lane.b32.xlu1 %v14239_v42, %s11807_s21 }
 0x714   : > { %7929 = vrot.lane.b32.xlu0 %v14326_v54, %s11803_s17 }
 0x716   : > { %9404 = vrot.lane.b32.xlu1 %v14326_v54, %s11808_s22 }
 0x718   : > { %7963 = vrot.lane.b32.xlu0 %v14326_v54, %s11805_s19 }
 0x71c   : > { %8991 = vrot.lane.b32.xlu0 %v14326_v54, %s11806_s20 }
 0x720   : > { %9025 = vrot.lane.b32.xlu0 %v14326_v54, %s11807_s21 }
 0x73c   : > { %v7890_v47 = vpop.permute.xlu1 %7889 }
 0x73d   : > { %7892 = vst.msk [vmem:[#allocation2] sm:$0xf] %vm15763_vm13, %v7890_v47  ;;  %vm15774_vm13 = vmmov %vm15766_vm5 }
 0x73e   : > { %v14345_v23 = vpop.permute.xlu0 %7998 }
 0x740   : > { %v14347_v41 = vpop.permute.xlu1 %7919 }
 0x742   : > { %v8003_v9 = vpop.permute.xlu0 %8002 }
 0x744   : > { %v14349_v14 = vld [vmem:[#allocation2] sm:$0xff]  ;;  %v7924_v6 = vpop.permute.xlu1 %7923 }
 0x745   : > { %7915 = vrot.lane.b32.xlu0 %v14349_v14, %s11803_s17  ;;  %7994 = vrot.lane.b32.xlu1 %v14349_v14, %s11804_s18  ;;  %v14376_v22 = vcombine.high %v14349_v14, %v14349_v14 }
 0x746   : > { %v14355_v25 = vpop.permute.xlu0 %8004 }
 0x747   : > { %v14359_v35 = vsel %vm15764_vm0, %v8003_v9, %v14355_v25  ;;  %vm15775_vm0 = vmmov %vm15768_vm12 }
 0x748   : > { %v14361_v59 = vpop.permute.xlu1 %7953 }
 0x749   : > { %8977 = vrot.lane.b32.xlu0 %v14349_v14, %s11806_s20  ;;  %7949 = vrot.lane.b32.xlu1 %v14349_v14, %s11805_s19 }
 0x74a   : > { %v7922_v48 = vpop.permute.xlu0 %7921 }
 0x74b   : > { %v14368_v44 = vsel %vm15765_vm6, %v7922_v48, %v7924_v6  ;;  %v14380_v55 = vsel %vm15766_vm5, %v14347_v41, %v7922_v48  ;;  %vm15777_vm6 = vnez %v15776_v20  ;;  %vm15779_vm5 = vcmask 760832  }
 0x74c   : > { %v7958_v61 = vpop.permute.xlu1 %7957 }
 0x74d   : > { %9390 = vrot.lane.b32.xlu0 %v14349_v14, %s11808_s22  ;;  %9011 = vrot.lane.b32.xlu1 %v14349_v14, %s11807_s21 }
 0x74e   : > { %v7956_v3 = vpop.permute.xlu0 %7955 }
 0x74f   : > { %v14384_v0 = vsel %vm15767_vm14, %v14361_v59, %v7956_v3  ;;  %v14387_v33 = vsel %vm15768_vm12, %v7956_v3, %v7958_v61  ;;  %vm15780_vm14 = vcmask 1031168   ;;  %v15803_v3 = vld [vmem:[#allocation7_spill] sm:$0xff] }
 0x750   : > { %v14405_v2 = vpop.permute.xlu1 %8981  ;;  %vm15781_vm12 = vmmov %vm15780_vm14 }
 0x751   : > { %7917 = vrot.lane.b32.xlu0 %v14376_v22, %s11803_s17  ;;  %7996 = vrot.lane.b32.xlu1 %v14376_v22, %s11804_s18 }
 0x752   : > { %v14411_v51 = vpop.permute.xlu0 %7925 }
 0x753   : > { %v14415_v24 = vsel %vm15774_vm13, %v7924_v6, %v14411_v51  ;;  %vm15782_vm13 = vcmask 1043456  }
 0x754   : > { %v8986_v13 = vpop.permute.xlu1 %8985 }
 0x755   : > { %7951 = vrot.lane.b32.xlu0 %v14376_v22, %s11805_s19  ;;  %10072 = vrot.lane.b32.xlu1 %v14376_v22, %s11809_s24 }
 0x756   : > { %v14421_v38 = vpop.permute.xlu0 %7959 }
 0x757   : > { %v14425_v36 = vsel %vm15775_vm0, %v7958_v61, %v14421_v38  ;;  %vm15783_vm0 = vmmov %vm15782_vm13 }
 0x758   : > { %v14435_v30 = vpop.permute.xlu1 %9015 }
 0x759   : > { %8979 = vrot.lane.b32.xlu0 %v14376_v22, %s11806_s20  ;;  %10106 = vrot.lane.b32.xlu1 %v14376_v22, %s11810_s25 }
 0x75a   : > { %v8984_v39 = vpop.permute.xlu0 %8983 }
 0x75b   : > { %v14442_v43 = vsel %vm15779_vm5, %v8984_v39, %v8986_v13  ;;  %vm15784_vm5 = vcmask 523264  }
 0x75c   : > { %v8001_v63 = vpop.permute.xlu1 %8000 }
 0x75d   : > { %9013 = vrot.lane.b32.xlu0 %v14376_v22, %s11807_s21  ;;  %v8014_v7 = vsel %vm15780_vm14, %v14345_v23, %v8001_v63  ;;  %v8015_v12 = vsel %vm15781_vm12, %v8001_v63, %v8003_v9  ;;  %vm15786_vm14 = vcmask 535824   ;;  %vm15788_vm12 = vcmask 760832  }
 0x75e   : > { %v7896_v46 = vpop.permute.xlu0 %7895  ;;  %11537 = vmatprep.subr.msk.mxu1 %vm15782_vm13, %v8015_v12  ;;  %v14465_v50 = vsel %vm15788_vm12, %v14405_v2, %v8984_v39  ;;  %vm15789_vm13 = vcmask 777216  }
 0x75f   : > { %v7897_v57 = vrot.slane %v7896_v46, 4  ;;  %11538 = vmatpush1.msk.msra.mxu1 %vm15783_vm0, %v8014_v7  ;;  %vm15790_vm0 = vmmov %vm15789_vm13 }
 0x760   : > { %v9020_v40 = vpop.permute.xlu1 %9019  ;;  %11539 = vmatmul.mubr.msk.f32.vlgmr.msra.gmra.mxu1 %vm15785_vm3, %v14454_v31  ;;  %vm15791_vm3 = vmmov %vm15788_vm12 }
 0x761   : > { %v7898_v62 = vsel %vm15784_vm5, %v7896_v46, %v7897_v57  ;;  %9392 = vrot.lane.b32.xlu0 %v14376_v22, %s11808_s22  ;;  %8316 = vmatprep.mubr.f32.mxu1 %v15787_v32  ;;  %vm15792_vm5 = vmmov %vm15790_vm0 }
 0x762   : > { %7900 = vst.msk [vmem:[#allocation2 + $0x20] sm:$0xf] %vm15786_vm14, %v7898_v62  ;;  %v9018_v19 = vpop.permute.xlu0 %9017  ;;  %vm15793_vm14 = vcmask 769024  }
 0x763   : > { %v14469_v26 = vsel %vm15789_vm13, %v14435_v30, %v9018_v19  ;;  %v14472_v52 = vsel %vm15790_vm0, %v9018_v19, %v9020_v40  ;;  %vm15795_vm12 = vmmov %vm15793_vm14  ;;  %vm15799_vm13 = vcmask 1022976   ;;  %vm15800_vm0 = vcmask 1039360  }
 0x764   : > { %v14490_v21 = vpop.permute.xlu1 %9394 }
 0x765   : > { %10112 = vrot.lane.b32.xlu0 %v14245_v34, %s11810_s25 }
 0x766   : > { %v8988_v15 = vpop.permute.xlu0 %8987 }
 0x767   : > { %v14495_v17 = vsel %vm15791_vm3, %v8986_v13, %v8988_v15  ;;  %vm15802_vm3 = vmmov %vm15795_vm12 }
 0x768   : > { %v9399_v47 = vpop.permute.xlu1 %9398 }
 0x769   : > { %v7905_v9 = vld [vmem:[#allocation2 + $0x20] sm:$0xf]  ;;  %10104 = vrot.lane.b32.xlu0 %v14349_v14, %s11810_s25 }
 0x76a   : > { %v9022_v6 = vpop.permute.xlu0 %9021  ;;  %8010 = vrot.lane.b32.xlu1 %v7905_v9, %s11804_s18  ;;  %v9378_v57 = vld [vmem:[#allocation2 + $0x20] sm:$0xf]  ;;  %s15180_s18 = scalar_lea.vmem %s15202_s9, %s11894_s23 }
 0x76b   : > { %v14501_v48 = vsel %vm15792_vm5, %v9020_v40, %v9022_v6  ;;  %v8967_v45 = vld [vmem:[#allocation2 + $0x20] sm:$0xf]  ;;  %vm15804_vm5 = vnez %v15803_v3 }
 0x76c   : > { %v9401_v13 = vpop.permute.xlu1 %9400 }
 0x76d   : > { %10082 = vrot.lane.b32.xlu0 %v14239_v42, %s11809_s24  ;;  %v14514_v39 = vsel %vm15793_vm14, %v9399_v47, %v9401_v13  ;;  %vm15806_vm14 = vcmask 760832  }
 0x76e   : > { %v14516_v63 = vpop.permute.xlu0 %9396  ;;  %7931 = vrot.lane.b32.xlu1 %v7905_v9, %s11803_s17 }
 0x76f   : > { %15794 = vst [vmem:[#allocation21_spill] sm:$0xff] %v14516_v63  ;;  %v14521_v7 = vsel %vm15795_vm12, %v14516_v63, %v9399_v47  ;;  %vm15807_vm12 = vcmask 777216  }
 0x770   : > { %15796 = vst [vmem:[#allocation22_spill] sm:$0xff] %v14521_v7  ;;  %v14523_v12 = vpop.permute.xlu1 %10076 }
 0x771   : > { %15797 = vst [vmem:[#allocation23_spill] sm:$0xff] %v14523_v12  ;;  %10116 = vrot.lane.b32.xlu0 %v14239_v42, %s11810_s25 }
 0x772   : > { %v14527_v46 = vpop.permute.xlu0 %10074  ;;  %7965 = vrot.lane.b32.xlu1 %v7905_v9, %s11805_s19  ;;  %v10060_v9 = vld [vmem:[#allocation2 + $0x20] sm:$0xf] }
 0x774   : > { %v14530_v62 = vpop.permute.xlu1 %8006 }
 0x775   : > { %9406 = vrot.lane.b32.xlu0 %v9378_v57, %s11808_s22 }
 0x776   : > { %v14533_v40 = vpop.permute.xlu0 %10078  ;;  %10110 = vrot.lane.b32.xlu1 %v14267_v8, %s11810_s25 }
 0x777   : > { %15798 = vst [vmem:[#allocation24_spill] sm:$0xff] %v14533_v40 }
 0x778   : > { %v14537_v19 = vpop.permute.xlu1 %7927 }
 0x779   : > { %10487 = vrot.lane.b32.xlu0 %v14242_v5, %s11811_s28  ;;  %v14551_v57 = vsel %vm15799_vm13, %v14411_v51, %v14537_v19  ;;  %vm15808_vm13 = vmmov %vm15806_vm14 }
 0x77a   : > { %v14541_v47 = vpop.permute.xlu0 %10108  ;;  %10070 = vrot.lane.b32.xlu1 %v14349_v14, %s11809_s24 }
 0x77c   : > { %v14545_v28 = vpop.permute.xlu1 %7961 }
 0x77d   : > { %10086 = vrot.lane.b32.xlu0 %v10060_v9, %s11809_s24  ;;  %v14556_v5 = vsel %vm15800_vm0, %v14421_v38, %v14545_v28  ;;  %vm15809_vm0 = vmmov %vm15807_vm12 }
 0x77e   : > { %v14558_v27 = vpop.permute.xlu0 %9402  ;;  %8993 = vrot.lane.b32.xlu1 %v8967_v45, %s11806_s20 }
 0x77f   : > { %15801 = vst [vmem:[#allocation25_spill] sm:$0xff] %v14558_v27  ;;  %v14563_v11 = vsel %vm15802_vm3, %v9401_v13, %v14558_v27  ;;  %vm15813_vm3 = vcmask 1031168  }
 0x780   : > { %v8990_v38 = vpop.permute.xlu1 %8989 }
 0x781   : > { %10120 = vrot.lane.b32.xlu0 %v10060_v9, %s11810_s25  ;;  %v14580_v13 = vsel %vm15806_vm14, %v8988_v15, %v8990_v38  ;;  %vm15814_vm14 = vmmov %vm15813_vm3 }
 0x782   : > { %v14574_v10 = vpop.permute.xlu0 %8008  ;;  %9027 = vrot.lane.b32.xlu1 %v8967_v45, %s11807_s21 }
 0x784   : > { %v9024_v37 = vpop.permute.xlu1 %9023 }
 0x785   : > { %10491 = vrot.lane.b32.xlu0 %v14245_v34, %s11811_s28  ;;  %v14583_v61 = vsel %vm15807_vm12, %v9022_v6, %v9024_v37  ;;  %vm15815_vm12 = vcmask 1043456  }
 0x786   : > { %v14585_v1 = vpop.permute.xlu0 %7929  ;;  %10080 = vrot.lane.b32.xlu1 %v14259_v56, %s11809_s24 }
 0x789   : > { %10493 = vrot.lane.b32.xlu0 %v14259_v56, %s11811_s28 }
 0x78a   : > { %v14599_v15 = vpop.permute.xlu0 %7963  ;;  %10084 = vrot.lane.b32.xlu1 %v14326_v54, %s11809_s24 }
 0x78d   : > { %10497 = vrot.lane.b32.xlu0 %v14326_v54, %s11811_s28 }
 0x78e   : > { %v14605_v6 = vpop.permute.xlu0 %8991  ;;  %10114 = vrot.lane.b32.xlu1 %v14259_v56, %s11810_s25  ;;  %v15811_v56 = vld [vmem:[#allocation20_spill] sm:$0xff] }
 0x78f   : > { %v14615_v34 = vsel %vm15808_vm13, %v8990_v38, %v14605_v6  ;;  %v15812_v38 = vmov 1   ;;  %vm15816_vm13 = vmmov %vm15813_vm3 }
 0x792   : > { %v14609_v9 = vpop.permute.xlu0 %9025  ;;  %10118 = vrot.lane.b32.xlu1 %v14326_v54, %s11810_s25  ;;  %v11149_v54 = vld [vmem:[%s15201_s8] sm:$0xff] }
 0x793   : > { %v14619_v45 = vsel %vm15809_vm0, %v9024_v37, %v14609_v9  ;;  %v10471_v37 = vld [vmem:[#allocation2 + $0x20] sm:$0xf]  ;;  %11152 = vperm.xlu0 %11783, %v11149_v54   ;;  %vm15817_vm0 = vmmov %vm15815_vm12 }
 0x794   : > { %vm15820_vm7 = vmmov %vm15817_vm0 }
 0x796   : > { %10485 = vrot.lane.b32.xlu1 %v14376_v22, %s11811_s28  ;;  %v14642_v22 = vpop.permute.xlu1 %9404 }
 0x797   : > { %11785 = vset.pattern.permute.xlu0 %v15812_v38 }
 0x79a   : > { %10489 = vrot.lane.b32.xlu1 %v14267_v8, %s11811_s28 }
 0x79e   : > { %10483 = vrot.lane.b32.xlu1 %v14349_v14, %s11811_s28 }
 0x7a2   : > { %10495 = vrot.lane.b32.xlu1 %v14239_v42, %s11811_s28 }
 0x7a6   : > { %10499 = vrot.lane.b32.xlu1 %v10471_v37, %s11811_s28 }
 0x7aa   : > { %11164 = vperm.xlu1 %11784, %v11149_v54   ;;  %v8017_v54 = vsel %vm15816_vm13, %v14355_v25, %v14530_v62  ;;  %vm15824_vm13 = vmmov %vm15817_vm0  ;;  %v15825_v25 = vld [vmem:[#allocation6_spill] sm:$0xff] }
 0x7b7   : > { %v7916_v8 = vpop.permute.xlu0 %7915  ;;  %v7995_v58 = vpop.permute.xlu1 %7994 }
 0x7bb   : > { %v8978_v49 = vpop.permute.xlu0 %8977  ;;  %v7950_v14 = vpop.permute.xlu1 %7949 }
 0x7bf   : > { %v14644_v12 = vpop.permute.xlu0 %9390  ;;  %v9012_v42 = vpop.permute.xlu1 %9011 }
 0x7c3   : > { %v7918_v40 = vpop.permute.xlu0 %7917  ;;  %v7997_v27 = vpop.permute.xlu1 %7996 }
 0x7c4   : > { %v8012_v63 = vsel %vm15813_vm3, %v7995_v58, %v7997_v27  ;;  %v8013_v7 = vsel %vm15814_vm14, %v7997_v27, %v14345_v23  ;;  %v7933_v37 = vsel %vm15818_vm8, %v7916_v8, %v7918_v40  ;;  %vm15821_vm3 = vmmov %vm15818_vm8  ;;  %vm15822_vm14 = vcmask 1039360  }
 0x7c5   : > { %11534 = vmatprep.subr.msk.mxu0 %vm15815_vm12, %v8013_v7  ;;  %v7934_v58 = vsel %vm15821_vm3, %v7918_v40, %v14347_v41  ;;  %vm15823_vm12 = vmmov %vm15822_vm14  ;;  %vm15826_vm8 = vnez %v15825_v25  ;;  %v15827_v7 = vld [vmem:[#allocation5_spill] sm:$0xff]  ;;  %v14678_v41 = vld [vmem:[%s15200_s7] sm:$0xff]  ;;  %v15835_v40 = vsel %vm15777_vm6, %v14415_v24, %v14425_v36 }
 0x7c6   : > { %11535 = vmatpush1.msk.msra.mxu0 %vm15817_vm0, %v8012_v63 }
 0x7c7   : > { %v7952_v38 = vpop.permute.xlu0 %7951  ;;  %11536 = vmatmul.mubr.msk.f32.vlgmr.msra.gmra.mxu0 %vm15819_vm4, %v14454_v31  ;;  %11540 = vmatprep.subr.msk.mxu0 %vm15820_vm7, %v8017_v54  ;;  %vm15828_vm4 = vnez %v15827_v7  ;;  %vm15829_vm7 = vmmov %vm15817_vm0  ;;  %vm15830_vm0 = vcmask 31744  }
 0x7c8   : > { %v7967_v23 = vsel %vm15822_vm14, %v7950_v14, %v7952_v38  ;;  %v7968_v27 = vsel %vm15823_vm12, %v7952_v38, %v14361_v59  ;;  %11541 = vmatpush1.msk.msra.mxu0 %vm15824_vm13, %v14359_v35  ;;  %8245 = vmatprep.mubr.f32.mxu0 %v15787_v32  ;;  %vm15831_vm3 = vmmov %vm15829_vm7  ;;  %v15832_v35 = vsel %vm15804_vm5, %v14551_v57, %v14556_v5  ;;  %v15837_v14 = vld [vmem:[#allocation9_spill] sm:$0xff] }
 0x7c9   : > { %v7983_v63 = vsel %vm15826_vm8, %v7933_v37, %v7967_v23  ;;  %v7984_v8 = vsel %vm15828_vm4, %v7934_v58, %v7968_v27  ;;  %vm15833_vm14 = vmmov %vm15831_vm3  ;;  %v8635_v38 = vsel %vm15522_vm10, %v7968_v27, %v7934_v58  ;;  %v14709_v58 = vld [vmem:[%s15200_s7 + $0x10] sm:$0xff] }
 0x7ca   : > { %11546 = vmatprep.subr.msk.mxu0 %vm15829_vm7, %v7984_v8  ;;  %vm15834_vm12 = vmmov %vm15830_vm0  ;;  %v15839_v8 = vld [vmem:[#allocation10_spill] sm:$0xff] }
 0x7cb   : > { %v8980_v54 = vpop.permute.xlu0 %8979  ;;  %11542 = vmatmul.mubr.msk.f32.vlgmr.msra.gmra.mxu0 %vm15830_vm0, %v14454_v31  ;;  %vm15836_vm13 = vmmov %vm15831_vm3  ;;  %vm15840_vm0 = vnez %v15839_v8 }
 0x7cc   : > { %11547 = vmatpush1.msk.msra.mxu0 %vm15831_vm3, %v7983_v63  ;;  %8414 = vmatprep.mubr.f32.mxu0 %v15787_v32  ;;  %v14697_v63 = vpop.permute.xlu1 %10072  ;;  %vm15838_vm7 = vmmov %vm15831_vm3 }
 0x7cd   : > { %11552 = vmatprep.subr.msk.mxu0 %vm15833_vm14, %v15832_v35  ;;  %v8634_v35 = vsel %vm15840_vm0, %v7967_v23, %v7933_v37  ;;  %vm15841_vm3 = vmmov %vm15834_vm12  ;;  %v15844_v37 = vsel %vm15732_vm15, %v14556_v5, %v14551_v57 }
 0x7ce   : > { %vm15842_vm14 = vmmov %vm15838_vm7 }
 0x7cf   : > { %v9014_v59 = vpop.permute.xlu0 %9013  ;;  %11548 = vmatmul.mubr.msk.f32.vlgmr.msra.gmra.mxu0 %vm15834_vm12, %v14678_v41  ;;  %vm15843_vm12 = vcmask 777216  }
 0x7d0   : > { %11553 = vmatpush1.msk.msra.mxu0 %vm15836_vm13, %v15835_v40  ;;  %8556 = vmatprep.mubr.f32.mxu0 %v15787_v32  ;;  %v9030_v27 = vsel %vm15843_vm12, %v9014_v59, %v14435_v30  ;;  %vm15845_vm13 = vmmov %vm15838_vm7  ;;  %v15848_v30 = vsel %vm15532_vm2, %v14425_v36, %v14415_v24  ;;  %v14748_v36 = vld [vmem:[%s15200_s7 + $0x18] sm:$0xff] }
 0x7d1   : > { %11559 = vmatprep.subr.msk.mxu0 %vm15838_vm7, %v8635_v38  ;;  %vm15846_vm7 = vcmask 760832   ;;  %v14721_v38 = vpop.permute.xlu1 %10106 }
 0x7d2   : > { %v8996_v23 = vsel %vm15846_vm7, %v8980_v54, %v14405_v2  ;;  %v8995_v2 = vsel %vm15846_vm7, %v8978_v49, %v8980_v54 }
 0x7d3   : > { %11554 = vmatmul.mubr.msk.f32.vlgmr.msra.gmra.mxu0 %vm15841_vm3, %v14678_v41  ;;  %v9393_v40 = vpop.permute.xlu0 %9392  ;;  %v9046_v57 = vsel %vm15828_vm4, %v8996_v23, %v9030_v27 }
 0x7d4   : > { %11560 = vmatpush1.msk.msra.mxu0 %vm15842_vm14, %v8634_v35  ;;  %8735 = vmatprep.mubr.f32.mxu0 %v15787_v32  ;;  %vm15847_vm14 = vmmov %vm15843_vm12 }
 0x7d5   : > { %11565 = vmatprep.subr.msk.mxu0 %vm15845_vm13, %v15844_v37  ;;  %v9029_v35 = vsel %vm15847_vm14, %v9012_v42, %v9014_v59  ;;  %vm15849_vm12 = vmmov %vm15845_vm13  ;;  %v15854_v59 = vsel %vm15804_vm5, %v14580_v13, %v14583_v61  ;;  %vm15880_vm5 = vnez %v15773_v18 }
 0x7d6   : > { %vm15850_vm13 = vmmov %vm15849_vm12  ;;  %v9045_v5 = vsel %vm15826_vm8, %v8995_v2, %v9029_v35  ;;  %vm15858_vm8 = vcmask 31744  }
 0x7d7   : > { %11561 = vmatmul.mubr.msk.f32.vlgmr.msra.gmra.mxu0 %vm15841_vm3, %v14709_v58  ;;  %v14739_v42 = vpop.permute.xlu0 %10112  ;;  %vm15851_vm14 = vmmov %vm15849_vm12 }
 0x7d8   : > { %11566 = vmatpush1.msk.msra.mxu0 %vm15849_vm12, %v15848_v30  ;;  %8877 = vmatprep.mubr.f32.mxu0 %v15787_v32  ;;  %vm15852_vm12 = vcmask 1031168   ;;  %vm15855_vm7 = vmmov %vm15851_vm14 }
 0x7d9   : > { %11572 = vmatprep.subr.msk.mxu0 %vm15850_vm13, %v9046_v57  ;;  %vm15853_vm13 = vmmov %vm15852_vm12  ;;  %v15865_v57 = vsel %vm15669_vm9, %v14380_v55, %v14384_v0 }
 0x7da   : > { %v8018_v54 = vsel %vm15853_vm13, %v14530_v62, %v14574_v10  ;;  %vm15860_vm13 = vcmask 769024   ;;  %v15861_v62 = vsel %vm15777_vm6, %v14495_v17, %v14501_v48 }
 0x7db   : > { %11567 = vmatmul.mubr.msk.f32.vlgmr.msra.gmra.mxu0 %vm15841_vm3, %v14709_v58  ;;  %vm15856_vm3 = vmmov %vm15855_vm7  ;;  %v10105_v30 = vpop.permute.xlu0 %10104 }
 0x7dc   : > { %v8011_v24 = vpop.permute.xlu1 %8010  ;;  %11573 = vmatpush1.msk.msra.mxu0 %vm15851_vm14, %v9045_v5  ;;  %9146 = vmatprep.mubr.f32.mxu0 %v15787_v32  ;;  %vm15857_vm14 = vmmov %vm15856_vm3 }
 0x7dd   : > { %v8019_v49 = vsel %vm15852_vm12, %v14574_v10, %v8011_v24  ;;  %11578 = vmatprep.subr.msk.mxu0 %vm15855_vm7, %v15854_v59  ;;  %vm15859_vm12 = vmmov %vm15858_vm8  ;;  %v9409_v10 = vsel %vm15860_vm13, %v9393_v40, %v14490_v21  ;;  %v9408_v24 = vsel %vm15860_vm13, %v14644_v12, %v9393_v40  ;;  %v15873_v59 = vld [vmem:[#allocation15_spill] sm:$0xff] }
 0x7de   : > { %11543 = vmatprep.subr.msk.mxu1 %vm15856_vm3, %v8019_v49  ;;  %vm15862_vm7 = vmmov %vm15856_vm3 }
 0x7df   : > { %11544 = vmatpush1.msk.msra.mxu1 %vm15857_vm14, %v8018_v54  ;;  %11574 = vmatmul.mubr.msk.f32.vlgmr.msra.gmra.mxu0 %vm15858_vm8, %v14748_v36  ;;  %vm15864_vm8 = vmmov %vm15856_vm3  ;;  %v14804_v54 = vld [vmem:[%s15200_s7 + $0x20] sm:$0xff] }
 0x7e0   : > { %11545 = vmatmul.mubr.msk.f32.vlgmr.msra.gmra.mxu1 %vm15859_vm12, %v14454_v31  ;;  %v7932_v37 = vpop.permute.xlu1 %7931  ;;  %11579 = vmatpush1.msk.msra.mxu0 %vm15862_vm7, %v15861_v62  ;;  %v15863_v31 = vsel %vm15772_vm1, %v14368_v44, %v14387_v33  ;;  %vm15866_vm14 = vmmov %vm15856_vm3  ;;  %vm15867_vm12 = vcmask 1039360   ;;  %vm15868_vm7 = vcmask 31744  }
 0x7e1   : > { %9288 = vmatprep.mubr.f32.mxu0 %v15787_v32  ;;  %11585 = vmatprep.subr.msk.mxu0 %vm15856_vm3, %v9409_v10  ;;  %v7973_v5 = vsel %vm15867_vm12, %v14545_v28, %v14599_v15  ;;  %vm15869_vm3 = vmmov %vm15868_vm7 }
 0x7e2   : > { %11549 = vmatprep.subr.msk.mxu1 %vm15864_vm8, %v15863_v31  ;;  %8485 = vmatprep.mubr.f32.mxu1 %v15787_v32 }
 0x7e3   : > { %11550 = vmatpush1.msk.msra.mxu1 %vm15866_vm14, %v15865_v57  ;;  %11580 = vmatmul.mubr.msk.f32.vlgmr.msra.gmra.mxu0 %vm15868_vm7, %v14748_v36  ;;  %vm15870_vm14 = vcmask 1022976   ;;  %vm15872_vm7 = vmmov %vm15864_vm8 }
 0x7e4   : > { %11551 = vmatmul.mubr.msk.f32.vlgmr.msra.gmra.mxu1 %vm15869_vm3, %v14678_v41  ;;  %v7966_v49 = vpop.permute.xlu1 %7965  ;;  %11586 = vmatpush1.msk.msra.mxu0 %vm15864_vm8, %v9408_v24  ;;  %v7940_v28 = vsel %vm15870_vm14, %v14585_v1, %v7932_v37  ;;  %vm15871_vm13 = vmmov %vm15870_vm14  ;;  %vm15874_vm3 = vnez %v15873_v59  ;;  %v14821_v37 = vpop.permute.xlu0 %10082  ;;  %vm15876_vm14 = vcmask 31744   ;;  %v11623_v59 = vld [vmem:[%s15200_s7 + $0x38] sm:$0xff] }
 0x7e5   : > { %9499 = vmatprep.mubr.f32.mxu0 %v15787_v32  ;;  %v7974_v12 = vsel %vm15867_vm12, %v14599_v15, %v7966_v49  ;;  %v7939_v40 = vsel %vm15871_vm13, %v14537_v19, %v14585_v1  ;;  %11591 = vmatprep.subr.msk.mxu0 %vm15872_vm7, %v14563_v11  ;;  %vm15875_vm8 = vmmov %vm15872_vm7  ;;  %v9728_v11 = vsel %vm15522_vm10, %v9030_v27, %v8996_v23  ;;  %vm15893_vm10 = vcmask 31744  }
 0x7e6   : > { %v7990_v10 = vsel %vm15874_vm3, %v7940_v28, %v7974_v12  ;;  %8627 = vmatprep.mubr.f32.mxu1 %v15787_v32  ;;  %v7989_v62 = vsel %vm15637_vm11, %v7939_v40, %v7973_v5  ;;  %vm15877_vm12 = vmmov %vm15872_vm7  ;;  %v15881_v19 = vsel %vm15880_vm5, %v14387_v33, %v14368_v44  ;;  %v14858_v44 = vld [vmem:[%s15200_s7 + $0x28] sm:$0xff]  ;;  %v15887_v33 = vld [vmem:[#allocation19_spill] sm:$0xff] }
 0x7e7   : > { %11555 = vmatprep.subr.msk.mxu1 %vm15875_vm8, %v7990_v10  ;;  %11587 = vmatmul.mubr.msk.f32.vlgmr.msra.gmra.mxu0 %vm15876_vm14, %v14804_v54  ;;  %vm15878_vm13 = vmmov %vm15872_vm7 }
 0x7e8   : > { %11556 = vmatpush1.msk.msra.mxu1 %vm15877_vm12, %v7989_v62  ;;  %v14826_v1 = vpop.permute.xlu1 %10110  ;;  %11592 = vmatpush1.msk.msra.mxu0 %vm15878_vm13, %v14514_v39  ;;  %vm15879_vm8 = vmmov %vm15876_vm14  ;;  %v9727_v39 = vsel %vm15840_vm0, %v9029_v35, %v8995_v2  ;;  %vm15884_vm13 = vnez %v15770_v60  ;;  %vm15892_vm0 = vnez %v15811_v56 }
 0x7e9   : > { %9641 = vmatprep.mubr.f32.mxu0 %v15787_v32  ;;  %11598 = vmatprep.subr.msk.mxu0 %vm15872_vm7, %v9728_v11  ;;  %vm15882_vm14 = vmmov %vm15872_vm7  ;;  %v15885_v15 = vsel %vm15884_vm13, %v14384_v0, %v14380_v55  ;;  %v14867_v55 = vpop.permute.xlu0 %10116  ;;  %v15890_v0 = vsel %vm15732_vm15, %v14583_v61, %v14580_v13  ;;  %v8640_v35 = vsel %vm15892_vm0, %v7973_v5, %v7939_v40  ;;  %v15923_v11 = vld [vmem:[#allocation25_spill] sm:$0xff] }
 0x7ea   : > { %11557 = vmatmul.mubr.msk.f32.vlgmr.msra.gmra.mxu1 %vm15879_vm8, %v14678_v41  ;;  %11562 = vmatprep.subr.msk.mxu1 %vm15882_vm14, %v15881_v19  ;;  %vm15883_vm12 = vmmov %vm15879_vm8  ;;  %vm15888_vm14 = vnez %v15887_v33  ;;  %v15897_v13 = vsel %vm15532_vm2, %v14501_v48, %v14495_v17  ;;  %v15900_v17 = vsel %vm15772_vm1, %v14442_v43, %v14472_v52 }
 0x7eb   : > { %8806 = vmatprep.mubr.f32.mxu1 %v15787_v32  ;;  %11593 = vmatmul.mubr.msk.f32.vlgmr.msra.gmra.mxu0 %vm15883_vm12, %v14804_v54  ;;  %vm15886_vm8 = vmmov %vm15872_vm7  ;;  %v8641_v27 = vsel %vm15888_vm14, %v7974_v12, %v7940_v28  ;;  %vm15889_vm12 = vcmask 515072   ;;  %v15915_v28 = vld [vmem:[#allocation22_spill] sm:$0xff]  ;;  %v15917_v12 = vld [vmem:[#allocation21_spill] sm:$0xff] }
 0x7ec   : > { %11563 = vmatpush1.msk.msra.mxu1 %vm15872_vm7, %v15885_v15  ;;  %v10071_v41 = vpop.permute.xlu1 %10070  ;;  %11599 = vmatpush1.msk.msra.mxu0 %vm15886_vm8, %v9727_v39  ;;  %v14865_v23 = vsel %vm15889_vm12, %v14721_v38, %v14541_v47  ;;  %vm15891_vm8 = vmmov %vm15872_vm7  ;;  %vm15894_vm12 = vcmask 498688   ;;  %v15925_v15 = vld [vmem:[#allocation24_spill] sm:$0xff] }
 0x7ed   : > { %9828 = vmatprep.mubr.f32.mxu0 %v15787_v32  ;;  %11604 = vmatprep.subr.msk.mxu0 %vm15872_vm7, %v15890_v0  ;;  %v14883_v2 = vsel %vm15894_vm12, %v14697_v63, %v14527_v46  ;;  %vm15895_vm14 = vmmov %vm15893_vm10  ;;  %v9407_v7 = vpop.permute.xlu0 %9406  ;;  %v15932_v0 = vsel %vm15880_vm5, %v14472_v52, %v14442_v43 }
 0x7ee   : > { %11568 = vmatprep.subr.msk.mxu1 %vm15891_vm8, %v8641_v27  ;;  %11564 = vmatmul.mubr.msk.f32.vlgmr.msra.gmra.mxu1 %vm15893_vm10, %v14709_v58  ;;  %vm15896_vm13 = vmmov %vm15872_vm7  ;;  %v10139_v31 = vsel %vm15828_vm4, %v14883_v2, %v14865_v23  ;;  %vm15902_vm8 = vcmask 515072   ;;  %vm15903_vm4 = vcmask 31744  }
 0x7ef   : > { %11600 = vmatmul.mubr.msk.f32.vlgmr.msra.gmra.mxu0 %vm15895_vm14, %v14858_v44  ;;  %11569 = vmatpush1.msk.msra.mxu1 %vm15896_vm13, %v8640_v35  ;;  %vm15898_vm10 = vmmov %vm15894_vm12  ;;  %v14912_v48 = vsel %vm15902_vm8, %v10105_v30, %v14721_v38  ;;  %vm15904_vm12 = vnez %v15825_v25  ;;  %v14928_v38 = vld [vmem:[%s15200_s7 + $0x30] sm:$0xff] }
 0x7f0   : > { %v8994_v61 = vpop.permute.xlu1 %8993  ;;  %11605 = vmatpush1.msk.msra.mxu0 %vm15872_vm7, %v15897_v13  ;;  %9970 = vmatprep.mubr.f32.mxu0 %v15787_v32  ;;  %v14901_v57 = vsel %vm15898_vm10, %v10071_v41, %v14697_v63  ;;  %vm15899_vm13 = vmmov %vm15872_vm7 }
 0x7f1   : > { %11611 = vmatprep.subr.msk.mxu0 %vm15899_vm13, %v10139_v31  ;;  %vm15901_vm14 = vmmov %vm15872_vm7  ;;  %8948 = vmatprep.mubr.f32.mxu1 %v15787_v32  ;;  %v10138_v63 = vsel %vm15904_vm12, %v14901_v57, %v14912_v48  ;;  %v14955_v49 = vpop.permute.xlu0 %10487  ;;  %v15948_v31 = vsel %vm15892_vm0, %v14619_v45, %v14615_v34 }
 0x7f2   : > { %11575 = vmatprep.subr.msk.mxu1 %vm15901_vm14, %v15900_v17  ;;  %vm15905_vm7 = vmmov %vm15903_vm4  ;;  %vm15908_vm14 = vcmask 777216  }
 0x7f3   : > { %11606 = vmatmul.mubr.msk.f32.vlgmr.msra.gmra.mxu0 %vm15903_vm4, %v14858_v44  ;;  %11570 = vmatmul.mubr.msk.f32.vlgmr.msra.gmra.mxu1 %vm15905_vm7, %v14709_v58  ;;  %vm15906_vm10 = vmmov %vm15899_vm13  ;;  %vm15907_vm13 = vcmask 760832   ;;  %v15909_v58 = vsel %vm15669_vm9, %v14465_v50, %v14469_v26 }
 0x7f4   : > { %v9028_v5 = vpop.permute.xlu1 %9027  ;;  %11612 = vmatpush1.msk.msra.mxu0 %vm15906_vm10, %v10138_v63  ;;  %10239 = vmatprep.mubr.f32.mxu0 %v15787_v32  ;;  %v9002_v30 = vsel %vm15907_vm13, %v14605_v6, %v8994_v61  ;;  %vm15910_vm8 = vmmov %vm15906_vm10 }
 0x7f5   : > { %v9036_v25 = vsel %vm15908_vm14, %v14609_v9, %v9028_v5  ;;  %11576 = vmatpush1.msk.msra.mxu1 %vm15910_vm8, %v15909_v58  ;;  %9217 = vmatprep.mubr.f32.mxu1 %v15787_v32  ;;  %vm15911_vm4 = vmmov %vm15910_vm8  ;;  %v15913_v9 = vsel %vm15637_vm11, %v14615_v34, %v14619_v45  ;;  %vm15918_vm14 = vcmask 769024   ;;  %v10087_v39 = vpop.permute.xlu0 %10086 }
 0x7f6   : > { %v9052_v24 = vsel %vm15874_vm3, %v9002_v30, %v9036_v25  ;;  %vm15912_vm12 = vmmov %vm15905_vm7  ;;  %v9410_v40 = vsel %vm15918_vm14, %v14490_v21, %v15917_v12 }
 0x7f7   : > { %11581 = vmatprep.subr.msk.mxu1 %vm15911_vm4, %v9052_v24  ;;  %11613 = vmatmul.mubr.msk.f32.vlgmr.msra.gmra.mxu0 %vm15912_vm12, %v14928_v38  ;;  %vm15914_vm10 = vmmov %vm15911_vm4 }
 0x7f8   : > { %11577 = vmatmul.mubr.msk.f32.vlgmr.msra.gmra.mxu1 %vm15905_vm7, %v14748_v36  ;;  %v10081_v6 = vpop.permute.xlu1 %10080  ;;  %vm15916_vm13 = vmmov %vm15911_vm4  ;;  %10381 = vmatprep.mubr.f32.mxu0 %v15787_v32 }
 0x7f9   : > { %11582 = vmatpush1.msk.msra.mxu1 %vm15914_vm10, %v15913_v9  ;;  %9359 = vmatprep.mubr.f32.mxu1 %v15787_v32  ;;  %vm15919_vm8 = vmmov %vm15905_vm7 }
 0x7fa   : > { %11588 = vmatprep.subr.msk.mxu1 %vm15916_vm13, %v15915_v28  ;;  %vm15920_vm4 = vmmov %vm15918_vm14  ;;  %vm15926_vm13 = vcmask 498688  }
 0x7fb   : > { %v9415_v62 = vsel %vm15920_vm4, %v14642_v22, %v9407_v7  ;;  %vm15921_vm12 = vmmov %vm15914_vm10  ;;  %v14975_v21 = vsel %vm15926_vm13, %v15925_v15, %v10081_v6 }
 0x7fc   : > { %11583 = vmatmul.mubr.msk.f32.vlgmr.msra.gmra.mxu1 %vm15919_vm8, %v14748_v36  ;;  %v10085_v10 = vpop.permute.xlu1 %10084  ;;  %vm15922_vm7 = vmmov %vm15914_vm10 }
 0x7fd   : > { %11589 = vmatpush1.msk.msra.mxu1 %vm15921_vm12, %v9410_v40  ;;  %9570 = vmatprep.mubr.f32.mxu1 %v15787_v32  ;;  %vm15924_vm10 = vmmov %vm15920_vm4  ;;  %vm15930_vm12 = vcmask 515072  }
 0x7fe   : > { %11594 = vmatprep.subr.msk.mxu1 %vm15922_vm7, %v9415_v62  ;;  %v9414_v19 = vsel %vm15924_vm10, %v15923_v11, %v14642_v22  ;;  %vm15927_vm14 = vmmov %vm15919_vm8 }
 0x7ff   : > { %vm15928_vm8 = vmmov %vm15926_vm13  ;;  %vm15934_vm13 = vnez %v15803_v3 }
 0x800   : > { %11590 = vmatmul.mubr.msk.f32.vlgmr.msra.gmra.mxu1 %vm15927_vm14, %v14804_v54  ;;  %v10115_v36 = vpop.permute.xlu1 %10114  ;;  %v14981_v41 = vsel %vm15928_vm8, %v10081_v6, %v14821_v37  ;;  %vm15929_vm4 = vmmov %vm15922_vm7  ;;  %vm15936_vm8 = vcmask 31744  }
 0x801   : > { %11595 = vmatpush1.msk.msra.mxu1 %vm15929_vm4, %v9414_v19  ;;  %9712 = vmatprep.mubr.f32.mxu1 %v15787_v32  ;;  %v14987_v22 = vsel %vm15930_vm12, %v14739_v42, %v10115_v36  ;;  %vm15931_vm7 = vmmov %vm15930_vm12  ;;  %vm15937_vm12 = vnez %v15770_v60 }
 0x802   : > { %v14991_v27 = vsel %vm15931_vm7, %v10115_v36, %v14867_v55  ;;  %vm15933_vm10 = vmmov %vm15929_vm4  ;;  %v10142_v35 = vsel %vm15777_vm6, %v14975_v21, %v14987_v22  ;;  %v15938_v52 = vsel %vm15937_vm12, %v14469_v26, %v14465_v50  ;;  %vm15940_vm6 = vnez %v15887_v33  ;;  %v15944_v50 = vld [vmem:[#allocation23_spill] sm:$0xff] }
 0x803   : > { %11601 = vmatprep.subr.msk.mxu1 %vm15933_vm10, %v15932_v0  ;;  %v10143_v61 = vsel %vm15934_vm13, %v14981_v41, %v14991_v27  ;;  %vm15935_vm14 = vmmov %vm15929_vm4  ;;  %v9734_v20 = vsel %vm15940_vm6, %v9036_v25, %v9002_v30  ;;  %vm15941_vm10 = vcmask 515072  }
 0x804   : > { %11617 = vmatprep.subr.msk.mxu0 %vm15935_vm14, %v10143_v61  ;;  %11596 = vmatmul.mubr.msk.f32.vlgmr.msra.gmra.mxu1 %vm15936_vm8, %v14804_v54  ;;  %v10119_v43 = vpop.permute.xlu1 %10118  ;;  %vm15939_vm7 = vmmov %vm15929_vm4  ;;  %v15023_v3 = vsel %vm15941_vm10, %v14826_v1, %v14739_v42  ;;  %v10121_v54 = vpop.permute.xlu0 %10120 }
 0x805   : > { %11618 = vmatpush1.msk.msra.mxu0 %vm15929_vm4, %v10142_v35  ;;  %11602 = vmatpush1.msk.msra.mxu1 %vm15939_vm7, %v15938_v52  ;;  %vm15942_vm13 = vmmov %vm15929_vm4 }
 0x806   : > { %9899 = vmatprep.mubr.f32.mxu1 %v15787_v32  ;;  %11607 = vmatprep.subr.msk.mxu1 %vm15942_vm13, %v9734_v20  ;;  %vm15943_vm14 = vmmov %vm15936_vm8  ;;  %vm15945_vm8 = vcmask 498688  }
 0x807   : > { %11619 = vmatmul.mubr.msk.f32.vlgmr.msra.gmra.mxu0 %vm15943_vm14, %v14928_v38  ;;  %v15032_v26 = vsel %vm15945_vm8, %v15944_v50, %v15925_v15  ;;  %vm15946_vm4 = vmmov %vm15943_vm14 }
 0x808   : > { %10592 = vmatprep.mubr.f32.mxu0 %v15787_v32  ;;  %11603 = vmatmul.mubr.msk.f32.vlgmr.msra.gmra.mxu1 %vm15946_vm4, %v14858_v44  ;;  %v10486_v13 = vpop.permute.xlu1 %10485  ;;  %vm15947_vm7 = vmmov %vm15941_vm10  ;;  %v10141_v17 = vsel %vm15772_vm1, %v15032_v26, %v15023_v3  ;;  %v10492_v34 = vpop.permute.xlu0 %10491 }
 0x809   : > { %v15039_v42 = vsel %vm15947_vm7, %v14541_v47, %v14826_v1  ;;  %vm15949_vm10 = vmmov %vm15942_vm13  ;;  %10041 = vmatprep.mubr.f32.mxu1 %v15787_v32  ;;  %vm15950_vm13 = vcmask 506880  }
 0x80a   : > { %11608 = vmatpush1.msk.msra.mxu1 %vm15949_vm10, %v15948_v31  ;;  %v10502_v7 = vsel %vm15950_vm13, %v10486_v13, %v14955_v49  ;;  %vm15951_vm14 = vmmov %vm15947_vm7  ;;  %vm15954_vm7 = vcmask 498688  }
 0x80b   : > { %v15055_v47 = vsel %vm15951_vm14, %v10119_v43, %v10121_v54  ;;  %vm15952_vm8 = vmmov %vm15949_vm10  ;;  %v10090_v45 = vsel %vm15954_vm7, %v14527_v46, %v15944_v50  ;;  %vm15956_vm10 = vcmask 31744  }
 0x80c   : > { %11614 = vmatprep.subr.msk.mxu1 %vm15952_vm8, %v10141_v17  ;;  %vm15953_vm4 = vmmov %vm15952_vm8  ;;  %v10140_v4 = vsel %vm15669_vm9, %v10090_v45, %v15039_v42  ;;  %11609 = vmatmul.mubr.msk.f32.vlgmr.msra.gmra.mxu1 %vm15956_vm10, %v14858_v44  ;;  %v10490_v63 = vpop.permute.xlu1 %10489  ;;  %v10822_v51 = vsel %vm15937_vm12, %v15039_v42, %v10090_v45 }
 0x80d   : > { %11624 = vmatprep.subr.msk.mxu0 %vm15953_vm4, %v10502_v7  ;;  %vm15955_vm1 = vmmov %vm15954_vm7  ;;  %10310 = vmatprep.mubr.f32.mxu1 %v15787_v32 }
 0x80e   : > { %v10095_v1 = vsel %vm15955_vm1, %v10085_v10, %v10087_v39  ;;  %vm15957_vm13 = vmmov %vm15951_vm14 }
 0x80f   : > { %v10128_v5 = vsel %vm15957_vm13, %v14867_v55, %v10119_v43  ;;  %vm15958_vm14 = vmmov %vm15953_vm4  ;;  %v10145_v46 = vsel %vm15874_vm3, %v10095_v1, %v15055_v47  ;;  %v10827_v18 = vsel %vm15940_vm6, %v15055_v47, %v10095_v1 }
 0x810   : > { %11615 = vmatpush1.msk.msra.mxu1 %vm15958_vm14, %v10140_v4  ;;  %vm15959_vm8 = vmmov %vm15953_vm4  ;;  %vm15961_vm4 = vcmask 506880   ;;  %v10484_v55 = vpop.permute.xlu1 %10483 }
 0x811   : > { %11620 = vmatprep.subr.msk.mxu1 %vm15959_vm8, %v10145_v46  ;;  %vm15960_vm9 = vmmov %vm15955_vm1  ;;  %v10504_v30 = vsel %vm15961_vm4, %v10490_v63, %v10492_v34 }
 0x812   : > { %v10094_v16 = vsel %vm15960_vm9, %v14821_v37, %v10085_v10  ;;  %vm15962_vm7 = vmmov %vm15956_vm10  ;;  %v10494_v37 = vpop.permute.xlu0 %10493 }
 0x813   : > { %v10144_v44 = vsel %vm15637_vm11, %v10094_v16, %v10128_v5  ;;  %11616 = vmatmul.mubr.msk.f32.vlgmr.msra.gmra.mxu1 %vm15962_vm7, %v14928_v38  ;;  %vm15963_vm3 = vmmov %vm15959_vm8  ;;  %v10826_v60 = vsel %vm15892_vm0, %v10128_v5, %v10094_v16 }
 0x814   : > { %11621 = vmatpush1.msk.msra.mxu1 %vm15963_vm3, %v10144_v44  ;;  %10452 = vmatprep.mubr.f32.mxu1 %v15787_v32  ;;  %vm15964_vm1 = vmmov %vm15961_vm4  ;;  %v10496_v58 = vpop.permute.xlu1 %10495 }
 0x815   : > { %v10501_v25 = vsel %vm15964_vm1, %v10484_v55, %v10486_v13  ;;  %vm15965_vm10 = vmmov %vm15963_vm3 }
 0x816   : > { %11627 = vmatprep.subr.msk.mxu1 %vm15965_vm10, %v10504_v30  ;;  %vm15966_vm13 = vmmov %vm15963_vm3  ;;  %v10498_v9 = vpop.permute.xlu0 %10497 }
 0x817   : > { %11625 = vmatpush1.msk.msra.mxu0 %vm15966_vm13, %v10501_v25  ;;  %vm15967_vm11 = vmmov %vm15962_vm7 }
 0x818   : > { %11626 = vmatmul.mubr.msk.f32.vlgmr.msra.gmra.mxu0 %vm15967_vm11, %v11623_v59  ;;  %vm15968_vm14 = vmmov %vm15964_vm1  ;;  %vm15976_vm11 = vnez %v15837_v14  ;;  %v10825_v14 = vsel %vm15732_vm15, %v14991_v27, %v14981_v41 }
 0x819   : > { %v10503_v53 = vsel %vm15968_vm14, %v14955_v49, %v10490_v63  ;;  %vm15969_vm8 = vmmov %vm15962_vm7  ;;  %10734 = vmatprep.mubr.f32.mxu0 %v15787_v32  ;;  %v10500_v49 = vpop.permute.xlu1 %10499  ;;  %vm15977_vm14 = vnez %v15839_v8  ;;  %v11636_v8 = vld [vmem:[%s15200_s7 + $0x40] sm:$0xff] }
 0x81a   : > { %11622 = vmatmul.mubr.msk.f32.vlgmr.msra.gmra.mxu1 %vm15969_vm8, %v14928_v38  ;;  %vm15970_vm9 = vmmov %vm15963_vm3  ;;  %v10821_v38 = vsel %vm15976_vm11, %v14865_v23, %v14883_v2  ;;  %v10820_v28 = vsel %vm15977_vm14, %v14912_v48, %v14901_v57  ;;  %v10823_v23 = vsel %vm15880_vm5, %v15023_v3, %v15032_v26  ;;  %v10824_v2 = vsel %vm15532_vm2, %v14987_v22, %v14975_v21 }
 0x81b   : > { %11628 = vmatpush1.msk.msra.mxu1 %vm15970_vm9, %v10503_v53  ;;  %10663 = vmatprep.mubr.f32.mxu1 %v15787_v32  ;;  %vm15971_vm4 = vmmov %vm15964_vm1 }
 0x81c   : > { %v10506_v24 = vsel %vm15971_vm4, %v10494_v37, %v10496_v58  ;;  %vm15972_vm7 = vmmov %vm15964_vm1  ;;  %v10507_v40 = vsel %vm15971_vm4, %v10496_v58, %v10498_v9 }
 0x81d   : > { %v10505_v6 = vsel %vm15972_vm7, %v10492_v34, %v10494_v37  ;;  %11630 = vmatprep.subr.msk.mxu0 %vm15963_vm3, %v10506_v24  ;;  %vm15973_vm1 = vmmov %vm15963_vm3 }
 0x81e   : > { %11631 = vmatpush1.msk.msra.mxu0 %vm15973_vm1, %v10505_v6  ;;  %vm15974_vm10 = vmmov %vm15969_vm8 }
 0x81f   : > { %11629 = vmatmul.mubr.msk.f32.vlgmr.msra.gmra.mxu1 %vm15974_vm10, %v11623_v59  ;;  %vm15975_vm13 = vmmov %vm15969_vm8 }
 0x820   : > { %11632 = vmatmul.mubr.msk.f32.vlgmr.msra.gmra.mxu0 %vm15975_vm13, %v11623_v59  ;;  %vm15978_vm8 = vmmov %vm15973_vm1  ;;  %10805 = vmatprep.mubr.f32.mxu1 %v15787_v32  ;;  %v8176_v39 = vpop.f32.mrf.mxu1 }
 0x821   : > { %11637 = vmatprep.subr.msk.mxu0 %vm15978_vm8, %v10821_v38  ;;  %vm15979_vm9 = vmmov %vm15971_vm4  ;;  %10921 = vmatprep.mubr.f32.mxu0 %v15787_v32 }
 0x822   : > { %v10508_v12 = vsel %vm15979_vm9, %v10498_v9, %v10500_v49  ;;  %vm15980_vm7 = vmmov %vm15973_vm1  ;;  %v8178_v36 = vpop.f32.mrf.mxu1 }
 0x823   : > { %11638 = vmatpush1.msk.msra.mxu0 %vm15980_vm7, %v10820_v28  ;;  %vm15981_vm3 = vmmov %vm15973_vm1 }
 0x824   : > { %11633 = vmatprep.subr.msk.mxu1 %vm15981_vm3, %v10508_v12  ;;  %11643 = vmatprep.subr.msk.mxu0 %vm15973_vm1, %v10825_v14  ;;  %vm15982_vm10 = vmmov %vm15973_vm1 }
 0x825   : > { %11634 = vmatpush1.msk.msra.mxu1 %vm15982_vm10, %v10507_v40  ;;  %vm15983_vm15 = vmmov %vm15975_vm13 }
 0x826   : > { %11635 = vmatmul.mubr.msk.f32.vlgmr.msra.gmra.mxu1 %vm15975_vm13, %v11623_v59  ;;  %11639 = vmatmul.mubr.msk.f32.vlgmr.msra.gmra.mxu0 %vm15983_vm15, %v11636_v8  ;;  %vm15984_vm11 = vmmov %vm15973_vm1 }
 0x827   : > { %11640 = vmatprep.subr.msk.mxu1 %vm15984_vm11, %v10823_v23  ;;  %vm15985_vm14 = vmmov %vm15973_vm1  ;;  %10992 = vmatprep.mubr.f32.mxu1 %v15787_v32 }
 0x828   : > { %11644 = vmatpush1.msk.msra.mxu0 %vm15985_vm14, %v10824_v2  ;;  %vm15986_vm8 = vmmov %vm15973_vm1  ;;  %11063 = vmatprep.mubr.f32.mxu0 %v15787_v32 }
 0x829   : > { %11641 = vmatpush1.msk.msra.mxu1 %vm15986_vm8, %v10822_v51  ;;  %vm15987_vm5 = vmmov %vm15973_vm1 }
 0x82a   : > { %11646 = vmatprep.subr.msk.mxu1 %vm15987_vm5, %v10827_v18  ;;  %vm15988_vm2 = vmmov %vm15975_vm13 }
 0x82b   : > { %11642 = vmatmul.mubr.msk.f32.vlgmr.msra.gmra.mxu1 %vm15988_vm2, %v11636_v8  ;;  %vm15989_vm12 = vmmov %vm15988_vm2 }
 0x82c   : > { %11645 = vmatmul.mubr.msk.f32.vlgmr.msra.gmra.mxu0 %vm15989_vm12, %v11636_v8  ;;  %vm15990_vm9 = vmmov %vm15973_vm1  ;;  %11134 = vmatprep.mubr.f32.mxu1 %v15787_v32 }
 0x82d   : > { %11647 = vmatpush1.msk.msra.mxu1 %vm15990_vm9, %v10826_v60  ;;  %vm15991_vm4 = vmmov %vm15988_vm2 }
 0x82f   : > { %11648 = vmatmul.mubr.msk.f32.vlgmr.msra.gmra.mxu1 %vm15991_vm4, %v11636_v8 }
 0x887   : > { %v8105_v29 = vpop.f32.mrf.mxu0 }
 0x889   : > { %v8107_v33 = vpop.f32.mrf.mxu0 }
 0x88b   : > { %v8247_v57 = vpop.f32.mrf.mxu0 }
 0x88d   : > { %v8249_v48 = vpop.f32.mrf.mxu0 }
 0x88f   : > { %v8416_v10 = vpop.f32.mrf.mxu0 }
 0x890   : > { %v8417_v58 = vadd.f32 %v8416_v10, %v8105_v29 }
 0x891   : > { %v8418_v62 = vpop.f32.mrf.mxu0 }
 0x892   : > { %v8419_v9 = vadd.f32 %v8418_v62, %v8107_v33 }
 0x893   : > { %v8558_v56 = vpop.f32.mrf.mxu0 }
 0x894   : > { %v8559_v49 = vadd.f32 %v8558_v56, %v8247_v57 }
 0x895   : > { %v8560_v11 = vpop.f32.mrf.mxu0 }
 0x896   : > { %v8561_v14 = vadd.f32 %v8560_v11, %v8249_v48 }
 0x897   : > { %v8737_v19 = vpop.f32.mrf.mxu0 }
 0x898   : > { %v8955_v28 = vadd.f32 %v8737_v19, %v8417_v58 }
 0x899   : > { %v8739_v15 = vpop.f32.mrf.mxu0 }
 0x89a   : > { %v8956_v8 = vadd.f32 %v8739_v15, %v8419_v9 }
 0x89b   : > { %v8879_v21 = vpop.f32.mrf.mxu0 }
 0x89c   : > { %v8959_v18 = vadd.f32 %v8879_v21, %v8559_v49 }
 0x89d   : > { %v8881_v41 = vpop.f32.mrf.mxu0 }
 0x89e   : > { %v8960_v10 = vadd.f32 %v8881_v41, %v8561_v14 }
 0x89f   : > { %v9148_v22 = vpop.f32.mrf.mxu0 }
 0x8a0   : > { %v8318_v27 = vpop.f32.mrf.mxu1  ;;  %v9366_v60 = vadd.f32 %v9148_v22, %v8955_v28 }
 0x8a1   : > { %v9150_v0 = vpop.f32.mrf.mxu0 }
 0x8a2   : > { %v15158_v32 = vpop.f32.mrf.mxu1 }
 0x8a3   : > { %v9290_v35 = vpop.f32.mrf.mxu0 }
 0x8a4   : > { %v8487_v61 = vpop.f32.mrf.mxu1  ;;  %v9370_v19 = vadd.f32 %v9290_v35, %v8959_v18 }
 0x8a5   : > { %v15160_v43 = vpop.f32.mrf.mxu0  ;;  %v8488_v51 = vadd.f32 %v8487_v61, %v8176_v39 }
 0x8a6   : > { %15992 = vst [vmem:[#allocation26_spill] sm:$0xff] %v15160_v43  ;;  %v8489_v52 = vpop.f32.mrf.mxu1  ;;  %v9367_v43 = vadd.f32 %v9150_v0, %v8956_v8  ;;  %v11165_v8 = vpop.permute.xlu1 %11164 }
 0x8a7   : > { %v9501_v20 = vpop.f32.mrf.mxu0 }
 0x8a8   : > { %v9719_v33 = vadd.f32 %v9501_v20, %v9366_v60 }
 0x8a9   : > { %v9503_v54 = vpop.f32.mrf.mxu0 }
 0x8aa   : > { %v8629_v3 = vpop.f32.mrf.mxu1  ;;  %v9720_v58 = vadd.f32 %v9503_v54, %v9367_v43 }
 0x8ab   : > { %v9643_v26 = vpop.f32.mrf.mxu0 }
 0x8ac   : > { %v8631_v50 = vpop.f32.mrf.mxu1 }
 0x8ad   : > { %v15162_v31 = vpop.f32.mrf.mxu0  ;;  %v8632_v39 = vadd.f32 %v8631_v50, %v15158_v32 }
 0x8ae   : > { %v8808_v13 = vpop.f32.mrf.mxu1  ;;  %15993 = vst [vmem:[#allocation4_spill] sm:$0xff] %v15162_v31 }
 0x8af   : > { %v9830_v47 = vpop.f32.mrf.mxu0  ;;  %v8957_v31 = vadd.f32 %v8808_v13, %v8488_v51  ;;  %v9723_v13 = vadd.f32 %v9643_v26, %v9370_v19  ;;  %v11153_v26 = vpop.permute.xlu0 %11152 }
 0x8b0   : > { %v8810_v42 = vpop.f32.mrf.mxu1  ;;  %v10048_v48 = vadd.f32 %v9830_v47, %v9719_v33 }
 0x8b1   : > { %v9832_v34 = vpop.f32.mrf.mxu0 }
 0x8b2   : > { %v10049_v41 = vadd.f32 %v9832_v34, %v9720_v58 }
 0x8b3   : > { %v8950_v17 = vpop.f32.mrf.mxu1  ;;  %v9972_v5 = vpop.f32.mrf.mxu0 }
 0x8b5   : > { %v8952_v7 = vpop.f32.mrf.mxu1  ;;  %v15164_v30 = vpop.f32.mrf.mxu0  ;;  %v15998_v43 = vld [vmem:[#allocation4_spill] sm:$0xff] }
 0x8b6   : > { %15994 = vst [vmem:[#allocation14_spill] sm:$0xff] %v15164_v30  ;;  %v8490_v30 = vadd.f32 %v8489_v52, %v8178_v36  ;;  %v15997_v36 = vld [vmem:[#allocation26_spill] sm:$0xff] }
 0x8b7   : > { %v10241_v59 = vpop.f32.mrf.mxu0  ;;  %v9371_v52 = vadd.f32 %v15997_v36, %v8960_v10 }
 0x8b8   : > { %v9219_v45 = vpop.f32.mrf.mxu1  ;;  %v8958_v57 = vadd.f32 %v8810_v42, %v8490_v30  ;;  %v10459_v0 = vadd.f32 %v10241_v59, %v10048_v48 }
 0x8b9   : > { %v10243_v53 = vpop.f32.mrf.mxu0  ;;  %v9368_v56 = vadd.f32 %v9219_v45, %v8957_v31  ;;  %v9724_v54 = vadd.f32 %v15998_v43, %v9371_v52  ;;  %v10052_v31 = vadd.f32 %v9972_v5, %v9723_v13 }
 0x8ba   : > { %v9221_v4 = vpop.f32.mrf.mxu1  ;;  %v10460_v47 = vadd.f32 %v10243_v53, %v10049_v41 }
 0x8bb   : > { %v9369_v22 = vadd.f32 %v9221_v4, %v8958_v57 }
 0x8bc   : > { %v9361_v1 = vpop.f32.mrf.mxu1 }
 0x8bd   : > { %v15999_v34 = vld [vmem:[#allocation14_spill] sm:$0xff] }
 0x8be   : > { %v9363_v63 = vpop.f32.mrf.mxu1  ;;  %v10053_v59 = vadd.f32 %v15999_v34, %v9724_v54 }
 0x8c0   : > { %v9572_v46 = vpop.f32.mrf.mxu1 }
 0x8c1   : > { %v9721_v61 = vadd.f32 %v9572_v46, %v9368_v56 }
 0x8c2   : > { %v9574_v16 = vpop.f32.mrf.mxu1 }
 0x8c3   : > { %v9722_v42 = vadd.f32 %v9574_v16, %v9369_v22 }
 0x8c4   : > { %v9714_v44 = vpop.f32.mrf.mxu1 }
 0x8c6   : > { %v15166_v55 = vpop.f32.mrf.mxu1 }
 0x8c7   : > { %15995 = vst [vmem:[#allocation18_spill] sm:$0xff] %v15166_v55  ;;  %v10383_v6 = vpop.f32.mrf.mxu0 }
 0x8c8   : > { %v9901_v25 = vpop.f32.mrf.mxu1 }
 0x8c9   : > { %v10385_v40 = vpop.f32.mrf.mxu0  ;;  %v10050_v35 = vadd.f32 %v9901_v25, %v9721_v61 }
 0x8ca   : > { %v9903_v37 = vpop.f32.mrf.mxu1 }
 0x8cb   : > { %v10051_v4 = vadd.f32 %v9903_v37, %v9722_v42 }
 0x8cc   : > { %v10043_v24 = vpop.f32.mrf.mxu1 }
 0x8ce   : > { %v15168_v38 = vpop.f32.mrf.mxu1  ;;  %v16000_v16 = vld [vmem:[#allocation18_spill] sm:$0xff] }
 0x8cf   : > { %15996 = vst [vmem:[#allocation13_spill] sm:$0xff] %v15168_v38  ;;  %v8630_v38 = vadd.f32 %v8629_v3, %v8318_v27  ;;  %v8962_v27 = vadd.f32 %v8952_v7, %v8632_v39 }
 0x8d1   : > { %v8961_v21 = vadd.f32 %v8950_v17, %v8630_v38  ;;  %v9373_v50 = vadd.f32 %v9363_v63, %v8962_v27  ;;  %v10463_v38 = vadd.f32 %v10383_v6, %v10052_v31  ;;  %v10464_v63 = vadd.f32 %v10385_v40, %v10053_v59 }
 0x8d3   : > { %v10312_v12 = vpop.f32.mrf.mxu1  ;;  %v9372_v3 = vadd.f32 %v9361_v1, %v8961_v21  ;;  %v9726_v25 = vadd.f32 %v16000_v16, %v9373_v50 }
 0x8d4   : > { %v10461_v46 = vadd.f32 %v10312_v12, %v10050_v35 }
 0x8d5   : > { %v10314_v23 = vpop.f32.mrf.mxu1  ;;  %v9725_v17 = vadd.f32 %v9714_v44, %v9372_v3 }
 0x8d6   : > { %v10462_v14 = vadd.f32 %v10314_v23, %v10051_v4 }
 0x8d7   : > { %v10054_v28 = vadd.f32 %v10043_v24, %v9725_v17 }
 0x8d8   : > { %v10594_v2 = vpop.f32.mrf.mxu0 }
 0x8d9   : > { %v10812_v45 = vadd.f32 %v10594_v2, %v10459_v0  ;;  %v16001_v2 = vld [vmem:[#allocation13_spill] sm:$0xff] }
 0x8da   : > { %v10454_v55 = vpop.f32.mrf.mxu1  ;;  %v10596_v29 = vpop.f32.mrf.mxu0  ;;  %v10055_v18 = vadd.f32 %v16001_v2, %v9726_v25 }
 0x8db   : > { %v10813_v49 = vadd.f32 %v10596_v29, %v10460_v47  ;;  %v10465_v60 = vadd.f32 %v10454_v55, %v10054_v28 }
 0x8dc   : > { %v10456_v62 = vpop.f32.mrf.mxu1 }
 0x8dd   : > { %v10466_v40 = vadd.f32 %v10456_v62, %v10055_v18 }
 0x8df   : > { %v10665_v11 = vpop.f32.mrf.mxu1 }
 0x8e0   : > { %v10736_v15 = vpop.f32.mrf.mxu0  ;;  %v10814_v5 = vadd.f32 %v10665_v11, %v10461_v46 }
 0x8e1   : > { %v10667_v20 = vpop.f32.mrf.mxu1  ;;  %v10816_v44 = vadd.f32 %v10736_v15, %v10463_v38 }
 0x8e2   : > { %v10738_v9 = vpop.f32.mrf.mxu0  ;;  %v10815_v6 = vadd.f32 %v10667_v20, %v10462_v14 }
 0x8e3   : > { %v10817_v33 = vadd.f32 %v10738_v9, %v10464_v63 }
 0x8e6   : > { %v10807_v32 = vpop.f32.mrf.mxu1  ;;  %v10923_v30 = vpop.f32.mrf.mxu0 }
 0x8e7   : > { %v11141_v7 = vadd.f32 %v10923_v30, %v10812_v45  ;;  %v10818_v19 = vadd.f32 %v10807_v32, %v10465_v60 }
 0x8e8   : > { %v10809_v1 = vpop.f32.mrf.mxu1  ;;  %v10925_v53 = vpop.f32.mrf.mxu0 }
 0x8e9   : > { %v11155_v37 = vmul.f32 %v11153_v26, %v11141_v7  ;;  %v11142_v12 = vadd.f32 %v10925_v53, %v10813_v49  ;;  %v10819_v61 = vadd.f32 %v10809_v1, %v10466_v40 }
 0x8eb   : > { %v10994_v51 = vpop.f32.mrf.mxu1  ;;  %v11156_v57 = vmul.f32 %v11153_v26, %v11142_v12  ;;  %v11167_v24 = vadd.f32 %v11165_v8, %v11155_v37 }
 0x8ec   : > { %v11143_v29 = vadd.f32 %v10994_v51, %v10814_v5  ;;  %v11065_v10 = vpop.f32.mrf.mxu0 }
 0x8ed   : > { %v11145_v56 = vadd.f32 %v11065_v10, %v10816_v44  ;;  %v10996_v23 = vpop.f32.mrf.mxu1  ;;  %v11168_v15 = vadd.f32 %v11165_v8, %v11156_v57  ;;  %v11175_v39 = vmax.f32 %v11167_v24, 0.0 }
 0x8ee   : > { %v11157_v58 = vmul.f32 %v11153_v26, %v11143_v29  ;;  %v11144_v48 = vadd.f32 %v10996_v23, %v10815_v6  ;;  %v11067_v11 = vpop.f32.mrf.mxu0 }
 0x8ef   : > { %v11159_v55 = vmul.f32 %v11153_v26, %v11145_v56  ;;  %v11146_v21 = vadd.f32 %v11067_v11, %v10817_v33  ;;  %v11136_v22 = vpop.f32.mrf.mxu1  ;;  %v11176_v0 = vmax.f32 %v11168_v15, 0.0  ;;  %11183 = vst [vmem:[%s15180_s18] sm:$0xff] %v11175_v39 }
 0x8f0   : > { %v11169_v36 = vadd.f32 %v11165_v8, %v11157_v58  ;;  %v11158_v52 = vmul.f32 %v11153_v26, %v11144_v48  ;;  %v11147_v13 = vadd.f32 %v11136_v22, %v10818_v19 }
 0x8f1   : > { %v11171_v41 = vadd.f32 %v11165_v8, %v11159_v55  ;;  %v11160_v62 = vmul.f32 %v11153_v26, %v11146_v21  ;;  %v11138_v20 = vpop.f32.mrf.mxu1  ;;  %11184 = vst [vmem:[%s15180_s18 + $0x8] sm:$0xff] %v11176_v0 }
 0x8f2   : > { %v11177_v9 = vmax.f32 %v11169_v36, 0.0  ;;  %v11170_v27 = vadd.f32 %v11165_v8, %v11158_v52  ;;  %v11161_v3 = vmul.f32 %v11153_v26, %v11147_v13  ;;  %v11148_v42 = vadd.f32 %v11138_v20, %v10819_v61 }
 0x8f3   : > { %v11179_v35 = vmax.f32 %v11171_v41, 0.0  ;;  %v11172_v43 = vadd.f32 %v11165_v8, %v11160_v62 }
 0x8f4   : > { %11185 = vst [vmem:[%s15180_s18 + $0x10] sm:$0xff] %v11177_v9  ;;  %v11178_v54 = vmax.f32 %v11170_v27, 0.0  ;;  %v11173_v31 = vadd.f32 %v11165_v8, %v11161_v3  ;;  %v11162_v47 = vmul.f32 %v11153_v26, %v11148_v42 }
 0x8f5   : > { %11187 = vst [vmem:[%s15180_s18 + $0x20] sm:$0xff] %v11179_v35  ;;  %v11180_v45 = vmax.f32 %v11172_v43, 0.0 }
 0x8f6   : > { %11186 = vst [vmem:[%s15180_s18 + $0x18] sm:$0xff] %v11178_v54  ;;  %v11181_v32 = vmax.f32 %v11173_v31, 0.0  ;;  %v11174_v50 = vadd.f32 %v11165_v8, %v11162_v47 }
 0x8f7   : > { %11188 = vst [vmem:[%s15180_s18 + $0x28] sm:$0xff] %v11180_v45 }
 0x8f8   : > { %11189 = vst [vmem:[%s15180_s18 + $0x30] sm:$0xff] %v11181_v32  ;;  %v11182_v17 = vmax.f32 %v11174_v50, 0.0 }
 0x8fa   : > { %11190 = vst [vmem:[%s15180_s18 + $0x38] sm:$0xff] %v11182_v17 }
 0x8fb PF: > { %s19_s30 = sadd.s32 1, %s11797_s30  }
 0x8fc   : > { %p16_p4 = scmp.ge.s32.totalorder %s19_s30, 4  }
 0x8fe   :  { %18 = sbr.rel (!%p16_p4) target bundleno = 1 (0x1), region = 113 }

</bundles_post_ra>
